<compile_context>
chip_gen: v7x
topology: tpu7x:2x2x1
jax: 0.10.0
libtpu: 0.0.40
codegen_flags: <defaults>
</compile_context>

<pallas_src>
import functools
from typing import NamedTuple

import jax
import jax.numpy as jnp
from jax.experimental import pallas as pl
from jax.experimental.pallas import tpu as pltpu


_EPS = 1e-5


class Layer(NamedTuple):
    w: jax.Array       # (in, out) bf16, BN scale folded in
    shift: jax.Array   # (1, out) f32, folded bias/BN shift
    relu: bool


# ----------------------------------------------------------------------------
# Pallas kernel: whole MLP fused, one batch tile per grid step
# ----------------------------------------------------------------------------
def _fused_mlp_kernel(*refs, num_layers, relu_flags):
    x_ref = refs[0]
    w_refs = refs[1:1 + num_layers]
    s_refs = refs[1 + num_layers:1 + 2 * num_layers]
    o_ref = refs[1 + 2 * num_layers]

    h = x_ref[...].astype(jnp.bfloat16)               # (TM, F) -> bf16 for MXU
    for i in range(num_layers):
        # bf16 x bf16 matmul, f32 accumulation on the MXU.
        z = jnp.dot(h, w_refs[i][...], preferred_element_type=jnp.float32)
        z = z + s_refs[i][...]                         # folded bias + BN shift (f32)
        if relu_flags[i]:
            z = jnp.maximum(z, 0.0)
        if i + 1 < num_layers:
            h = z.astype(jnp.bfloat16)                 # next layer's MXU input
        else:
            o_ref[...] = z.astype(o_ref.dtype)         # final layer stays f32


def _pick_batch_tile(batch):
    """MXU-friendly row tile: 128-row tiles for big batches, else round up to 8."""
    if batch >= 128:
        return 128
    return max(8, ((batch + 7) // 8) * 8)


def fused_mlp(x2d, layers):
    """x2d: (B, F) f32 -> (B, F) f32, running the whole layer stack in one kernel."""
    B, F = x2d.shape
    TM = _pick_batch_tile(B)
    padded = ((B + TM - 1) // TM) * TM
    if padded != B:
        x2d = jnp.pad(x2d, ((0, padded - B), (0, 0)))

    weights = [l.w for l in layers]
    shifts = [l.shift for l in layers]
    relu_flags = tuple(bool(l.relu) for l in layers)

    kernel = functools.partial(
        _fused_mlp_kernel, num_layers=len(layers), relu_flags=relu_flags)

    in_specs = [pl.BlockSpec((TM, F), lambda i: (i, 0))]
    # Whole-array weight/shift blocks with a constant index_map: reused (not
    # re-DMA'd) across batch-tile grid steps.
    in_specs += [pl.BlockSpec(w.shape, lambda i: (0, 0)) for w in weights]
    in_specs += [pl.BlockSpec(s.shape, lambda i: (0, 0)) for s in shifts]

    out = pl.pallas_call(
        kernel,
        out_shape=jax.ShapeDtypeStruct((padded, F), jnp.float32),
        grid=(padded // TM,),
        in_specs=in_specs,
        out_specs=pl.BlockSpec((TM, F), lambda i: (i, 0)),
        compiler_params=pltpu.CompilerParams(
            dimension_semantics=("parallel",),      # shard batch tiles across TCs
            vmem_limit_bytes=32 * 1024 * 1024,      # above v5e's 16 MiB default
        ),
    )(x2d, *weights, *shifts)

    return out[:B]                                  # drop padded rows


# ----------------------------------------------------------------------------
# Deterministic parameter construction (synthetic, PyTorch-shaped, BN folded)
# ----------------------------------------------------------------------------
def _make_layer(key, in_f, out_f, with_bn, with_relu):
    kw, kb, kg, kbe, km, kv = jax.random.split(key, 6)
    bound = 1.0 / jnp.sqrt(jnp.float32(in_f))
    # PyTorch Linear weight is (out, in); store transposed (in, out) for x @ W.
    w = jax.random.uniform(kw, (in_f, out_f), jnp.float32, -bound, bound)
    b = jax.random.uniform(kb, (out_f,), jnp.float32, -bound, bound)
    if with_bn:
        gamma = 1.0 + 0.1 * jax.random.normal(kg, (out_f,), jnp.float32)
        beta = 0.1 * jax.random.normal(kbe, (out_f,), jnp.float32)
        rmean = 0.1 * jax.random.normal(km, (out_f,), jnp.float32)
        rvar = 1.0 + 0.1 * jax.random.uniform(kv, (out_f,), jnp.float32)
        scale = gamma / jnp.sqrt(rvar + _EPS)
        shift = (b - rmean) * scale + beta
    else:
        scale = jnp.ones((out_f,), jnp.float32)
        shift = b
    # Fold BN scale into W offline; keep shift in f32; weights bf16 for the MXU.
    w_folded = (w * scale[None, :]).astype(jnp.bfloat16)
    return Layer(w=w_folded, shift=shift.reshape(1, out_f), relu=with_relu)


def build_depth_model_params(key, height, width):
    f = height * width
    dims = [
        # (in, out, has_bn, has_relu)
        (f, 1024, True, True), (1024, 512, True, True),
        (512, 256, True, True), (256, 128, True, True),      # encoder
        (128, 256, True, True), (256, 512, True, True),
        (512, 1024, True, True), (1024, f, False, False),    # decoder
    ]
    keys = jax.random.split(key, len(dims))
    return [_make_layer(k, fi, fo, bn, relu)
            for k, (fi, fo, bn, relu) in zip(keys, dims)]


# ----------------------------------------------------------------------------
# Forward pass (glue: reshapes / padding only; all math in the Pallas kernel)
# ----------------------------------------------------------------------------
def depth_model_forward(x_nchw, layers, height, width):
    f = height * width
    x = x_nchw.reshape(-1, f).astype(jnp.float32)     # == torch .view(-1, H*W)
    y = fused_mlp(x, layers)
    return y.reshape(-1, 1, height, width)


def depth_model_reference(x_nchw, layers, height, width):
    """Pure-JAX reference with the same bf16-operand / f32-accum math."""
    f = height * width
    h = x_nchw.reshape(-1, f).astype(jnp.float32).astype(jnp.bfloat16)
    for i, l in enumerate(layers):
        z = jnp.dot(h, l.w, preferred_element_type=jnp.float32) + l.shift
        if l.relu:
            z = jnp.maximum(z, 0.0)
        h = z.astype(jnp.bfloat16) if i + 1 < len(layers) else z
    return h.reshape(-1, 1, height, width)


if __name__ == "__main__":
    HEIGHT, WIDTH, BATCH = 16, 16, 2

    root = jax.random.PRNGKey(0)
    k_params, k_x = jax.random.split(root)
    layers = build_depth_model_params(k_params, HEIGHT, WIDTH)

    x = jax.random.normal(k_x, (BATCH, 1, HEIGHT, WIDTH), jnp.float32)

    out = depth_model_forward(x, layers, HEIGHT, WIDTH)
    out = jax.block_until_ready(out)

    assert out.shape == (BATCH, 1, HEIGHT, WIDTH), out.shape
    ref = depth_model_reference(x, layers, HEIGHT, WIDTH)
    assert jnp.allclose(out, ref, atol=1e-2, rtol=1e-2), "mismatch vs reference"

    print("KERNEL_OK")
</pallas_src>

<mosaic_0001>
module attributes {stable_mosaic.version = 11 : i64} {
  func.func @_fused_mlp_kernel(%arg0: i32, %arg1: memref<8x256xf32, #tpu.memory_space<vmem>>, %arg2: memref<256x1024xbf16, #tpu.memory_space<vmem>>, %arg3: memref<1024x512xbf16, #tpu.memory_space<vmem>>, %arg4: memref<512x256xbf16, #tpu.memory_space<vmem>>, %arg5: memref<256x128xbf16, #tpu.memory_space<vmem>>, %arg6: memref<128x256xbf16, #tpu.memory_space<vmem>>, %arg7: memref<256x512xbf16, #tpu.memory_space<vmem>>, %arg8: memref<512x1024xbf16, #tpu.memory_space<vmem>>, %arg9: memref<1024x256xbf16, #tpu.memory_space<vmem>>, %arg10: memref<1x1024xf32, #tpu.memory_space<vmem>>, %arg11: memref<1x512xf32, #tpu.memory_space<vmem>>, %arg12: memref<1x256xf32, #tpu.memory_space<vmem>>, %arg13: memref<1x128xf32, #tpu.memory_space<vmem>>, %arg14: memref<1x256xf32, #tpu.memory_space<vmem>>, %arg15: memref<1x512xf32, #tpu.memory_space<vmem>>, %arg16: memref<1x1024xf32, #tpu.memory_space<vmem>>, %arg17: memref<1x256xf32, #tpu.memory_space<vmem>>, %arg18: memref<8x256xf32, #tpu.memory_space<vmem>>) attributes {dimension_semantics = [#tpu.dimension_semantics<parallel>], iteration_bounds = array<i64: 1>, scalar_prefetch = 0 : i64, scratch_operands = 0 : i64, tpu.core_type = #tpu.core_type<tc>, window_params = [{transform_indices = @transform_0, window_bounds = array<i64: 8, 256>}, {pipeline_mode = #tpu.pipeline_mode<synchronous>, transform_indices = @transform_1, window_bounds = array<i64: 256, 1024>}, {pipeline_mode = #tpu.pipeline_mode<synchronous>, transform_indices = @transform_2, window_bounds = array<i64: 1024, 512>}, {pipeline_mode = #tpu.pipeline_mode<synchronous>, transform_indices = @transform_3, window_bounds = array<i64: 512, 256>}, {pipeline_mode = #tpu.pipeline_mode<synchronous>, transform_indices = @transform_4, window_bounds = array<i64: 256, 128>}, {pipeline_mode = #tpu.pipeline_mode<synchronous>, transform_indices = @transform_5, window_bounds = array<i64: 128, 256>}, {pipeline_mode = #tpu.pipeline_mode<synchronous>, transform_indices = @transform_6, window_bounds = array<i64: 256, 512>}, {pipeline_mode = #tpu.pipeline_mode<synchronous>, transform_indices = @transform_7, window_bounds = array<i64: 512, 1024>}, {pipeline_mode = #tpu.pipeline_mode<synchronous>, transform_indices = @transform_8, window_bounds = array<i64: 1024, 256>}, {pipeline_mode = #tpu.pipeline_mode<synchronous>, transform_indices = @transform_9, window_bounds = array<i64: 1, 1024>}, {pipeline_mode = #tpu.pipeline_mode<synchronous>, transform_indices = @transform_10, window_bounds = array<i64: 1, 512>}, {pipeline_mode = #tpu.pipeline_mode<synchronous>, transform_indices = @transform_11, window_bounds = array<i64: 1, 256>}, {pipeline_mode = #tpu.pipeline_mode<synchronous>, transform_indices = @transform_12, window_bounds = array<i64: 1, 128>}, {pipeline_mode = #tpu.pipeline_mode<synchronous>, transform_indices = @transform_13, window_bounds = array<i64: 1, 256>}, {pipeline_mode = #tpu.pipeline_mode<synchronous>, transform_indices = @transform_14, window_bounds = array<i64: 1, 512>}, {pipeline_mode = #tpu.pipeline_mode<synchronous>, transform_indices = @transform_15, window_bounds = array<i64: 1, 1024>}, {pipeline_mode = #tpu.pipeline_mode<synchronous>, transform_indices = @transform_16, window_bounds = array<i64: 1, 256>}, {transform_indices = @transform_17, window_bounds = array<i64: 8, 256>}]} {
    %c0 = arith.constant 0 : index
    %c0_0 = arith.constant 0 : index
    %0 = vector.load %arg1[%c0, %c0_0] : memref<8x256xf32, #tpu.memory_space<vmem>>, vector<8x256xf32>
    %1 = arith.truncf %0 : vector<8x256xf32> to vector<8x256xbf16>
    %c0_1 = arith.constant 0 : index
    %c0_2 = arith.constant 0 : index
    %2 = vector.load %arg2[%c0_1, %c0_2] : memref<256x1024xbf16, #tpu.memory_space<vmem>>, vector<256x1024xbf16>
    %cst = arith.constant dense<0.000000e+00> : vector<8x1024xf32>
    %3 = tpu.matmul %1, %2, %cst {dimension_numbers = #tpu.dot_dimension_numbers<[1], [0], [0], [1], [0, 0, 1, 1], [], []>} : vector<8x256xbf16>, vector<256x1024xbf16>, vector<8x1024xf32> -> vector<8x1024xf32>
    %c0_3 = arith.constant 0 : index
    %c0_4 = arith.constant 0 : index
    %4 = vector.load %arg10[%c0_3, %c0_4] : memref<1x1024xf32, #tpu.memory_space<vmem>>, vector<1x1024xf32>
    %5 = vector.broadcast %4 : vector<1x1024xf32> to vector<8x1024xf32>
    %6 = arith.addf %3, %5 : vector<8x1024xf32>
    %cst_5 = arith.constant 0.000000e+00 : f32
    %7 = vector.broadcast %cst_5 : f32 to vector<8x1024xf32>
    %8 = arith.maximumf %6, %7 : vector<8x1024xf32>
    %9 = arith.truncf %8 : vector<8x1024xf32> to vector<8x1024xbf16>
    %c0_6 = arith.constant 0 : index
    %c0_7 = arith.constant 0 : index
    %10 = vector.load %arg3[%c0_6, %c0_7] : memref<1024x512xbf16, #tpu.memory_space<vmem>>, vector<1024x512xbf16>
    %cst_8 = arith.constant dense<0.000000e+00> : vector<8x512xf32>
    %11 = tpu.matmul %9, %10, %cst_8 {dimension_numbers = #tpu.dot_dimension_numbers<[1], [0], [0], [1], [0, 0, 1, 1], [], []>} : vector<8x1024xbf16>, vector<1024x512xbf16>, vector<8x512xf32> -> vector<8x512xf32>
    %c0_9 = arith.constant 0 : index
    %c0_10 = arith.constant 0 : index
    %12 = vector.load %arg11[%c0_9, %c0_10] : memref<1x512xf32, #tpu.memory_space<vmem>>, vector<1x512xf32>
    %13 = vector.broadcast %12 : vector<1x512xf32> to vector<8x512xf32>
    %14 = arith.addf %11, %13 : vector<8x512xf32>
    %cst_11 = arith.constant 0.000000e+00 : f32
    %15 = vector.broadcast %cst_11 : f32 to vector<8x512xf32>
    %16 = arith.maximumf %14, %15 : vector<8x512xf32>
    %17 = arith.truncf %16 : vector<8x512xf32> to vector<8x512xbf16>
    %c0_12 = arith.constant 0 : index
    %c0_13 = arith.constant 0 : index
    %18 = vector.load %arg4[%c0_12, %c0_13] : memref<512x256xbf16, #tpu.memory_space<vmem>>, vector<512x256xbf16>
    %cst_14 = arith.constant dense<0.000000e+00> : vector<8x256xf32>
    %19 = tpu.matmul %17, %18, %cst_14 {dimension_numbers = #tpu.dot_dimension_numbers<[1], [0], [0], [1], [0, 0, 1, 1], [], []>} : vector<8x512xbf16>, vector<512x256xbf16>, vector<8x256xf32> -> vector<8x256xf32>
    %c0_15 = arith.constant 0 : index
    %c0_16 = arith.constant 0 : index
    %20 = vector.load %arg12[%c0_15, %c0_16] : memref<1x256xf32, #tpu.memory_space<vmem>>, vector<1x256xf32>
    %21 = vector.broadcast %20 : vector<1x256xf32> to vector<8x256xf32>
    %22 = arith.addf %19, %21 : vector<8x256xf32>
    %cst_17 = arith.constant 0.000000e+00 : f32
    %23 = vector.broadcast %cst_17 : f32 to vector<8x256xf32>
    %24 = arith.maximumf %22, %23 : vector<8x256xf32>
    %25 = arith.truncf %24 : vector<8x256xf32> to vector<8x256xbf16>
    %c0_18 = arith.constant 0 : index
    %c0_19 = arith.constant 0 : index
    %26 = vector.load %arg5[%c0_18, %c0_19] : memref<256x128xbf16, #tpu.memory_space<vmem>>, vector<256x128xbf16>
    %cst_20 = arith.constant dense<0.000000e+00> : vector<8x128xf32>
    %27 = tpu.matmul %25, %26, %cst_20 {dimension_numbers = #tpu.dot_dimension_numbers<[1], [0], [0], [1], [0, 0, 1, 1], [], []>} : vector<8x256xbf16>, vector<256x128xbf16>, vector<8x128xf32> -> vector<8x128xf32>
    %c0_21 = arith.constant 0 : index
    %c0_22 = arith.constant 0 : index
    %28 = vector.load %arg13[%c0_21, %c0_22] : memref<1x128xf32, #tpu.memory_space<vmem>>, vector<1x128xf32>
    %29 = vector.broadcast %28 : vector<1x128xf32> to vector<8x128xf32>
    %30 = arith.addf %27, %29 : vector<8x128xf32>
    %cst_23 = arith.constant 0.000000e+00 : f32
    %31 = vector.broadcast %cst_23 : f32 to vector<8x128xf32>
    %32 = arith.maximumf %30, %31 : vector<8x128xf32>
    %33 = arith.truncf %32 : vector<8x128xf32> to vector<8x128xbf16>
    %c0_24 = arith.constant 0 : index
    %c0_25 = arith.constant 0 : index
    %34 = vector.load %arg6[%c0_24, %c0_25] : memref<128x256xbf16, #tpu.memory_space<vmem>>, vector<128x256xbf16>
    %cst_26 = arith.constant dense<0.000000e+00> : vector<8x256xf32>
    %35 = tpu.matmul %33, %34, %cst_26 {dimension_numbers = #tpu.dot_dimension_numbers<[1], [0], [0], [1], [0, 0, 1, 1], [], []>} : vector<8x128xbf16>, vector<128x256xbf16>, vector<8x256xf32> -> vector<8x256xf32>
    %c0_27 = arith.constant 0 : index
    %c0_28 = arith.constant 0 : index
    %36 = vector.load %arg14[%c0_27, %c0_28] : memref<1x256xf32, #tpu.memory_space<vmem>>, vector<1x256xf32>
    %37 = vector.broadcast %36 : vector<1x256xf32> to vector<8x256xf32>
    %38 = arith.addf %35, %37 : vector<8x256xf32>
    %cst_29 = arith.constant 0.000000e+00 : f32
    %39 = vector.broadcast %cst_29 : f32 to vector<8x256xf32>
    %40 = arith.maximumf %38, %39 : vector<8x256xf32>
    %41 = arith.truncf %40 : vector<8x256xf32> to vector<8x256xbf16>
    %c0_30 = arith.constant 0 : index
    %c0_31 = arith.constant 0 : index
    %42 = vector.load %arg7[%c0_30, %c0_31] : memref<256x512xbf16, #tpu.memory_space<vmem>>, vector<256x512xbf16>
    %cst_32 = arith.constant dense<0.000000e+00> : vector<8x512xf32>
    %43 = tpu.matmul %41, %42, %cst_32 {dimension_numbers = #tpu.dot_dimension_numbers<[1], [0], [0], [1], [0, 0, 1, 1], [], []>} : vector<8x256xbf16>, vector<256x512xbf16>, vector<8x512xf32> -> vector<8x512xf32>
    %c0_33 = arith.constant 0 : index
    %c0_34 = arith.constant 0 : index
    %44 = vector.load %arg15[%c0_33, %c0_34] : memref<1x512xf32, #tpu.memory_space<vmem>>, vector<1x512xf32>
    %45 = vector.broadcast %44 : vector<1x512xf32> to vector<8x512xf32>
    %46 = arith.addf %43, %45 : vector<8x512xf32>
    %cst_35 = arith.constant 0.000000e+00 : f32
    %47 = vector.broadcast %cst_35 : f32 to vector<8x512xf32>
    %48 = arith.maximumf %46, %47 : vector<8x512xf32>
    %49 = arith.truncf %48 : vector<8x512xf32> to vector<8x512xbf16>
    %c0_36 = arith.constant 0 : index
    %c0_37 = arith.constant 0 : index
    %50 = vector.load %arg8[%c0_36, %c0_37] : memref<512x1024xbf16, #tpu.memory_space<vmem>>, vector<512x1024xbf16>
    %cst_38 = arith.constant dense<0.000000e+00> : vector<8x1024xf32>
    %51 = tpu.matmul %49, %50, %cst_38 {dimension_numbers = #tpu.dot_dimension_numbers<[1], [0], [0], [1], [0, 0, 1, 1], [], []>} : vector<8x512xbf16>, vector<512x1024xbf16>, vector<8x1024xf32> -> vector<8x1024xf32>
    %c0_39 = arith.constant 0 : index
    %c0_40 = arith.constant 0 : index
    %52 = vector.load %arg16[%c0_39, %c0_40] : memref<1x1024xf32, #tpu.memory_space<vmem>>, vector<1x1024xf32>
    %53 = vector.broadcast %52 : vector<1x1024xf32> to vector<8x1024xf32>
    %54 = arith.addf %51, %53 : vector<8x1024xf32>
    %cst_41 = arith.constant 0.000000e+00 : f32
    %55 = vector.broadcast %cst_41 : f32 to vector<8x1024xf32>
    %56 = arith.maximumf %54, %55 : vector<8x1024xf32>
    %57 = arith.truncf %56 : vector<8x1024xf32> to vector<8x1024xbf16>
    %c0_42 = arith.constant 0 : index
    %c0_43 = arith.constant 0 : index
    %58 = vector.load %arg9[%c0_42, %c0_43] : memref<1024x256xbf16, #tpu.memory_space<vmem>>, vector<1024x256xbf16>
    %cst_44 = arith.constant dense<0.000000e+00> : vector<8x256xf32>
    %59 = tpu.matmul %57, %58, %cst_44 {dimension_numbers = #tpu.dot_dimension_numbers<[1], [0], [0], [1], [0, 0, 1, 1], [], []>} : vector<8x1024xbf16>, vector<1024x256xbf16>, vector<8x256xf32> -> vector<8x256xf32>
    %c0_45 = arith.constant 0 : index
    %c0_46 = arith.constant 0 : index
    %60 = vector.load %arg17[%c0_45, %c0_46] : memref<1x256xf32, #tpu.memory_space<vmem>>, vector<1x256xf32>
    %61 = vector.broadcast %60 : vector<1x256xf32> to vector<8x256xf32>
    %62 = arith.addf %59, %61 : vector<8x256xf32>
    %c0_47 = arith.constant 0 : index
    %c0_48 = arith.constant 0 : index
    %63 = vector.load %arg18[%c0_47, %c0_48] : memref<8x256xf32, #tpu.memory_space<vmem>>, vector<8x256xf32>
    tpu.vector_store %arg18[%c0_47, %c0_48], %62 {strides = array<i32>} : memref<8x256xf32, #tpu.memory_space<vmem>>, vector<8x256xf32>,
    return
  }
  func.func @transform_0(%arg0: i32) -> (i32, i32) {
    %c0_i32 = arith.constant 0 : i32
    %c0_i32_0 = arith.constant 0 : i32
    return %arg0, %c0_i32 : i32, i32
  }
  func.func @transform_1(%arg0: i32) -> (i32, i32) {
    %c0_i32 = arith.constant 0 : i32
    %c0_i32_0 = arith.constant 0 : i32
    %c0_i32_1 = arith.constant 0 : i32
    return %c0_i32, %c0_i32_0 : i32, i32
  }
  func.func @transform_2(%arg0: i32) -> (i32, i32) {
    %c0_i32 = arith.constant 0 : i32
    %c0_i32_0 = arith.constant 0 : i32
    %c0_i32_1 = arith.constant 0 : i32
    return %c0_i32, %c0_i32_0 : i32, i32
  }
  func.func @transform_3(%arg0: i32) -> (i32, i32) {
    %c0_i32 = arith.constant 0 : i32
    %c0_i32_0 = arith.constant 0 : i32
    %c0_i32_1 = arith.constant 0 : i32
    return %c0_i32, %c0_i32_0 : i32, i32
  }
  func.func @transform_4(%arg0: i32) -> (i32, i32) {
    %c0_i32 = arith.constant 0 : i32
    %c0_i32_0 = arith.constant 0 : i32
    %c0_i32_1 = arith.constant 0 : i32
    return %c0_i32, %c0_i32_0 : i32, i32
  }
  func.func @transform_5(%arg0: i32) -> (i32, i32) {
    %c0_i32 = arith.constant 0 : i32
    %c0_i32_0 = arith.constant 0 : i32
    %c0_i32_1 = arith.constant 0 : i32
    return %c0_i32, %c0_i32_0 : i32, i32
  }
  func.func @transform_6(%arg0: i32) -> (i32, i32) {
    %c0_i32 = arith.constant 0 : i32
    %c0_i32_0 = arith.constant 0 : i32
    %c0_i32_1 = arith.constant 0 : i32
    return %c0_i32, %c0_i32_0 : i32, i32
  }
  func.func @transform_7(%arg0: i32) -> (i32, i32) {
    %c0_i32 = arith.constant 0 : i32
    %c0_i32_0 = arith.constant 0 : i32
    %c0_i32_1 = arith.constant 0 : i32
    return %c0_i32, %c0_i32_0 : i32, i32
  }
  func.func @transform_8(%arg0: i32) -> (i32, i32) {
    %c0_i32 = arith.constant 0 : i32
    %c0_i32_0 = arith.constant 0 : i32
    %c0_i32_1 = arith.constant 0 : i32
    return %c0_i32, %c0_i32_0 : i32, i32
  }
  func.func @transform_9(%arg0: i32) -> (i32, i32) {
    %c0_i32 = arith.constant 0 : i32
    %c0_i32_0 = arith.constant 0 : i32
    %c0_i32_1 = arith.constant 0 : i32
    return %c0_i32, %c0_i32_0 : i32, i32
  }
  func.func @transform_10(%arg0: i32) -> (i32, i32) {
    %c0_i32 = arith.constant 0 : i32
    %c0_i32_0 = arith.constant 0 : i32
    %c0_i32_1 = arith.constant 0 : i32
    return %c0_i32, %c0_i32_0 : i32, i32
  }
  func.func @transform_11(%arg0: i32) -> (i32, i32) {
    %c0_i32 = arith.constant 0 : i32
    %c0_i32_0 = arith.constant 0 : i32
    %c0_i32_1 = arith.constant 0 : i32
    return %c0_i32, %c0_i32_0 : i32, i32
  }
  func.func @transform_12(%arg0: i32) -> (i32, i32) {
    %c0_i32 = arith.constant 0 : i32
    %c0_i32_0 = arith.constant 0 : i32
    %c0_i32_1 = arith.constant 0 : i32
    return %c0_i32, %c0_i32_0 : i32, i32
  }
  func.func @transform_13(%arg0: i32) -> (i32, i32) {
    %c0_i32 = arith.constant 0 : i32
    %c0_i32_0 = arith.constant 0 : i32
    %c0_i32_1 = arith.constant 0 : i32
    return %c0_i32, %c0_i32_0 : i32, i32
  }
  func.func @transform_14(%arg0: i32) -> (i32, i32) {
    %c0_i32 = arith.constant 0 : i32
    %c0_i32_0 = arith.constant 0 : i32
    %c0_i32_1 = arith.constant 0 : i32
    return %c0_i32, %c0_i32_0 : i32, i32
  }
  func.func @transform_15(%arg0: i32) -> (i32, i32) {
    %c0_i32 = arith.constant 0 : i32
    %c0_i32_0 = arith.constant 0 : i32
    %c0_i32_1 = arith.constant 0 : i32
    return %c0_i32, %c0_i32_0 : i32, i32
  }
  func.func @transform_16(%arg0: i32) -> (i32, i32) {
    %c0_i32 = arith.constant 0 : i32
    %c0_i32_0 = arith.constant 0 : i32
    %c0_i32_1 = arith.constant 0 : i32
    return %c0_i32, %c0_i32_0 : i32, i32
  }
  func.func @transform_17(%arg0: i32) -> (i32, i32) {
    %c0_i32 = arith.constant 0 : i32
    %c0_i32_0 = arith.constant 0 : i32
    return %arg0, %c0_i32 : i32, i32
  }
}

</mosaic_0001>

<bundles_post_ra>
// kernel: tpu_custom_call.1
= control target key start
LH: loop header
LB: loop body
LE: loop exit
PB: predicated region body
PF: predicated region fallthrough
CT: control target
= control target key end

     0   :  { %s9773_s0 = inlined_call_operand.hbm [shape: f32[8,256], index: 0, kind: input, shape index: {}]   ;;  %s9774_s1 = inlined_call_operand.hbm [shape: bf16[256,1024], index: 1, kind: input, shape index: {}]   ;;  %s9775_s2 = inlined_call_operand.hbm [shape: bf16[1024,512], index: 2, kind: input, shape index: {}]   ;;  %s9776_s3 = inlined_call_operand.hbm [shape: bf16[512,256], index: 3, kind: input, shape index: {}]   ;;  %s9777_s4 = inlined_call_operand.hbm [shape: bf16[256,128], index: 4, kind: input, shape index: {}]   ;;  %s9778_s5 = inlined_call_operand.hbm [shape: bf16[128,256], index: 5, kind: input, shape index: {}]   ;;  %s9779_s6 = inlined_call_operand.hbm [shape: bf16[256,512], index: 6, kind: input, shape index: {}]   ;;  %s9780_s7 = inlined_call_operand.hbm [shape: bf16[512,1024], index: 7, kind: input, shape index: {}]   ;;  %s9781_s8 = inlined_call_operand.hbm [shape: bf16[1024,256], index: 8, kind: input, shape index: {}]   ;;  %s9782_s9 = inlined_call_operand.vmem [shape: f32[1,1024], index: 9, kind: input, shape index: {}]   ;;  %s9783_s10 = inlined_call_operand.vmem [shape: f32[1,512], index: 10, kind: input, shape index: {}]   ;;  %s9784_s11 = inlined_call_operand.vmem [shape: f32[1,256], index: 11, kind: input, shape index: {}]   ;;  %s9785_s12 = inlined_call_operand.vmem [shape: f32[1,128], index: 12, kind: input, shape index: {}]   ;;  %s9786_s13 = inlined_call_operand.vmem [shape: f32[1,256], index: 13, kind: input, shape index: {}]   ;;  %s9787_s14 = inlined_call_operand.vmem [shape: f32[1,512], index: 14, kind: input, shape index: {}]   ;;  %s9788_s15 = inlined_call_operand.vmem [shape: f32[1,1024], index: 15, kind: input, shape index: {}]   ;;  %s9789_s16 = inlined_call_operand.vmem [shape: f32[1,256], index: 16, kind: input, shape index: {}]   ;;  %s9790_s17 = inlined_call_operand.hbm [shape: f32[8,256], index: 17, kind: output, shape index: {}]  }
   0x1   :  { %9797 = sst [smem:[#allocation24_spill]] %s9773_s0 }
   0x2   :  { %9798 = sst [smem:[#allocation25_spill]] %s9774_s1 }
   0x3   :  { %9799 = sst [smem:[#allocation26_spill]] %s9790_s17 }
   0x4   :  { %22 = vsyncpa [#allocation3], 0 }
   0x5   :  { %23 = vsyncpa [#allocation6], 0 }
   0x6   :  { %24 = vsyncpa [#allocation9], 0 }
   0x7   :  { %25 = vsyncpa [#allocation12], 0 }
   0x8   :  { %26 = vsyncpa [#allocation15], 0 }
   0x9   :  { %27 = vsyncpa [#allocation4], 0  ;;  %s9343_s24 = smov [#allocation5]   ;;  %s9800_s28 = sld [smem:[#allocation25_spill]] }
   0xa   :  { %s43_s25 = sshll.u32 %s9343_s24, 4  ;;  %s44_s25 = int_to_ptr.vmem [resolvable:$true] %s43_s25 }
   0xf   :  { %s9111_s29 = scalar_lea.hbm %s9800_s28, 16384 }
  0x10   :  { %p9112_p0 = scmp.ne.s32.totalorder %s9800_s28, %s9111_s29  ;;  %p9115_p1 = scmp.lt.u32.totalorder %s9111_s29, %s9800_s28 }
  0x12   :  { %p9117_p2 = pnand %p9115_p1, %p9112_p0 }
  0x14   :  { %9120 = shalt.err (!%p9117_p2)
}
  0x15   :  { %s9121_s1 = scalar_lea.vmem %s44_s25, 16384  ;;  %p9126_p4 = scmp.lt.s32.totalorder %s44_s25, %s44_s25 }
  0x16   :  { %p9122_p3 = scmp.ne.s32.totalorder %s44_s25, %s9121_s1  ;;  %p9127_p5 = scmp.lt.s32.totalorder %s9121_s1, %s9121_s1 }
  0x18   :  { %p9128_p6 = por %p9127_p5, %p9126_p4 }
  0x1a   :  { %p9129_p7 = pnand %p9128_p6, %p9122_p3 }
  0x1c   :  { %9132 = shalt.err (!%p9129_p7)
}
  0x1d   :  { %s9794_s20 = smov 512   ;;  %s9795_s21 = smov 32  }
  0x1e   :  { %49 = dma.hbm_to_vmem [thread:$0]  %s9800_s28, 16384, %s44_s25, [#allocation6], %s9794_s20, %s9794_s20, %s9795_s21  }
  0x1f   :  { %s9346_s24 = smov [#allocation8]   ;;  %s9133_s0 = scalar_lea.hbm %s9776_s3, 8192 }
  0x20   :  { %s67_s26 = sshll.u32 %s9346_s24, 4  ;;  %p9134_p8 = scmp.ne.s32.totalorder %s9776_s3, %s9133_s0  ;;  %s68_s26 = int_to_ptr.vmem [resolvable:$true] %s67_s26 }
  0x21   :  { %p9137_p9 = scmp.lt.u32.totalorder %s9133_s0, %s9776_s3 }
  0x23   :  { %p9139_p10 = pnand %p9137_p9, %p9134_p8 }
  0x25   :  { %9142 = shalt.err (!%p9139_p10)
}
  0x26   :  { %s9143_s17 = scalar_lea.vmem %s68_s26, 8192  ;;  %p9148_p12 = scmp.lt.s32.totalorder %s68_s26, %s68_s26 }
  0x27   :  { %p9144_p11 = scmp.ne.s32.totalorder %s68_s26, %s9143_s17  ;;  %p9149_p13 = scmp.lt.s32.totalorder %s9143_s17, %s9143_s17 }
  0x29   :  { %p9150_p0 = por %p9149_p13, %p9148_p12 }
  0x2b   :  { %p9151_p1 = pnand %p9150_p0, %p9144_p11 }
  0x2d   :  { %9154 = shalt.err (!%p9151_p1)
}
  0x2e   :  { %s9796_s25 = smov 128   ;;  %s9348_s28 = smov 8  }
  0x2f   :  { %73 = dma.hbm_to_vmem [thread:$0]  %s9776_s3, 8192, %s68_s26, [#allocation9], %s9796_s25, %s9796_s25, %s9348_s28  }
  0x30   :  { %s9349_s24 = smov [#allocation11]   ;;  %s9350_s29 = smov [#allocation14]  }
  0x31   :  { %s91_s27 = sshll.u32 %s9349_s24, 4  ;;  %s115_s0 = sshll.u32 %s9350_s29, 4  ;;  %s92_s27 = int_to_ptr.vmem [resolvable:$true] %s91_s27  ;;  %s9482_s0 = int_to_ptr.vmem [resolvable:$true] %s115_s0 }
  0x32   :  { %s9155_s18 = scalar_lea.hbm %s9778_s5, 2048 }
  0x33   :  { %p9156_p2 = scmp.ne.s32.totalorder %s9778_s5, %s9155_s18  ;;  %p9159_p3 = scmp.lt.u32.totalorder %s9155_s18, %s9778_s5 }
  0x35   :  { %p9161_p4 = pnand %p9159_p3, %p9156_p2 }
  0x37   :  { %9164 = shalt.err (!%p9161_p4)
}
  0x38   :  { %s9165_s3 = scalar_lea.vmem %s92_s27, 2048  ;;  %p9170_p6 = scmp.lt.s32.totalorder %s92_s27, %s92_s27 }
  0x39   :  { %p9166_p5 = scmp.ne.s32.totalorder %s92_s27, %s9165_s3  ;;  %p9171_p7 = scmp.lt.s32.totalorder %s9165_s3, %s9165_s3 }
  0x3b   :  { %p9172_p8 = por %p9171_p7, %p9170_p6 }
  0x3d   :  { %p9173_p9 = pnand %p9172_p8, %p9166_p5 }
  0x3f   :  { %9176 = shalt.err (!%p9173_p9)
}
  0x40   :  { %97 = dma.hbm_to_vmem [thread:$0]  %s9778_s5, 2048, %s92_s27, [#allocation12], %s9796_s25, %s9796_s25, %s9348_s28  }
  0x41   :  { %s9177_s20 = scalar_lea.hbm %s9780_s7, 32768 }
  0x42   :  { %p9178_p10 = scmp.ne.s32.totalorder %s9780_s7, %s9177_s20  ;;  %p9181_p11 = scmp.lt.u32.totalorder %s9177_s20, %s9780_s7 }
  0x44   :  { %p9183_p12 = pnand %p9181_p11, %p9178_p10 }
  0x46   :  { %9186 = shalt.err (!%p9183_p12)
}
  0x47   :  { %s9187_s18 = scalar_lea.vmem %s9482_s0, 32768  ;;  %p9192_p0 = scmp.lt.s32.totalorder %s9482_s0, %s9482_s0 }
  0x48   :  { %p9188_p13 = scmp.ne.s32.totalorder %s9482_s0, %s9187_s18  ;;  %p9193_p1 = scmp.lt.s32.totalorder %s9187_s18, %s9187_s18 }
  0x4a   :  { %p9194_p2 = por %p9193_p1, %p9192_p0 }
  0x4c   :  { %p9195_p3 = pnand %p9194_p2, %p9188_p13 }
  0x4e   :  { %9198 = shalt.err (!%p9195_p3)
}
  0x4f   :  { %s9801_s5 = smov 32   ;;  %s9802_s27 = smov 512  }
  0x50   :  { %121 = dma.hbm_to_vmem [thread:$0]  %s9780_s7, 32768, %s9482_s0, [#allocation15], %s9802_s27, %s9802_s27, %s9801_s5  }
  0x51   :  { %s9351_s3 = smov [#allocation2]   ;;  %s9352_s22 = smov [#allocation7]  }
  0x52   :  { %s34_s26 = sshll.u32 %s9351_s3, 4  ;;  %s55_s23 = sshll.u32 %s9352_s22, 4  ;;  %s35_s26 = int_to_ptr.vmem [resolvable:$true] %s34_s26  ;;  %s9519_s23 = int_to_ptr.vmem [resolvable:$true] %s55_s23 }
  0x53   :  { %s9803_s21 = sld [smem:[#allocation24_spill]] }
  0x59   :  { %s9199_s29 = scalar_lea.hbm %s9803_s21, 256 }
  0x5a   :  { %p9200_p4 = scmp.ne.s32.totalorder %s9803_s21, %s9199_s29  ;;  %p9203_p5 = scmp.lt.u32.totalorder %s9199_s29, %s9803_s21 }
  0x5c   :  { %p9205_p6 = pnand %p9203_p5, %p9200_p4 }
  0x5e   :  { %9208 = shalt.err (!%p9205_p6)
}
  0x5f   :  { %s9209_s7 = scalar_lea.vmem %s35_s26, 256  ;;  %p9214_p8 = scmp.lt.s32.totalorder %s35_s26, %s35_s26 }
  0x60   :  { %p9210_p7 = scmp.ne.s32.totalorder %s35_s26, %s9209_s7  ;;  %p9215_p9 = scmp.lt.s32.totalorder %s9209_s7, %s9209_s7 }
  0x62   :  { %p9216_p10 = por %p9215_p9, %p9214_p8 }
  0x64   :  { %p9217_p11 = pnand %p9216_p10, %p9210_p7 }
  0x66   :  { %9220 = shalt.err (!%p9217_p11)
}
  0x67   :  { %37 = dma.hbm_to_vmem [thread:$0]  %s9803_s21, 256, %s35_s26, [#allocation3]  }
  0x68   :  { %s9221_s1 = scalar_lea.hbm %s9775_s2, 32768 }
  0x69   :  { %p9222_p12 = scmp.ne.s32.totalorder %s9775_s2, %s9221_s1  ;;  %p9225_p13 = scmp.lt.u32.totalorder %s9221_s1, %s9775_s2 }
  0x6b   :  { %p9227_p0 = pnand %p9225_p13, %p9222_p12 }
  0x6d   :  { %9230 = shalt.err (!%p9227_p0)
}
  0x6e   :  { %s9231_s20 = scalar_lea.vmem %s9519_s23, 32768  ;;  %p9236_p2 = scmp.lt.s32.totalorder %s9519_s23, %s9519_s23 }
  0x6f   :  { %p9232_p1 = scmp.ne.s32.totalorder %s9519_s23, %s9231_s20  ;;  %p9237_p3 = scmp.lt.s32.totalorder %s9231_s20, %s9231_s20 }
  0x71   :  { %p9238_p4 = por %p9237_p3, %p9236_p2 }
  0x73   :  { %p9239_p5 = pnand %p9238_p4, %p9232_p1 }
  0x75   :  { %9242 = shalt.err (!%p9239_p5)
}
  0x76   :  { %s9353_s26 = smov 256   ;;  %s9354_s21 = smov 16  }
  0x77   :  { %61 = dma.hbm_to_vmem [thread:$0]  %s9775_s2, 32768, %s9519_s23, [#allocation6], %s9353_s26, %s9353_s26, %s9354_s21  }
  0x78   :  { %s9355_s30 = smov [#allocation10]   ;;  %s9243_s5 = scalar_lea.hbm %s9777_s4, 2048 }
  0x79   :  { %s79_s18 = sshll.u32 %s9355_s30, 4  ;;  %p9244_p6 = scmp.ne.s32.totalorder %s9777_s4, %s9243_s5  ;;  %s80_s18 = int_to_ptr.vmem [resolvable:$true] %s79_s18 }
  0x7a   :  { %p9247_p7 = scmp.lt.u32.totalorder %s9243_s5, %s9777_s4 }
  0x7c   :  { %p9249_p8 = pnand %p9247_p7, %p9244_p6 }
  0x7e   :  { %9252 = shalt.err (!%p9249_p8)
}
  0x7f   :  { %s9253_s25 = scalar_lea.vmem %s80_s18, 2048  ;;  %p9258_p10 = scmp.lt.s32.totalorder %s80_s18, %s80_s18 }
  0x80   :  { %p9254_p9 = scmp.ne.s32.totalorder %s80_s18, %s9253_s25  ;;  %p9259_p11 = scmp.lt.s32.totalorder %s9253_s25, %s9253_s25 }
  0x82   :  { %p9260_p12 = por %p9259_p11, %p9258_p10 }
  0x84   :  { %p9261_p13 = pnand %p9260_p12, %p9254_p9 }
  0x86   :  { %9264 = shalt.err (!%p9261_p13)
}
  0x87   :  { %s9356_s2 = smov 64   ;;  %s9357_s23 = smov 4  }
  0x88   :  { %85 = dma.hbm_to_vmem [thread:$0]  %s9777_s4, 2048, %s80_s18, [#allocation9], %s9356_s2, %s9356_s2, %s9357_s23  }
  0x89   :  { %s9358_s20 = smov [#allocation13]   ;;  %s9359_s17 = smov [#allocation16]  }
  0x8a   :  { %s103_s29 = sshll.u32 %s9358_s20, 4  ;;  %s127_s30 = sshll.u32 %s9359_s17, 4  ;;  %s104_s29 = int_to_ptr.vmem [resolvable:$true] %s103_s29  ;;  %s128_s30 = int_to_ptr.vmem [resolvable:$true] %s127_s30 }
  0x8b   :  { %s9265_s5 = scalar_lea.hbm %s9779_s6, 8192 }
  0x8c   :  { %p9266_p0 = scmp.ne.s32.totalorder %s9779_s6, %s9265_s5  ;;  %p9269_p1 = scmp.lt.u32.totalorder %s9265_s5, %s9779_s6 }
  0x8e   :  { %p9271_p2 = pnand %p9269_p1, %p9266_p0 }
  0x90   :  { %9274 = shalt.err (!%p9271_p2)
}
  0x91   :  { %s9275_s4 = scalar_lea.vmem %s104_s29, 8192  ;;  %p9280_p4 = scmp.lt.s32.totalorder %s104_s29, %s104_s29 }
  0x92   :  { %p9276_p3 = scmp.ne.s32.totalorder %s104_s29, %s9275_s4  ;;  %p9281_p5 = scmp.lt.s32.totalorder %s9275_s4, %s9275_s4 }
  0x94   :  { %p9282_p6 = por %p9281_p5, %p9280_p4 }
  0x96   :  { %p9283_p7 = pnand %p9282_p6, %p9276_p3 }
  0x98   :  { %9286 = shalt.err (!%p9283_p7)
}
  0x99   :  { %109 = dma.hbm_to_vmem [thread:$0]  %s9779_s6, 8192, %s104_s29, [#allocation12], %s9353_s26, %s9353_s26, %s9354_s21  }
  0x9a   :  { %s9287_s22 = scalar_lea.hbm %s9781_s8, 16384 }
  0x9b   :  { %p9288_p8 = scmp.ne.s32.totalorder %s9781_s8, %s9287_s22  ;;  %p9291_p9 = scmp.lt.u32.totalorder %s9287_s22, %s9781_s8 }
  0x9d   :  { %p9293_p10 = pnand %p9291_p9, %p9288_p8 }
  0x9f   :  { %9296 = shalt.err (!%p9293_p10)
}
  0xa0   :  { %s9297_s0 = scalar_lea.vmem %s128_s30, 16384  ;;  %p9302_p12 = scmp.lt.s32.totalorder %s128_s30, %s128_s30 }
  0xa1   :  { %p9298_p11 = scmp.ne.s32.totalorder %s128_s30, %s9297_s0  ;;  %p9303_p13 = scmp.lt.s32.totalorder %s9297_s0, %s9297_s0 }
  0xa3   :  { %p9304_p0 = por %p9303_p13, %p9302_p12 }
  0xa5   :  { %p9305_p1 = pnand %p9304_p0, %p9298_p11 }
  0xa7   :  { %9308 = shalt.err (!%p9305_p1)
}
  0xa8   :  { %s9804_s6 = smov 128  }
  0xa9   :  { %133 = dma.hbm_to_vmem [thread:$0]  %s9781_s8, 16384, %s128_s30, [#allocation15], %s9804_s6, %s9804_s6, %s9348_s28  }
  0xaa   :  { %9331 = dma.done.wait [#allocation3], 256  }
  0xab   :  { %9332 = vsyncadd [#allocation3], 4294967040 }
  0xac   :  { %9333 = dma.done.wait [#allocation6], 49152  }
  0xad   :  { %9334 = vsyncadd [#allocation6], 4294918144 }
  0xae   :  { %9335 = dma.done.wait [#allocation9], 10240  }
  0xaf   :  { %9336 = vsyncadd [#allocation9], 4294957056 }
  0xb0   :  { %9337 = dma.done.wait [#allocation12], 10240  }
  0xb1   :  { %9338 = vsyncadd [#allocation12], 4294957056 }
  0xb2   :  { %9339 = dma.done.wait [#allocation15], 49152  }
  0xb3   :  { %9340 = vsyncadd [#allocation15], 4294918144  ;;  %v182_v0 = vld [vmem:[#allocation5] sm:$0xff]  ;;  %v179_v17 = vld [vmem:[#allocation2 + $0x8] sm:$0xff]  ;;  %s9361_s4 = smov [#allocation17]  }
  0xb4   :  { %v186_v1 = vld [vmem:[#allocation5 + $0x20] sm:$0xff]  ;;  %v9595_v18 = vpack.c.bf16 %v179_v17, %v179_v17  ;;  %v185_v35 = vld [vmem:[#allocation5 + $0x18] sm:$0xff]  ;;  %s7248_s18 = sshll.u32 %s9361_s4, 4  ;;  %s7249_s18 = int_to_ptr.vmem [resolvable:$true] %s7248_s18 }
  0xb5   :  { %v190_v2 = vld [vmem:[#allocation5 + $0x40] sm:$0xff]  ;;  %v7262_v3 = vcombine.high %v182_v0, %v186_v1  ;;  %v7261_v4 = vcombine.low %v182_v0, %v186_v1  ;;  %v189_v36 = vld [vmem:[#allocation5 + $0x38] sm:$0xff]  ;;  %s9309_s25 = scalar_lea.vmem %s7249_s18, 256  ;;  %p9314_p3 = scmp.lt.s32.totalorder %s7249_s18, %s7249_s18 }
  0xb6   :  { %v194_v5 = vld [vmem:[#allocation5 + $0x60] sm:$0xff]  ;;  %1024 = vmatprep.mubr.bf16.mxu0 %v9595_v18  ;;  %1147 = vmatprep.mubr.bf16.mxu1 %v9595_v18  ;;  %v7268_v40 = vcombine.high %v185_v35, %v189_v36  ;;  %v7267_v42 = vcombine.low %v185_v35, %v189_v36  ;;  %v193_v43 = vld [vmem:[#allocation5 + $0x58] sm:$0xff]  ;;  %v178_v36 = vld [vmem:[#allocation2] sm:$0xff]  ;;  %p9310_p2 = scmp.ne.s32.totalorder %s7249_s18, %s9309_s25  ;;  %p9315_p4 = scmp.lt.s32.totalorder %s9309_s25, %s9309_s25 }
  0xb7   :  { %v7270_v6 = vcombine.high %v190_v2, %v194_v5  ;;  %v198_v7 = vld [vmem:[#allocation5 + $0x80] sm:$0xff]  ;;  %992 = vmatprep.subr.bf16.mxu0 %v7262_v3  ;;  %v7269_v9 = vcombine.low %v190_v2, %v194_v5  ;;  %v197_v44 = vld [vmem:[#allocation5 + $0x78] sm:$0xff] }
  0xb8   :  { %v202_v8 = vld [vmem:[#allocation5 + $0xa0] sm:$0xff]  ;;  %993 = vmatpush1.bf16.msra.mxu0 %v7261_v4  ;;  %1115 = vmatprep.subr.bf16.mxu1 %v7268_v40  ;;  %v7276_v48 = vcombine.high %v193_v43, %v197_v44  ;;  %v7275_v50 = vcombine.low %v193_v43, %v197_v44  ;;  %v201_v51 = vld [vmem:[#allocation5 + $0x98] sm:$0xff]  ;;  %v191_v40 = vld [vmem:[#allocation5 + $0x48] sm:$0xff]  ;;  %p9316_p5 = por %p9315_p4, %p9314_p3 }
  0xb9   :  { %994 = vmatprep.subr.bf16.mxu0 %v7270_v6  ;;  %v7278_v10 = vcombine.high %v198_v7, %v202_v8  ;;  %v206_v11 = vld [vmem:[#allocation5 + $0xc0] sm:$0xff]  ;;  %v7277_v13 = vcombine.low %v198_v7, %v202_v8  ;;  %1116 = vmatpush1.bf16.msra.mxu1 %v7267_v42  ;;  %v205_v52 = vld [vmem:[#allocation5 + $0xb8] sm:$0xff] }
  0xba   :  { %v210_v12 = vld [vmem:[#allocation5 + $0xe0] sm:$0xff]  ;;  %1117 = vmatprep.subr.bf16.mxu1 %v7276_v48  ;;  %v7284_v56 = vcombine.high %v201_v51, %v205_v52  ;;  %v7283_v58 = vcombine.low %v201_v51, %v205_v52  ;;  %v209_v59 = vld [vmem:[#allocation5 + $0xd8] sm:$0xff]  ;;  %p9317_p6 = pnand %p9316_p5, %p9310_p2 }
  0xbb   :  { %v7286_v14 = vcombine.high %v206_v11, %v210_v12  ;;  %v214_v15 = vld [vmem:[#allocation5 + $0x100] sm:$0xff]  ;;  %v7285_v19 = vcombine.low %v206_v11, %v210_v12  ;;  %v213_v60 = vld [vmem:[#allocation5 + $0xf8] sm:$0xff] }
  0xbc   :  { %995 = vmatpush1.bf16.msra.mxu0 %v7269_v9  ;;  %v218_v16 = vld [vmem:[#allocation5 + $0x120] sm:$0xff]  ;;  %v7292_v0 = vcombine.high %v209_v59, %v213_v60  ;;  %v7291_v2 = vcombine.low %v209_v59, %v213_v60  ;;  %v217_v3 = vld [vmem:[#allocation5 + $0x118] sm:$0xff] }
  0xbd   :  { %996 = vmatprep.subr.bf16.mxu0 %v7278_v10  ;;  %v7294_v20 = vcombine.high %v214_v15, %v218_v16  ;;  %v222_v21 = vld [vmem:[#allocation5 + $0x140] sm:$0xff]  ;;  %v7293_v23 = vcombine.low %v214_v15, %v218_v16  ;;  %1118 = vmatpush1.bf16.msra.mxu1 %v7275_v50  ;;  %v221_v4 = vld [vmem:[#allocation5 + $0x138] sm:$0xff]  ;;  %v203_v50 = vld [vmem:[#allocation5 + $0xa8] sm:$0xff] }
  0xbe   :  { %v226_v22 = vld [vmem:[#allocation5 + $0x160] sm:$0xff]  ;;  %1119 = vmatprep.subr.bf16.mxu1 %v7284_v56  ;;  %v7300_v8 = vcombine.high %v217_v3, %v221_v4  ;;  %v7299_v10 = vcombine.low %v217_v3, %v221_v4  ;;  %v225_v11 = vld [vmem:[#allocation5 + $0x158] sm:$0xff] }
  0xbf   :  { %v7302_v24 = vcombine.high %v222_v21, %v226_v22  ;;  %v230_v25 = vld [vmem:[#allocation5 + $0x180] sm:$0xff]  ;;  %v7301_v27 = vcombine.low %v222_v21, %v226_v22  ;;  %v229_v12 = vld [vmem:[#allocation5 + $0x178] sm:$0xff] }
  0xc0   :  { %997 = vmatpush1.bf16.msra.mxu0 %v7277_v13  ;;  %v234_v26 = vld [vmem:[#allocation5 + $0x1a0] sm:$0xff]  ;;  %v7308_v16 = vcombine.high %v225_v11, %v229_v12  ;;  %v237_v21 = vld [vmem:[#allocation5 + $0x1b8] sm:$0xff] }
  0xc1   :  { %998 = vmatprep.subr.bf16.mxu0 %v7286_v14  ;;  %v7310_v28 = vcombine.high %v230_v25, %v234_v26  ;;  %v238_v29 = vld [vmem:[#allocation5 + $0x1c0] sm:$0xff]  ;;  %v7309_v31 = vcombine.low %v230_v25, %v234_v26  ;;  %1120 = vmatpush1.bf16.msra.mxu1 %v7283_v58  ;;  %v273_v56 = vld [vmem:[#allocation5 + $0x2d8] sm:$0xff] }
  0xc2   :  { %v242_v30 = vld [vmem:[#allocation5 + $0x1e0] sm:$0xff]  ;;  %1121 = vmatprep.subr.bf16.mxu1 %v7292_v0  ;;  %v277_v60 = vld [vmem:[#allocation5 + $0x2f8] sm:$0xff] }
  0xc3   :  { %v7318_v32 = vcombine.high %v238_v29, %v242_v30  ;;  %v246_v33 = vld [vmem:[#allocation5 + $0x200] sm:$0xff]  ;;  %v7317_v37 = vcombine.low %v238_v29, %v242_v30  ;;  %v245_v29 = vld [vmem:[#allocation5 + $0x1f8] sm:$0xff]  ;;  %v7355_v3 = vcombine.low %v273_v56, %v277_v60 }
  0xc4   :  { %999 = vmatpush1.bf16.msra.mxu0 %v7285_v19  ;;  %v250_v34 = vld [vmem:[#allocation5 + $0x220] sm:$0xff]  ;;  %v7307_v19 = vcombine.low %v225_v11, %v229_v12  ;;  %v285_v0 = vld [vmem:[#allocation5 + $0x338] sm:$0xff] }
  0xc5   :  { %1000 = vmatprep.subr.bf16.mxu0 %v7294_v20  ;;  %v254_v38 = vld [vmem:[#allocation5 + $0x240] sm:$0xff]  ;;  %v7326_v41 = vcombine.high %v246_v33, %v250_v34  ;;  %v7325_v45 = vcombine.low %v246_v33, %v250_v34  ;;  %1122 = vmatpush1.bf16.msra.mxu1 %v7291_v2  ;;  %v233_v20 = vld [vmem:[#allocation5 + $0x198] sm:$0xff]  ;;  %v211_v2 = vld [vmem:[#allocation5 + $0xe8] sm:$0xff] }
  0xc6   :  { %v258_v39 = vld [vmem:[#allocation5 + $0x260] sm:$0xff]  ;;  %1123 = vmatprep.subr.bf16.mxu1 %v7300_v8  ;;  %v7316_v25 = vcombine.high %v233_v20, %v237_v21  ;;  %v293_v8 = vld [vmem:[#allocation5 + $0x378] sm:$0xff] }
  0xc7   :  { %v262_v46 = vld [vmem:[#allocation5 + $0x280] sm:$0xff]  ;;  %v7334_v49 = vcombine.high %v254_v38, %v258_v39  ;;  %v7333_v53 = vcombine.low %v254_v38, %v258_v39  ;;  %v253_v38 = vld [vmem:[#allocation5 + $0x238] sm:$0xff] }
  0xc8   :  { %1001 = vmatpush1.bf16.msra.mxu0 %v7293_v23  ;;  %v266_v47 = vld [vmem:[#allocation5 + $0x2a0] sm:$0xff] }
  0xc9   :  { %1002 = vmatprep.subr.bf16.mxu0 %v7302_v24  ;;  %v270_v54 = vld [vmem:[#allocation5 + $0x2c0] sm:$0xff]  ;;  %v7342_v57 = vcombine.high %v262_v46, %v266_v47  ;;  %v7341_v61 = vcombine.low %v262_v46, %v266_v47  ;;  %1124 = vmatpush1.bf16.msra.mxu1 %v7299_v10  ;;  %v257_v46 = vld [vmem:[#allocation5 + $0x258] sm:$0xff]  ;;  %v219_v10 = vld [vmem:[#allocation5 + $0x128] sm:$0xff] }
  0xca   :  { %v274_v55 = vld [vmem:[#allocation5 + $0x2e0] sm:$0xff]  ;;  %1125 = vmatprep.subr.bf16.mxu1 %v7308_v16  ;;  %v261_v47 = vld [vmem:[#allocation5 + $0x278] sm:$0xff] }
  0xcb   :  { %v278_v62 = vld [vmem:[#allocation5 + $0x300] sm:$0xff]  ;;  %v7350_v1 = vcombine.high %v270_v54, %v274_v55  ;;  %v7349_v5 = vcombine.low %v270_v54, %v274_v55  ;;  %v7340_v51 = vcombine.high %v257_v46, %v261_v47  ;;  %v265_v54 = vld [vmem:[#allocation5 + $0x298] sm:$0xff] }
  0xcc   :  { %1003 = vmatpush1.bf16.msra.mxu0 %v7301_v27  ;;  %v282_v63 = vld [vmem:[#allocation5 + $0x320] sm:$0xff]  ;;  %v7315_v27 = vcombine.low %v233_v20, %v237_v21  ;;  %v269_v55 = vld [vmem:[#allocation5 + $0x2b8] sm:$0xff] }
  0xcd   :  { %1004 = vmatprep.subr.bf16.mxu0 %v7310_v28  ;;  %v286_v6 = vld [vmem:[#allocation5 + $0x340] sm:$0xff]  ;;  %v7358_v9 = vcombine.high %v278_v62, %v282_v63  ;;  %v7357_v13 = vcombine.low %v278_v62, %v282_v63  ;;  %1126 = vmatpush1.bf16.msra.mxu1 %v7307_v19  ;;  %v241_v28 = vld [vmem:[#allocation5 + $0x1d8] sm:$0xff]  ;;  %v7348_v58 = vcombine.high %v265_v54, %v269_v55 }
  0xce   :  { %v290_v7 = vld [vmem:[#allocation5 + $0x360] sm:$0xff]  ;;  %1127 = vmatprep.subr.bf16.mxu1 %v7316_v25  ;;  %v7324_v33 = vcombine.high %v241_v28, %v245_v29  ;;  %v7323_v35 = vcombine.low %v241_v28, %v245_v29  ;;  %v7347_v59 = vcombine.low %v265_v54, %v269_v55  ;;  %v7356_v62 = vcombine.high %v273_v56, %v277_v60  ;;  %v281_v63 = vld [vmem:[#allocation5 + $0x318] sm:$0xff]  ;;  %v271_v55 = vld [vmem:[#allocation5 + $0x2c8] sm:$0xff] }
  0xcf   :  { %v294_v14 = vld [vmem:[#allocation5 + $0x380] sm:$0xff]  ;;  %v7366_v17 = vcombine.high %v286_v6, %v290_v7  ;;  %v7365_v22 = vcombine.low %v286_v6, %v290_v7  ;;  %v289_v7 = vld [vmem:[#allocation5 + $0x358] sm:$0xff]  ;;  %v7363_v11 = vcombine.low %v281_v63, %v285_v0 }
  0xd0   :  { %1005 = vmatpush1.bf16.msra.mxu0 %v7309_v31  ;;  %v298_v15 = vld [vmem:[#allocation5 + $0x3a0] sm:$0xff]  ;;  %v183_v31 = vld [vmem:[#allocation5 + $0x8] sm:$0xff]  ;;  %v301_v19 = vld [vmem:[#allocation5 + $0x3b8] sm:$0xff]  ;;  %v7371_v20 = vcombine.low %v289_v7, %v293_v8 }
  0xd1   :  { %1006 = vmatprep.subr.bf16.mxu0 %v7318_v32  ;;  %v302_v23 = vld [vmem:[#allocation5 + $0x3c0] sm:$0xff]  ;;  %v7374_v26 = vcombine.high %v294_v14, %v298_v15  ;;  %1128 = vmatpush1.bf16.msra.mxu1 %v7315_v27  ;;  %v7373_v30 = vcombine.low %v294_v14, %v298_v15  ;;  %v187_v32 = vld [vmem:[#allocation5 + $0x28] sm:$0xff]  ;;  %v7372_v15 = vcombine.high %v289_v7, %v293_v8  ;;  %v309_v27 = vld [vmem:[#allocation5 + $0x3f8] sm:$0xff] }
  0xd2   :  { %v306_v24 = vld [vmem:[#allocation5 + $0x3e0] sm:$0xff]  ;;  %1129 = vmatprep.subr.bf16.mxu1 %v7324_v33  ;;  %v7264_v43 = vcombine.high %v183_v31, %v187_v32  ;;  %v7263_v48 = vcombine.low %v183_v31, %v187_v32  ;;  %v227_v14 = vld [vmem:[#allocation5 + $0x168] sm:$0xff] }
  0xd3   :  { %v7382_v34 = vcombine.high %v302_v23, %v306_v24  ;;  %v7381_v39 = vcombine.low %v302_v23, %v306_v24  ;;  %v235_v23 = vld [vmem:[#allocation5 + $0x1a8] sm:$0xff] }
  0xd4   :  { %1007 = vmatpush1.bf16.msra.mxu0 %v7317_v37  ;;  %v249_v37 = vld [vmem:[#allocation5 + $0x218] sm:$0xff]  ;;  %v239_v32 = vld [vmem:[#allocation5 + $0x1c8] sm:$0xff] }
  0xd5   :  { %1008 = vmatprep.subr.bf16.mxu0 %v7326_v41  ;;  %1130 = vmatpush1.bf16.msra.mxu1 %v7323_v35  ;;  %v195_v41 = vld [vmem:[#allocation5 + $0x68] sm:$0xff]  ;;  %v7332_v42 = vcombine.high %v249_v37, %v253_v38  ;;  %v7331_v44 = vcombine.low %v249_v37, %v253_v38 }
  0xd6   :  { %v7272_v52 = vcombine.high %v191_v40, %v195_v41  ;;  %v243_v33 = vld [vmem:[#allocation5 + $0x1e8] sm:$0xff] }
  0xd7   :  { %1131 = vmatprep.subr.bf16.mxu1 %v7332_v42  ;;  %v8308_v37 = vld [vmem:[#allocation7 + $0xc] ss:$16 sps:$4 sm:$0xff]   ;;  %v7320_v38 = vcombine.high %v239_v32, %v243_v33  ;;  %v8336_v7 = vld [vmem:[#allocation7 + $0xa8] ss:$16 sps:$4 sm:$0xff]  }
  0xd8   :  { %1009 = vmatpush1.bf16.msra.mxu0 %v7325_v45  ;;  %v9599_v45 = vpack.c.bf16 %v178_v36, %v178_v36  ;;  %v247_v36 = vld [vmem:[#allocation5 + $0x208] sm:$0xff] }
  0xd9   :  { %1010 = vmatprep.subr.bf16.mxu0 %v7334_v49  ;;  %1132 = vmatpush1.bf16.msra.mxu1 %v7331_v44  ;;  %v199_v49 = vld [vmem:[#allocation5 + $0x88] sm:$0xff] }
  0xda   :  { %1133 = vmatprep.subr.bf16.mxu1 %v7340_v51  ;;  %v7279_v4 = vcombine.low %v199_v49, %v203_v50  ;;  %v255_v42 = vld [vmem:[#allocation5 + $0x248] sm:$0xff] }
  0xdb   :  { %v8326_v56 = vld [vmem:[#allocation7 + $0x6c] ss:$16 sps:$4 sm:$0xff]  }
  0xdc   :  { %1011 = vmatpush1.bf16.msra.mxu0 %v7333_v53  ;;  %v7339_v53 = vcombine.low %v257_v46, %v261_v47  ;;  %v259_v46 = vld [vmem:[#allocation5 + $0x268] sm:$0xff] }
  0xdd   :  { %1012 = vmatprep.subr.bf16.mxu0 %v7342_v57  ;;  %v7271_v57 = vcombine.low %v191_v40, %v195_v41  ;;  %v8306_v40 = vld [vmem:[#allocation7 + $0x8] ss:$16 sps:$4 sm:$0xff]   ;;  %v7319_v41 = vcombine.low %v239_v32, %v243_v33  ;;  %v7336_v51 = vcombine.high %v255_v42, %v259_v46  ;;  %v7335_v54 = vcombine.low %v255_v42, %v259_v46  ;;  %v8368_v33 = vld [vmem:[#allocation7 + $0x14c] ss:$16 sps:$4 sm:$0xff]   ;;  %v212_v42 = vld [vmem:[#allocation5 + $0xf0] sm:$0xff] }
  0xde   :  { %1134 = vmatpush1.bf16.msra.mxu1 %v7339_v53  ;;  %v8312_v47 = vld [vmem:[#allocation7 + $0x28] ss:$16 sps:$4 sm:$0xff]   ;;  %v8380_v46 = vld [vmem:[#allocation7 + $0x18c] ss:$16 sps:$4 sm:$0xff]  }
  0xdf   :  { %1135 = vmatprep.subr.bf16.mxu1 %v7348_v58  ;;  %v8318_v53 = vld [vmem:[#allocation7 + $0x48] ss:$16 sps:$4 sm:$0xff]  }
  0xe0   :  { %1013 = vmatpush1.bf16.msra.mxu0 %v7341_v61  ;;  %v7280_v61 = vcombine.high %v199_v49, %v203_v50  ;;  %v263_v49 = vld [vmem:[#allocation5 + $0x288] sm:$0xff] }
  0xe1   :  { %1014 = vmatprep.subr.bf16.mxu0 %v7350_v1  ;;  %v207_v1 = vld [vmem:[#allocation5 + $0xc8] sm:$0xff] }
  0xe2   :  { %1136 = vmatpush1.bf16.msra.mxu1 %v7347_v59  ;;  %v7288_v6 = vcombine.high %v207_v1, %v211_v2  ;;  %v7287_v12 = vcombine.low %v207_v1, %v211_v2  ;;  %v8320_v50 = vld [vmem:[#allocation7 + $0x4c] ss:$16 sps:$4 sm:$0xff]   ;;  %v8324_v59 = vld [vmem:[#allocation7 + $0x68] ss:$16 sps:$4 sm:$0xff]  }
  0xe3   :  { %1137 = vmatprep.subr.bf16.mxu1 %v7356_v62  ;;  %v275_v58 = vld [vmem:[#allocation5 + $0x2e8] sm:$0xff] }
  0xe4   :  { %1015 = vmatpush1.bf16.msra.mxu0 %v7349_v5  ;;  %v7364_v5 = vcombine.high %v281_v63, %v285_v0  ;;  %v8332_v62 = vld [vmem:[#allocation7 + $0x8c] ss:$16 sps:$4 sm:$0xff]   ;;  %v7352_v63 = vcombine.high %v271_v55, %v275_v58  ;;  %v8330_v1 = vld [vmem:[#allocation7 + $0x88] ss:$16 sps:$4 sm:$0xff]   ;;  %v7351_v2 = vcombine.low %v271_v55, %v275_v58  ;;  %v232_v58 = vld [vmem:[#allocation5 + $0x190] sm:$0xff] }
  0xe5   :  { %1016 = vmatprep.subr.bf16.mxu0 %v7358_v9  ;;  %v215_v9 = vld [vmem:[#allocation5 + $0x108] sm:$0xff] }
  0xe6   :  { %1138 = vmatpush1.bf16.msra.mxu1 %v7355_v3  ;;  %v7296_v16 = vcombine.high %v215_v9, %v219_v10  ;;  %v7295_v21 = vcombine.low %v215_v9, %v219_v10  ;;  %v283_v0 = vld [vmem:[#allocation5 + $0x328] sm:$0xff] }
  0xe7   :  { %1139 = vmatprep.subr.bf16.mxu1 %v7364_v5  ;;  %v287_v3 = vld [vmem:[#allocation5 + $0x348] sm:$0xff] }
  0xe8   :  { %1017 = vmatpush1.bf16.msra.mxu0 %v7357_v13  ;;  %v223_v13 = vld [vmem:[#allocation5 + $0x148] sm:$0xff] }
  0xe9   :  { %1018 = vmatprep.subr.bf16.mxu0 %v7366_v17  ;;  %v297_v17 = vld [vmem:[#allocation5 + $0x398] sm:$0xff]  ;;  %v7304_v25 = vcombine.high %v223_v13, %v227_v14  ;;  %v7303_v29 = vcombine.low %v223_v13, %v227_v14  ;;  %v295_v9 = vld [vmem:[#allocation5 + $0x388] sm:$0xff] }
  0xea   :  { %1140 = vmatpush1.bf16.msra.mxu1 %v7363_v11  ;;  %v7380_v24 = vcombine.high %v297_v17, %v301_v19  ;;  %v7379_v28 = vcombine.low %v297_v17, %v301_v19  ;;  %v8344_v10 = vld [vmem:[#allocation7 + $0xcc] ss:$16 sps:$4 sm:$0xff]   ;;  %v8342_v13 = vld [vmem:[#allocation7 + $0xc8] ss:$16 sps:$4 sm:$0xff]  }
  0xeb   :  { %1141 = vmatprep.subr.bf16.mxu1 %v7372_v15  ;;  %v303_v15 = vld [vmem:[#allocation5 + $0x3c8] sm:$0xff] }
  0xec   :  { %1019 = vmatpush1.bf16.msra.mxu0 %v7365_v22  ;;  %v231_v22 = vld [vmem:[#allocation5 + $0x188] sm:$0xff] }
  0xed   :  { %1020 = vmatprep.subr.bf16.mxu0 %v7374_v26  ;;  %v305_v26 = vld [vmem:[#allocation5 + $0x3d8] sm:$0xff]  ;;  %v7312_v31 = vcombine.high %v231_v22, %v235_v23  ;;  %v7311_v35 = vcombine.low %v231_v22, %v235_v23  ;;  %v307_v19 = vld [vmem:[#allocation5 + $0x3e8] sm:$0xff]  ;;  %v184_v22 = vld [vmem:[#allocation5 + $0x10] sm:$0xff] }
  0xee   :  { %1142 = vmatpush1.bf16.msra.mxu1 %v7371_v20  ;;  %v8348_v20 = vld [vmem:[#allocation7 + $0xe8] ss:$16 sps:$4 sm:$0xff]   ;;  %v188_v23 = vld [vmem:[#allocation5 + $0x30] sm:$0xff] }
  0xef   :  { %1143 = vmatprep.subr.bf16.mxu1 %v7380_v24  ;;  %v8356_v24 = vld [vmem:[#allocation7 + $0x10c] ss:$16 sps:$4 sm:$0xff]   ;;  %v8360_v32 = vld [vmem:[#allocation7 + $0x128] ss:$16 sps:$4 sm:$0xff]  }
  0xf0   :  { %1021 = vmatpush1.bf16.msra.mxu0 %v7373_v30  ;;  %v7388_v30 = vcombine.high %v305_v26, %v309_v27 }
  0xf1   :  { %1022 = vmatprep.subr.bf16.mxu0 %v7382_v34  ;;  %v7387_v34 = vcombine.low %v305_v26, %v309_v27  ;;  %v8354_v26 = vld [vmem:[#allocation7 + $0x108] ss:$16 sps:$4 sm:$0xff]   ;;  %v8362_v27 = vld [vmem:[#allocation7 + $0x12c] ss:$16 sps:$4 sm:$0xff]  }
  0xf2   :  { %1144 = vmatpush1.bf16.msra.mxu1 %v7379_v28  ;;  %v7383_v28 = vcombine.low %v303_v15, %v307_v19 }
  0xf3   :  { %1145 = vmatprep.subr.bf16.mxu1 %v7388_v30  ;;  %v196_v30 = vld [vmem:[#allocation5 + $0x70] sm:$0xff] }
  0xf4   :  { %1023 = vmatpush1.bf16.msra.mxu0 %v7381_v39  ;;  %v251_v39 = vld [vmem:[#allocation5 + $0x228] sm:$0xff] }
  0xf5   :  { %1033 = vmatprep.subr.bf16.mxu0 %v7264_v43  ;;  %v8314_v43 = vld [vmem:[#allocation7 + $0x2c] ss:$16 sps:$4 sm:$0xff]   ;;  %v7328_v44 = vcombine.high %v247_v36, %v251_v39 }
  0xf6   :  { %1146 = vmatpush1.bf16.msra.mxu1 %v7387_v34  ;;  %v7265_v34 = vcombine.low %v184_v22, %v188_v23 }
  0xf7   :  { %1025 = vmatmul.mubr.bf16.vlgmr.msra.gmra.mrb[0].mxu0 %v9599_v45  ;;  %2894 = vmatprep.subr.bf16.mxu1 %v8308_v37 }
  0xf8   :  { %1034 = vmatpush1.bf16.msra.mxu0 %v7263_v48  ;;  %1065 = vmatprep.mubr.bf16.mxu0 %v9595_v18  ;;  %v7327_v48 = vcombine.low %v247_v36, %v251_v39  ;;  %v204_v36 = vld [vmem:[#allocation5 + $0xb0] sm:$0xff]  ;;  %v8374_v39 = vld [vmem:[#allocation7 + $0x16c] ss:$16 sps:$4 sm:$0xff]  }
  0xf9   :  { %1035 = vmatprep.subr.bf16.mxu0 %v7272_v52  ;;  %1148 = vmatmul.mubr.bf16.vlgmr.msra.gmra.mrb[0].mxu1 %v9599_v45  ;;  %v267_v52 = vld [vmem:[#allocation5 + $0x2a8] sm:$0xff] }
  0xfa   :  { %2895 = vmatpush1.bf16.msra.mxu1 %v8306_v40  ;;  %v7343_v60 = vcombine.low %v263_v49, %v267_v52 }
  0xfb   :  { %2896 = vmatprep.subr.bf16.mxu1 %v8314_v43 }
  0xfc   :  { %1036 = vmatpush1.bf16.msra.mxu0 %v7271_v57  ;;  %v7344_v57 = vcombine.high %v263_v49, %v267_v52  ;;  %v220_v49 = vld [vmem:[#allocation5 + $0x130] sm:$0xff]  ;;  %v8386_v52 = vld [vmem:[#allocation7 + $0x1ac] ss:$16 sps:$4 sm:$0xff]  }
  0xfd   :  { %1037 = vmatprep.subr.bf16.mxu0 %v7280_v61  ;;  %v279_v61 = vld [vmem:[#allocation5 + $0x308] sm:$0xff] }
  0xfe   :  { %2897 = vmatpush1.bf16.msra.mxu1 %v8312_v47  ;;  %v7360_v5 = vcombine.high %v279_v61, %v283_v0  ;;  %v7359_v8 = vcombine.low %v279_v61, %v283_v0 }
  0xff   :  { %2898 = vmatprep.subr.bf16.mxu1 %v8320_v50 }
 0x100   :  { %1038 = vmatpush1.bf16.msra.mxu0 %v7279_v4  ;;  %v8338_v4 = vld [vmem:[#allocation7 + $0xac] ss:$16 sps:$4 sm:$0xff]  }
 0x101   :  { %1039 = vmatprep.subr.bf16.mxu0 %v7288_v6  ;;  %v291_v6 = vld [vmem:[#allocation5 + $0x368] sm:$0xff] }
 0x102   :  { %2899 = vmatpush1.bf16.msra.mxu1 %v8318_v53  ;;  %v7368_v11 = vcombine.high %v287_v3, %v291_v6  ;;  %v7367_v14 = vcombine.low %v287_v3, %v291_v6 }
 0x103   :  { %2900 = vmatprep.subr.bf16.mxu1 %v8326_v56  ;;  %v8384_v56 = vld [vmem:[#allocation7 + $0x1a8] ss:$16 sps:$4 sm:$0xff]  }
 0x104   :  { %1040 = vmatpush1.bf16.msra.mxu0 %v7287_v12  ;;  %v299_v12 = vld [vmem:[#allocation5 + $0x3a8] sm:$0xff] }
 0x105   :  { %1041 = vmatprep.subr.bf16.mxu0 %v7296_v16  ;;  %v8350_v16 = vld [vmem:[#allocation7 + $0xec] ss:$16 sps:$4 sm:$0xff]   ;;  %v7376_v17 = vcombine.high %v295_v9, %v299_v12 }
 0x106   :  { %2901 = vmatpush1.bf16.msra.mxu1 %v8324_v59  ;;  %v236_v59 = vld [vmem:[#allocation5 + $0x1b0] sm:$0xff] }
 0x107   :  { %2902 = vmatprep.subr.bf16.mxu1 %v8332_v62  ;;  %v240_v62 = vld [vmem:[#allocation5 + $0x1d0] sm:$0xff]  ;;  %v7314_v0 = vcombine.high %v232_v58, %v236_v59  ;;  %v7313_v3 = vcombine.low %v232_v58, %v236_v59 }
 0x108   :  { %1042 = vmatpush1.bf16.msra.mxu0 %v7295_v21  ;;  %v7375_v21 = vcombine.low %v295_v9, %v299_v12  ;;  %v256_v12 = vld [vmem:[#allocation5 + $0x250] sm:$0xff] }
 0x109   :  { %1043 = vmatprep.subr.bf16.mxu0 %v7304_v25  ;;  %v7384_v25 = vcombine.high %v303_v15, %v307_v19  ;;  %v8351_v58 = vld [vmem:[#allocation7 + $0x100] ss:$16 sps:$4 sm:$0xff]   ;;  %v8359_v59 = vld [vmem:[#allocation7 + $0x124] ss:$16 sps:$4 sm:$0xff]  }
 0x10a   :  { %2903 = vmatpush1.bf16.msra.mxu1 %v8330_v1  ;;  %v244_v1 = vld [vmem:[#allocation5 + $0x1f0] sm:$0xff] }
 0x10b   :  { %2904 = vmatprep.subr.bf16.mxu1 %v8338_v4  ;;  %v248_v4 = vld [vmem:[#allocation5 + $0x210] sm:$0xff]  ;;  %v7322_v6 = vcombine.high %v240_v62, %v244_v1  ;;  %v7321_v9 = vcombine.low %v240_v62, %v244_v1 }
 0x10c   :  { %1044 = vmatpush1.bf16.msra.mxu0 %v7303_v29  ;;  %v192_v29 = vld [vmem:[#allocation5 + $0x50] sm:$0xff] }
 0x10d   :  { %1045 = vmatprep.subr.bf16.mxu0 %v7312_v31  ;;  %v7266_v31 = vcombine.high %v184_v22, %v188_v23  ;;  %v7274_v37 = vcombine.high %v192_v29, %v196_v30  ;;  %v7273_v40 = vcombine.low %v192_v29, %v196_v30  ;;  %v276_v22 = vld [vmem:[#allocation5 + $0x2f0] sm:$0xff] }
 0x10e   :  { %2905 = vmatpush1.bf16.msra.mxu1 %v8336_v7  ;;  %v252_v7 = vld [vmem:[#allocation5 + $0x230] sm:$0xff] }
 0x10f   :  { %2906 = vmatprep.subr.bf16.mxu1 %v8344_v10  ;;  %v8404_v10 = vld [vmem:[#allocation7 + $0x20c] ss:$16 sps:$4 sm:$0xff]   ;;  %v288_v29 = vld [vmem:[#allocation5 + $0x350] sm:$0xff] }
 0x110   :  { %1046 = vmatpush1.bf16.msra.mxu0 %v7311_v35  ;;  %v200_v35 = vld [vmem:[#allocation5 + $0x90] sm:$0xff] }
 0x111   :  { %1047 = vmatprep.subr.bf16.mxu0 %v7320_v38  ;;  %v8366_v38 = vld [vmem:[#allocation7 + $0x148] ss:$16 sps:$4 sm:$0xff]   ;;  %v7282_v43 = vcombine.high %v200_v35, %v204_v36  ;;  %v7281_v47 = vcombine.low %v200_v35, %v204_v36  ;;  %v292_v30 = vld [vmem:[#allocation5 + $0x370] sm:$0xff] }
 0x112   :  { %2907 = vmatpush1.bf16.msra.mxu1 %v8342_v13  ;;  %v260_v13 = vld [vmem:[#allocation5 + $0x270] sm:$0xff]  ;;  %v7369_v35 = vcombine.low %v288_v29, %v292_v30 }
 0x113   :  { %2908 = vmatprep.subr.bf16.mxu1 %v8350_v16  ;;  %v7338_v15 = vcombine.high %v256_v12, %v260_v13  ;;  %v264_v16 = vld [vmem:[#allocation5 + $0x290] sm:$0xff]  ;;  %v7337_v19 = vcombine.low %v256_v12, %v260_v13 }
 0x114   :  { %1048 = vmatpush1.bf16.msra.mxu0 %v7319_v41  ;;  %v208_v41 = vld [vmem:[#allocation5 + $0xd0] sm:$0xff] }
 0x115   :  { %1049 = vmatprep.subr.bf16.mxu0 %v7328_v44  ;;  %v8372_v44 = vld [vmem:[#allocation7 + $0x168] ss:$16 sps:$4 sm:$0xff]   ;;  %v7290_v50 = vcombine.high %v208_v41, %v212_v42  ;;  %v7289_v53 = vcombine.low %v208_v41, %v212_v42  ;;  %v8305_v42 = vld [vmem:[#allocation7 + $0x4] ss:$16 sps:$4 sm:$0xff]   ;;  %v8363_v62 = vld [vmem:[#allocation7 + $0x140] ss:$16 sps:$4 sm:$0xff]  }
 0x116   :  { %2909 = vmatpush1.bf16.msra.mxu1 %v8348_v20  ;;  %v8377_v1 = vld [vmem:[#allocation7 + $0x184] ss:$16 sps:$4 sm:$0xff]  }
 0x117   :  { %2910 = vmatprep.subr.bf16.mxu1 %v8356_v24  ;;  %v9615_v13 = vld [vmem:[%s9782_s9] sm:$0xff] }
 0x118   :  { %1050 = vmatpush1.bf16.msra.mxu0 %v7327_v48  ;;  %v216_v48 = vld [vmem:[#allocation5 + $0x110] sm:$0xff] }
 0x119   :  { %1051 = vmatprep.subr.bf16.mxu0 %v7336_v51  ;;  %v8378_v51 = vld [vmem:[#allocation7 + $0x188] ss:$16 sps:$4 sm:$0xff]   ;;  %v7298_v55 = vcombine.high %v216_v48, %v220_v49 }
 0x11a   :  { %2911 = vmatpush1.bf16.msra.mxu1 %v8354_v26  ;;  %v284_v26 = vld [vmem:[#allocation5 + $0x330] sm:$0xff] }
 0x11b   :  { %2912 = vmatprep.subr.bf16.mxu1 %v8362_v27 }
 0x11c   :  { %1052 = vmatpush1.bf16.msra.mxu0 %v7335_v54  ;;  %v224_v54 = vld [vmem:[#allocation5 + $0x150] sm:$0xff] }
 0x11d   :  { %1053 = vmatprep.subr.bf16.mxu0 %v7344_v57  ;;  %v7297_v57 = vcombine.low %v216_v48, %v220_v49  ;;  %v8315_v48 = vld [vmem:[#allocation7 + $0x40] ss:$16 sps:$4 sm:$0xff]   ;;  %v8323_v49 = vld [vmem:[#allocation7 + $0x64] ss:$16 sps:$4 sm:$0xff]  }
 0x11e   :  { %2913 = vmatpush1.bf16.msra.mxu1 %v8360_v32  ;;  %v7370_v32 = vcombine.high %v288_v29, %v292_v30  ;;  %v8407_v30 = vld [vmem:[#allocation7 + $0x224] ss:$16 sps:$4 sm:$0xff]  }
 0x11f   :  { %2914 = vmatprep.subr.bf16.mxu1 %v8368_v33  ;;  %v296_v33 = vld [vmem:[#allocation5 + $0x390] sm:$0xff] }
 0x120   :  { %1054 = vmatpush1.bf16.msra.mxu0 %v7343_v60 }
 0x121   :  { %1055 = vmatprep.subr.bf16.mxu0 %v7352_v63  ;;  %v8392_v63 = vld [vmem:[#allocation7 + $0x1cc] ss:$16 sps:$4 sm:$0xff]  }
 0x122   :  { %2915 = vmatpush1.bf16.msra.mxu1 %v8366_v38  ;;  %v308_v38 = vld [vmem:[#allocation5 + $0x3f0] sm:$0xff] }
 0x123   :  { %2916 = vmatprep.subr.bf16.mxu1 %v8374_v39 }
 0x124   :  { %1056 = vmatpush1.bf16.msra.mxu0 %v7351_v2  ;;  %v8390_v2 = vld [vmem:[#allocation7 + $0x1c8] ss:$16 sps:$4 sm:$0xff]  }
 0x125   :  { %1057 = vmatprep.subr.bf16.mxu0 %v7360_v5  ;;  %v8398_v5 = vld [vmem:[#allocation7 + $0x1ec] ss:$16 sps:$4 sm:$0xff]  }
 0x126   :  { %2917 = vmatpush1.bf16.msra.mxu1 %v8372_v44  ;;  %v8311_v44 = vld [vmem:[#allocation7 + $0x24] ss:$16 sps:$4 sm:$0xff]  }
 0x127   :  { %2918 = vmatprep.subr.bf16.mxu1 %v8380_v46  ;;  %v8309_v46 = vld [vmem:[#allocation7 + $0x20] ss:$16 sps:$4 sm:$0xff]  }
 0x128   :  { %1058 = vmatpush1.bf16.msra.mxu0 %v7359_v8  ;;  %v8396_v8 = vld [vmem:[#allocation7 + $0x1e8] ss:$16 sps:$4 sm:$0xff]  }
 0x129   :  { %1059 = vmatprep.subr.bf16.mxu0 %v7368_v11  ;;  %v7330_v11 = vcombine.high %v248_v4, %v252_v7 }
 0x12a   :  { %2919 = vmatpush1.bf16.msra.mxu1 %v8378_v51  ;;  %v8329_v51 = vld [vmem:[#allocation7 + $0x84] ss:$16 sps:$4 sm:$0xff]  }
 0x12b   :  { %2920 = vmatprep.subr.bf16.mxu1 %v8386_v52  ;;  %v8327_v52 = vld [vmem:[#allocation7 + $0x80] ss:$16 sps:$4 sm:$0xff]  }
 0x12c   :  { %1060 = vmatpush1.bf16.msra.mxu0 %v7367_v14  ;;  %v7329_v14 = vcombine.low %v248_v4, %v252_v7  ;;  %v8381_v4 = vld [vmem:[#allocation7 + $0x1a0] ss:$16 sps:$4 sm:$0xff]   ;;  %v8395_v7 = vld [vmem:[#allocation7 + $0x1e4] ss:$16 sps:$4 sm:$0xff]  }
 0x12d   :  { %1061 = vmatprep.subr.bf16.mxu0 %v7376_v17  ;;  %v268_v17 = vld [vmem:[#allocation5 + $0x2b0] sm:$0xff] }
 0x12e   :  { %2921 = vmatpush1.bf16.msra.mxu1 %v8384_v56  ;;  %v7346_v20 = vcombine.high %v264_v16, %v268_v17  ;;  %v7345_v23 = vcombine.low %v264_v16, %v268_v17  ;;  %v8345_v56 = vld [vmem:[#allocation7 + $0xe0] ss:$16 sps:$4 sm:$0xff]  }
 0x12f   :  { %2922 = vmatprep.subr.bf16.mxu1 %v8392_v63  ;;  %v8371_v63 = vld [vmem:[#allocation7 + $0x164] ss:$16 sps:$4 sm:$0xff]  }
 0x130   :  { %1062 = vmatpush1.bf16.msra.mxu0 %v7375_v21  ;;  %v272_v21 = vld [vmem:[#allocation5 + $0x2d0] sm:$0xff] }
 0x131   :  { %1063 = vmatprep.subr.bf16.mxu0 %v7384_v25  ;;  %v7354_v24 = vcombine.high %v272_v21, %v276_v22  ;;  %v280_v25 = vld [vmem:[#allocation5 + $0x310] sm:$0xff]  ;;  %v7353_v27 = vcombine.low %v272_v21, %v276_v22 }
 0x132   :  { %2923 = vmatpush1.bf16.msra.mxu1 %v8390_v2  ;;  %v8375_v2 = vld [vmem:[#allocation7 + $0x180] ss:$16 sps:$4 sm:$0xff]  }
 0x133   :  { %2924 = vmatprep.subr.bf16.mxu1 %v8398_v5  ;;  %v8389_v5 = vld [vmem:[#allocation7 + $0x1c4] ss:$16 sps:$4 sm:$0xff]  }
 0x134   :  { %1064 = vmatpush1.bf16.msra.mxu0 %v7383_v28  ;;  %v7362_v28 = vcombine.high %v280_v25, %v284_v26 }
 0x135   :  { %1074 = vmatprep.subr.bf16.mxu0 %v7266_v31  ;;  %v7361_v31 = vcombine.low %v280_v25, %v284_v26  ;;  %v8399_v26 = vld [vmem:[#allocation7 + $0x200] ss:$16 sps:$4 sm:$0xff]  }
 0x136   :  { %2925 = vmatpush1.bf16.msra.mxu1 %v8396_v8  ;;  %v8393_v8 = vld [vmem:[#allocation7 + $0x1e0] ss:$16 sps:$4 sm:$0xff]  }
 0x137   :  { %1066 = vmatmul.mubr.bf16.vlgmr.msra.gmra.mrb[4].mxu0 %v9599_v45  ;;  %2935 = vmatprep.subr.bf16.mxu1 %v8404_v10  ;;  %v312_v10 = vlaneseq }
 0x138   :  { %1075 = vmatpush1.bf16.msra.mxu0 %v7265_v34  ;;  %1106 = vmatprep.mubr.bf16.mxu0 %v9595_v18  ;;  %v228_v18 = vld [vmem:[#allocation5 + $0x170] sm:$0xff] }
 0x139   :  { %1076 = vmatprep.subr.bf16.mxu0 %v7274_v37  ;;  %v7306_v60 = vcombine.high %v224_v54, %v228_v18  ;;  %v7305_v61 = vcombine.low %v224_v54, %v228_v18  ;;  %v300_v34 = vld [vmem:[#allocation5 + $0x3b0] sm:$0xff] }
 0x13a   :  { %v7378_v36 = vcombine.high %v296_v33, %v300_v34  ;;  %v304_v37 = vld [vmem:[#allocation5 + $0x3d0] sm:$0xff]  ;;  %v7377_v39 = vcombine.low %v296_v33, %v300_v34  ;;  %v8408_v33 = vld [vmem:[#allocation7 + $0x228] ss:$16 sps:$4 sm:$0xff]  }
 0x13b   :  { %v7385_v41 = vcombine.low %v304_v37, %v308_v38  ;;  %v8333_v54 = vld [vmem:[#allocation7 + $0xa0] ss:$16 sps:$4 sm:$0xff]   ;;  %v8413_v34 = vld [vmem:[#allocation7 + $0x244] ss:$16 sps:$4 sm:$0xff]  }
 0x13c   :  { %1077 = vmatpush1.bf16.msra.mxu0 %v7273_v40  ;;  %v7386_v40 = vcombine.high %v304_v37, %v308_v38  ;;  %v8339_v18 = vld [vmem:[#allocation7 + $0xc0] ss:$16 sps:$4 sm:$0xff]   ;;  %v8414_v37 = vld [vmem:[#allocation7 + $0x248] ss:$16 sps:$4 sm:$0xff]   ;;  %v8419_v38 = vld [vmem:[#allocation7 + $0x264] ss:$16 sps:$4 sm:$0xff]  }
 0x13d   :  { %1078 = vmatprep.subr.bf16.mxu0 %v7282_v43  ;;  %v8303_v43 = vld [vmem:[#allocation7] ss:$16 sps:$4 sm:$0xff]  }
 0x140   :  { %1079 = vmatpush1.bf16.msra.mxu0 %v7281_v47  ;;  %v8317_v47 = vld [vmem:[#allocation7 + $0x44] ss:$16 sps:$4 sm:$0xff]  }
 0x141   :  { %1080 = vmatprep.subr.bf16.mxu0 %v7290_v50  ;;  %v8321_v50 = vld [vmem:[#allocation7 + $0x60] ss:$16 sps:$4 sm:$0xff]  }
 0x144   :  { %1081 = vmatpush1.bf16.msra.mxu0 %v7289_v53  ;;  %v8335_v53 = vld [vmem:[#allocation7 + $0xa4] ss:$16 sps:$4 sm:$0xff]  }
 0x145   :  { %1082 = vmatprep.subr.bf16.mxu0 %v7298_v55  ;;  %v8347_v55 = vld [vmem:[#allocation7 + $0xe4] ss:$16 sps:$4 sm:$0xff]  }
 0x148   :  { %1083 = vmatpush1.bf16.msra.mxu0 %v7297_v57  ;;  %v8353_v57 = vld [vmem:[#allocation7 + $0x104] ss:$16 sps:$4 sm:$0xff]  }
 0x149   :  { %1084 = vmatprep.subr.bf16.mxu0 %v7306_v60  ;;  %v8357_v60 = vld [vmem:[#allocation7 + $0x120] ss:$16 sps:$4 sm:$0xff]  }
 0x14c   :  { %1085 = vmatpush1.bf16.msra.mxu0 %v7305_v61  ;;  %v8365_v61 = vld [vmem:[#allocation7 + $0x144] ss:$16 sps:$4 sm:$0xff]  }
 0x14d   :  { %1086 = vmatprep.subr.bf16.mxu0 %v7314_v0  ;;  %v8369_v0 = vld [vmem:[#allocation7 + $0x160] ss:$16 sps:$4 sm:$0xff]  }
 0x150   :  { %1087 = vmatpush1.bf16.msra.mxu0 %v7313_v3  ;;  %v8383_v3 = vld [vmem:[#allocation7 + $0x1a4] ss:$16 sps:$4 sm:$0xff]  }
 0x151   :  { %1088 = vmatprep.subr.bf16.mxu0 %v7322_v6  ;;  %v8387_v6 = vld [vmem:[#allocation7 + $0x1c0] ss:$16 sps:$4 sm:$0xff]  }
 0x154   :  { %1089 = vmatpush1.bf16.msra.mxu0 %v7321_v9  ;;  %v8401_v9 = vld [vmem:[#allocation7 + $0x204] ss:$16 sps:$4 sm:$0xff]  }
 0x155   :  { %1090 = vmatprep.subr.bf16.mxu0 %v7330_v11  ;;  %v9607_v11 = vshrl.u32 %v312_v10, 7  ;;  %v8476_v10 = vld [vmem:[#allocation7 + $0x38c] ss:$16 sps:$4 sm:$0xff]  }
 0x157   :  { %v9610_v12 = vsub.s32 0, %v9607_v11 }
 0x158   :  { %1091 = vmatpush1.bf16.msra.mxu0 %v7329_v14  ;;  %v9618_v14 = vsub.s32 1, %v9607_v11 }
 0x159   :  { %1092 = vmatprep.subr.bf16.mxu0 %v7338_v15  ;;  %v315_v15 = vrot.slane %v9615_v13, %v9610_v12 }
 0x15a   :  { %v319_v16 = vrot.slane %v9615_v13, %v9618_v14 }
 0x15c   :  { %1093 = vmatpush1.bf16.msra.mxu0 %v7337_v19 }
 0x15d   :  { %1094 = vmatprep.subr.bf16.mxu0 %v7346_v20 }
 0x160   :  { %1095 = vmatpush1.bf16.msra.mxu0 %v7345_v23 }
 0x161   :  { %1096 = vmatprep.subr.bf16.mxu0 %v7354_v24 }
 0x164   :  { %1097 = vmatpush1.bf16.msra.mxu0 %v7353_v27  ;;  %v8402_v27 = vld [vmem:[#allocation7 + $0x208] ss:$16 sps:$4 sm:$0xff]  }
 0x165   :  { %1098 = vmatprep.subr.bf16.mxu0 %v7362_v28 }
 0x168   :  { %1099 = vmatpush1.bf16.msra.mxu0 %v7361_v31  ;;  %v8410_v31 = vld [vmem:[#allocation7 + $0x22c] ss:$16 sps:$4 sm:$0xff]  }
 0x169   :  { %1100 = vmatprep.subr.bf16.mxu0 %v7370_v32  ;;  %v8405_v32 = vld [vmem:[#allocation7 + $0x220] ss:$16 sps:$4 sm:$0xff]  }
 0x16c   :  { %1101 = vmatpush1.bf16.msra.mxu0 %v7369_v35  ;;  %v8416_v35 = vld [vmem:[#allocation7 + $0x24c] ss:$16 sps:$4 sm:$0xff]  }
 0x16d   :  { %1102 = vmatprep.subr.bf16.mxu0 %v7378_v36  ;;  %v8411_v36 = vld [vmem:[#allocation7 + $0x240] ss:$16 sps:$4 sm:$0xff]  }
 0x170   :  { %1103 = vmatpush1.bf16.msra.mxu0 %v7377_v39  ;;  %v8422_v39 = vld [vmem:[#allocation7 + $0x26c] ss:$16 sps:$4 sm:$0xff]  }
 0x171   :  { %1104 = vmatprep.subr.bf16.mxu0 %v7386_v40  ;;  %v8417_v40 = vld [vmem:[#allocation7 + $0x260] ss:$16 sps:$4 sm:$0xff]  }
 0x174   :  { %1105 = vmatpush1.bf16.msra.mxu0 %v7385_v41  ;;  %v8420_v41 = vld [vmem:[#allocation7 + $0x268] ss:$16 sps:$4 sm:$0xff]  }
 0x175   :  { %2730 = vmatprep.subr.bf16.mxu0 %v8305_v42  ;;  %v8425_v42 = vld [vmem:[#allocation7 + $0x284] ss:$16 sps:$4 sm:$0xff]  }
 0x177   :  { %1107 = vmatmul.mubr.bf16.vlgmr.msra.gmra.mrb[8].mxu0 %v9599_v45  ;;  %v8341_v45 = vld [vmem:[#allocation7 + $0xc4] ss:$16 sps:$4 sm:$0xff]  }
 0x178   :  { %2731 = vmatpush1.bf16.msra.mxu0 %v8303_v43  ;;  %v8428_v43 = vld [vmem:[#allocation7 + $0x28c] ss:$16 sps:$4 sm:$0xff]  }
 0x179   :  { %2732 = vmatprep.subr.bf16.mxu0 %v8311_v44  ;;  %v8423_v44 = vld [vmem:[#allocation7 + $0x280] ss:$16 sps:$4 sm:$0xff]  }
 0x17c   :  { %2733 = vmatpush1.bf16.msra.mxu0 %v8309_v46  ;;  %v8426_v46 = vld [vmem:[#allocation7 + $0x288] ss:$16 sps:$4 sm:$0xff]  }
 0x17d   :  { %2734 = vmatprep.subr.bf16.mxu0 %v8317_v47  ;;  %v8431_v47 = vld [vmem:[#allocation7 + $0x2a4] ss:$16 sps:$4 sm:$0xff]  }
 0x180   :  { %2735 = vmatpush1.bf16.msra.mxu0 %v8315_v48  ;;  %v8434_v48 = vld [vmem:[#allocation7 + $0x2ac] ss:$16 sps:$4 sm:$0xff]  }
 0x181   :  { %2736 = vmatprep.subr.bf16.mxu0 %v8323_v49  ;;  %v8429_v49 = vld [vmem:[#allocation7 + $0x2a0] ss:$16 sps:$4 sm:$0xff]  }
 0x184   :  { %2737 = vmatpush1.bf16.msra.mxu0 %v8321_v50  ;;  %v8432_v50 = vld [vmem:[#allocation7 + $0x2a8] ss:$16 sps:$4 sm:$0xff]  }
 0x185   :  { %2738 = vmatprep.subr.bf16.mxu0 %v8329_v51  ;;  %v8437_v51 = vld [vmem:[#allocation7 + $0x2c4] ss:$16 sps:$4 sm:$0xff]  }
 0x188   :  { %2739 = vmatpush1.bf16.msra.mxu0 %v8327_v52  ;;  %v8440_v52 = vld [vmem:[#allocation7 + $0x2cc] ss:$16 sps:$4 sm:$0xff]  }
 0x189   :  { %2740 = vmatprep.subr.bf16.mxu0 %v8335_v53  ;;  %v8435_v53 = vld [vmem:[#allocation7 + $0x2c0] ss:$16 sps:$4 sm:$0xff]  }
 0x18c   :  { %2741 = vmatpush1.bf16.msra.mxu0 %v8333_v54  ;;  %v8438_v54 = vld [vmem:[#allocation7 + $0x2c8] ss:$16 sps:$4 sm:$0xff]  }
 0x18d   :  { %2742 = vmatprep.subr.bf16.mxu0 %v8341_v45  ;;  %v8443_v45 = vld [vmem:[#allocation7 + $0x2e4] ss:$16 sps:$4 sm:$0xff]  }
 0x190   :  { %2743 = vmatpush1.bf16.msra.mxu0 %v8339_v18  ;;  %v8446_v18 = vld [vmem:[#allocation7 + $0x2ec] ss:$16 sps:$4 sm:$0xff]  }
 0x191   :  { %2744 = vmatprep.subr.bf16.mxu0 %v8347_v55  ;;  %v8441_v55 = vld [vmem:[#allocation7 + $0x2e0] ss:$16 sps:$4 sm:$0xff]  }
 0x194   :  { %2745 = vmatpush1.bf16.msra.mxu0 %v8345_v56  ;;  %v8444_v56 = vld [vmem:[#allocation7 + $0x2e8] ss:$16 sps:$4 sm:$0xff]  }
 0x195   :  { %2746 = vmatprep.subr.bf16.mxu0 %v8353_v57  ;;  %v8449_v57 = vld [vmem:[#allocation7 + $0x304] ss:$16 sps:$4 sm:$0xff]  }
 0x198   :  { %2747 = vmatpush1.bf16.msra.mxu0 %v8351_v58  ;;  %v8452_v58 = vld [vmem:[#allocation7 + $0x30c] ss:$16 sps:$4 sm:$0xff]  }
 0x199   :  { %2748 = vmatprep.subr.bf16.mxu0 %v8359_v59  ;;  %v8447_v59 = vld [vmem:[#allocation7 + $0x300] ss:$16 sps:$4 sm:$0xff]  }
 0x19c   :  { %2749 = vmatpush1.bf16.msra.mxu0 %v8357_v60  ;;  %v8450_v60 = vld [vmem:[#allocation7 + $0x308] ss:$16 sps:$4 sm:$0xff]  }
 0x19d   :  { %2750 = vmatprep.subr.bf16.mxu0 %v8365_v61  ;;  %v8455_v61 = vld [vmem:[#allocation7 + $0x324] ss:$16 sps:$4 sm:$0xff]  }
 0x1a0   :  { %2751 = vmatpush1.bf16.msra.mxu0 %v8363_v62  ;;  %v8458_v62 = vld [vmem:[#allocation7 + $0x32c] ss:$16 sps:$4 sm:$0xff]  }
 0x1a1   :  { %2752 = vmatprep.subr.bf16.mxu0 %v8371_v63  ;;  %v8453_v63 = vld [vmem:[#allocation7 + $0x320] ss:$16 sps:$4 sm:$0xff]  }
 0x1a4   :  { %2753 = vmatpush1.bf16.msra.mxu0 %v8369_v0  ;;  %v8456_v0 = vld [vmem:[#allocation7 + $0x328] ss:$16 sps:$4 sm:$0xff]  }
 0x1a5   :  { %2754 = vmatprep.subr.bf16.mxu0 %v8377_v1  ;;  %v8461_v1 = vld [vmem:[#allocation7 + $0x344] ss:$16 sps:$4 sm:$0xff]  }
 0x1a8   :  { %2755 = vmatpush1.bf16.msra.mxu0 %v8375_v2  ;;  %v8464_v2 = vld [vmem:[#allocation7 + $0x34c] ss:$16 sps:$4 sm:$0xff]  }
 0x1a9   :  { %2756 = vmatprep.subr.bf16.mxu0 %v8383_v3  ;;  %v8459_v3 = vld [vmem:[#allocation7 + $0x340] ss:$16 sps:$4 sm:$0xff]  }
 0x1ac   :  { %2757 = vmatpush1.bf16.msra.mxu0 %v8381_v4  ;;  %v8462_v4 = vld [vmem:[#allocation7 + $0x348] ss:$16 sps:$4 sm:$0xff]  }
 0x1ad   :  { %2758 = vmatprep.subr.bf16.mxu0 %v8389_v5  ;;  %v8467_v5 = vld [vmem:[#allocation7 + $0x364] ss:$16 sps:$4 sm:$0xff]  }
 0x1b0   :  { %2759 = vmatpush1.bf16.msra.mxu0 %v8387_v6  ;;  %v8470_v6 = vld [vmem:[#allocation7 + $0x36c] ss:$16 sps:$4 sm:$0xff]  }
 0x1b1   :  { %2760 = vmatprep.subr.bf16.mxu0 %v8395_v7  ;;  %v8465_v7 = vld [vmem:[#allocation7 + $0x360] ss:$16 sps:$4 sm:$0xff]  }
 0x1b4   :  { %2761 = vmatpush1.bf16.msra.mxu0 %v8393_v8  ;;  %v8468_v8 = vld [vmem:[#allocation7 + $0x368] ss:$16 sps:$4 sm:$0xff]  }
 0x1b5   :  { %2771 = vmatprep.subr.bf16.mxu0 %v8401_v9  ;;  %v8473_v9 = vld [vmem:[#allocation7 + $0x384] ss:$16 sps:$4 sm:$0xff]  }
 0x1ca   :  { %v1026_v17 = vpop.f32.mrb[0].mxu0 }
 0x1cb   :  { %v1027_v19 = vadd.f32 %v1026_v17, %v315_v15  ;;  %v1028_v20 = vpop.f32.mrb[1].mxu0  ;;  %v8471_v15 = vld [vmem:[#allocation7 + $0x380] ss:$16 sps:$4 sm:$0xff]   ;;  %v8479_v17 = vld [vmem:[#allocation7 + $0x3a4] ss:$16 sps:$4 sm:$0xff]  }
 0x1cc   :  { %v1029_v21 = vadd.f32 %v1028_v20, %v319_v16  ;;  %v1030_v22 = vpop.f32.mrb[2].mxu0  ;;  %v8474_v16 = vld [vmem:[#allocation7 + $0x388] ss:$16 sps:$4 sm:$0xff]   ;;  %v9625_v20 = vsub.s32 2, %v9607_v11 }
 0x1cd   :  { %v1156_v23 = vmax.f32 %v1027_v19, 0.0  ;;  %v1031_v24 = vpop.f32.mrb[3].mxu0  ;;  %v8482_v19 = vld [vmem:[#allocation7 + $0x3ac] ss:$16 sps:$4 sm:$0xff]   ;;  %v8480_v22 = vld [vmem:[#allocation7 + $0x3a8] ss:$16 sps:$4 sm:$0xff]  }
 0x1ce   :  { %v1157_v25 = vmax.f32 %v1029_v21, 0.0  ;;  %v8477_v21 = vld [vmem:[#allocation7 + $0x3a0] ss:$16 sps:$4 sm:$0xff]   ;;  %v9630_v24 = vpop.f32.mrb[0].mxu1 }
 0x1cf   :  { %v1164_v29 = vpack.c.bf16 %v1156_v23, %v1156_v23  ;;  %v9628_v23 = vsub.s32 3, %v9607_v11 }
 0x1d0   :  { %v1165_v28 = vpack.c.bf16 %v1157_v25, %v1157_v25  ;;  %v8485_v25 = vld [vmem:[#allocation7 + $0x3c4] ss:$16 sps:$4 sm:$0xff]  }
 0x1d2   :  { %2762 = vmatprep.mubr.bf16.mxu0 %v1165_v28  ;;  %2926 = vmatprep.mubr.bf16.mxu1 %v1165_v28 }
 0x1d3   :  { %2763 = vmatmul.mubr.bf16.vlgmr.msra.gmra.mrb[12].mxu0 %v1164_v29  ;;  %2927 = vmatmul.mubr.bf16.vlgmr.msra.gmra.mrb[4].mxu1 %v1164_v29  ;;  %v323_v29 = vrot.slane %v9615_v13, %v9625_v20 }
 0x1d4   :  { %2772 = vmatpush1.bf16.msra.mxu0 %v8399_v26  ;;  %2936 = vmatpush1.bf16.msra.mxu1 %v8402_v27  ;;  %v8488_v26 = vld [vmem:[#allocation7 + $0x3cc] ss:$16 sps:$4 sm:$0xff]   ;;  %v9632_v27 = vpop.f32.mrb[1].mxu1 }
 0x1d5   :  { %2773 = vmatprep.subr.bf16.mxu0 %v8407_v30  ;;  %2937 = vmatprep.subr.bf16.mxu1 %v8410_v31  ;;  %v1153_v28 = vpop.f32.mrb[2].mxu1  ;;  %v8483_v31 = vld [vmem:[#allocation7 + $0x3c0] ss:$16 sps:$4 sm:$0xff]  }
 0x1d6   :  { %v1154_v30 = vpop.f32.mrb[3].mxu1  ;;  %v8551_v28 = vld [vmem:[#allocation7 + $0x524] ss:$16 sps:$4 sm:$0xff]  }
 0x1d7   :  { %v8549_v30 = vld [vmem:[#allocation7 + $0x520] ss:$16 sps:$4 sm:$0xff]  }
 0x1d8   :  { %2774 = vmatpush1.bf16.msra.mxu0 %v8405_v32  ;;  %2938 = vmatpush1.bf16.msra.mxu1 %v8408_v33  ;;  %v8486_v32 = vld [vmem:[#allocation7 + $0x3c8] ss:$16 sps:$4 sm:$0xff]   ;;  %v327_v33 = vrot.slane %v9615_v13, %v9628_v23 }
 0x1d9   :  { %2775 = vmatprep.subr.bf16.mxu0 %v8413_v34  ;;  %2939 = vmatprep.subr.bf16.mxu1 %v8416_v35  ;;  %v8491_v34 = vld [vmem:[#allocation7 + $0x3e4] ss:$16 sps:$4 sm:$0xff]   ;;  %v8494_v35 = vld [vmem:[#allocation7 + $0x3ec] ss:$16 sps:$4 sm:$0xff]  }
 0x1dc   :  { %2776 = vmatpush1.bf16.msra.mxu0 %v8411_v36  ;;  %2940 = vmatpush1.bf16.msra.mxu1 %v8414_v37 }
 0x1dd   :  { %2777 = vmatprep.subr.bf16.mxu0 %v8419_v38  ;;  %2941 = vmatprep.subr.bf16.mxu1 %v8422_v39 }
 0x1e0   :  { %2778 = vmatpush1.bf16.msra.mxu0 %v8417_v40  ;;  %2942 = vmatpush1.bf16.msra.mxu1 %v8420_v41  ;;  %v8489_v41 = vld [vmem:[#allocation7 + $0x3e0] ss:$16 sps:$4 sm:$0xff]  }
 0x1e1   :  { %2779 = vmatprep.subr.bf16.mxu0 %v8425_v42  ;;  %2943 = vmatprep.subr.bf16.mxu1 %v8428_v43  ;;  %v8492_v42 = vld [vmem:[#allocation7 + $0x3e8] ss:$16 sps:$4 sm:$0xff]  }
 0x1e4   :  { %2780 = vmatpush1.bf16.msra.mxu0 %v8423_v44  ;;  %2944 = vmatpush1.bf16.msra.mxu1 %v8426_v46  ;;  %v8497_v46 = vld [vmem:[#allocation7 + $0x404] ss:$16 sps:$4 sm:$0xff]  }
 0x1e5   :  { %2781 = vmatprep.subr.bf16.mxu0 %v8431_v47  ;;  %2945 = vmatprep.subr.bf16.mxu1 %v8434_v48  ;;  %v8500_v47 = vld [vmem:[#allocation7 + $0x40c] ss:$16 sps:$4 sm:$0xff]  }
 0x1e8   :  { %2782 = vmatpush1.bf16.msra.mxu0 %v8429_v49  ;;  %2946 = vmatpush1.bf16.msra.mxu1 %v8432_v50  ;;  %v8495_v50 = vld [vmem:[#allocation7 + $0x400] ss:$16 sps:$4 sm:$0xff]  }
 0x1e9   :  { %2783 = vmatprep.subr.bf16.mxu0 %v8437_v51  ;;  %2947 = vmatprep.subr.bf16.mxu1 %v8440_v52  ;;  %v8498_v51 = vld [vmem:[#allocation7 + $0x408] ss:$16 sps:$4 sm:$0xff]  }
 0x1ec   :  { %2784 = vmatpush1.bf16.msra.mxu0 %v8435_v53  ;;  %2948 = vmatpush1.bf16.msra.mxu1 %v8438_v54  ;;  %v8503_v53 = vld [vmem:[#allocation7 + $0x424] ss:$16 sps:$4 sm:$0xff]   ;;  %v8506_v54 = vld [vmem:[#allocation7 + $0x42c] ss:$16 sps:$4 sm:$0xff]  }
 0x1ed   :  { %2785 = vmatprep.subr.bf16.mxu0 %v8443_v45  ;;  %2949 = vmatprep.subr.bf16.mxu1 %v8446_v18  ;;  %v8501_v45 = vld [vmem:[#allocation7 + $0x420] ss:$16 sps:$4 sm:$0xff]   ;;  %v8504_v18 = vld [vmem:[#allocation7 + $0x428] ss:$16 sps:$4 sm:$0xff]  }
 0x1f0   :  { %2786 = vmatpush1.bf16.msra.mxu0 %v8441_v55  ;;  %2950 = vmatpush1.bf16.msra.mxu1 %v8444_v56  ;;  %v8509_v55 = vld [vmem:[#allocation7 + $0x444] ss:$16 sps:$4 sm:$0xff]   ;;  %v8512_v56 = vld [vmem:[#allocation7 + $0x44c] ss:$16 sps:$4 sm:$0xff]  }
 0x1f1   :  { %2787 = vmatprep.subr.bf16.mxu0 %v8449_v57  ;;  %2951 = vmatprep.subr.bf16.mxu1 %v8452_v58  ;;  %v8507_v57 = vld [vmem:[#allocation7 + $0x440] ss:$16 sps:$4 sm:$0xff]   ;;  %v8510_v58 = vld [vmem:[#allocation7 + $0x448] ss:$16 sps:$4 sm:$0xff]  }
 0x1f4   :  { %2788 = vmatpush1.bf16.msra.mxu0 %v8447_v59  ;;  %2952 = vmatpush1.bf16.msra.mxu1 %v8450_v60  ;;  %v8515_v59 = vld [vmem:[#allocation7 + $0x464] ss:$16 sps:$4 sm:$0xff]   ;;  %v8518_v60 = vld [vmem:[#allocation7 + $0x46c] ss:$16 sps:$4 sm:$0xff]  }
 0x1f5   :  { %2789 = vmatprep.subr.bf16.mxu0 %v8455_v61  ;;  %2953 = vmatprep.subr.bf16.mxu1 %v8458_v62  ;;  %v8513_v61 = vld [vmem:[#allocation7 + $0x460] ss:$16 sps:$4 sm:$0xff]   ;;  %v8516_v62 = vld [vmem:[#allocation7 + $0x468] ss:$16 sps:$4 sm:$0xff]  }
 0x1f8   :  { %2790 = vmatpush1.bf16.msra.mxu0 %v8453_v63  ;;  %2954 = vmatpush1.bf16.msra.mxu1 %v8456_v0  ;;  %v8521_v63 = vld [vmem:[#allocation7 + $0x484] ss:$16 sps:$4 sm:$0xff]   ;;  %v8524_v0 = vld [vmem:[#allocation7 + $0x48c] ss:$16 sps:$4 sm:$0xff]  }
 0x1f9   :  { %2791 = vmatprep.subr.bf16.mxu0 %v8461_v1  ;;  %2955 = vmatprep.subr.bf16.mxu1 %v8464_v2  ;;  %v8519_v1 = vld [vmem:[#allocation7 + $0x480] ss:$16 sps:$4 sm:$0xff]   ;;  %v8522_v2 = vld [vmem:[#allocation7 + $0x488] ss:$16 sps:$4 sm:$0xff]  }
 0x1fc   :  { %2792 = vmatpush1.bf16.msra.mxu0 %v8459_v3  ;;  %2956 = vmatpush1.bf16.msra.mxu1 %v8462_v4  ;;  %v8527_v3 = vld [vmem:[#allocation7 + $0x4a4] ss:$16 sps:$4 sm:$0xff]   ;;  %v8530_v4 = vld [vmem:[#allocation7 + $0x4ac] ss:$16 sps:$4 sm:$0xff]  }
 0x1fd   :  { %2793 = vmatprep.subr.bf16.mxu0 %v8467_v5  ;;  %2957 = vmatprep.subr.bf16.mxu1 %v8470_v6  ;;  %v8525_v5 = vld [vmem:[#allocation7 + $0x4a0] ss:$16 sps:$4 sm:$0xff]   ;;  %v8528_v6 = vld [vmem:[#allocation7 + $0x4a8] ss:$16 sps:$4 sm:$0xff]  }
 0x200   :  { %2794 = vmatpush1.bf16.msra.mxu0 %v8465_v7  ;;  %2958 = vmatpush1.bf16.msra.mxu1 %v8468_v8  ;;  %v8533_v7 = vld [vmem:[#allocation7 + $0x4c4] ss:$16 sps:$4 sm:$0xff]   ;;  %v8536_v8 = vld [vmem:[#allocation7 + $0x4cc] ss:$16 sps:$4 sm:$0xff]  }
 0x201   :  { %2795 = vmatprep.subr.bf16.mxu0 %v8473_v9  ;;  %2959 = vmatprep.subr.bf16.mxu1 %v8476_v10  ;;  %v8531_v9 = vld [vmem:[#allocation7 + $0x4c0] ss:$16 sps:$4 sm:$0xff]   ;;  %v8534_v10 = vld [vmem:[#allocation7 + $0x4c8] ss:$16 sps:$4 sm:$0xff]  }
 0x204   :  { %2796 = vmatpush1.bf16.msra.mxu0 %v8471_v15  ;;  %2960 = vmatpush1.bf16.msra.mxu1 %v8474_v16  ;;  %v8539_v15 = vld [vmem:[#allocation7 + $0x4e4] ss:$16 sps:$4 sm:$0xff]   ;;  %v8542_v16 = vld [vmem:[#allocation7 + $0x4ec] ss:$16 sps:$4 sm:$0xff]  }
 0x205   :  { %2797 = vmatprep.subr.bf16.mxu0 %v8479_v17  ;;  %2961 = vmatprep.subr.bf16.mxu1 %v8482_v19  ;;  %v8537_v17 = vld [vmem:[#allocation7 + $0x4e0] ss:$16 sps:$4 sm:$0xff]   ;;  %v8540_v19 = vld [vmem:[#allocation7 + $0x4e8] ss:$16 sps:$4 sm:$0xff]  }
 0x208   :  { %2798 = vmatpush1.bf16.msra.mxu0 %v8477_v21  ;;  %2962 = vmatpush1.bf16.msra.mxu1 %v8480_v22  ;;  %v8545_v21 = vld [vmem:[#allocation7 + $0x504] ss:$16 sps:$4 sm:$0xff]   ;;  %v8548_v22 = vld [vmem:[#allocation7 + $0x50c] ss:$16 sps:$4 sm:$0xff]  }
 0x209   :  { %2799 = vmatprep.subr.bf16.mxu0 %v8485_v25  ;;  %2963 = vmatprep.subr.bf16.mxu1 %v8488_v26  ;;  %v8543_v25 = vld [vmem:[#allocation7 + $0x500] ss:$16 sps:$4 sm:$0xff]   ;;  %v8546_v26 = vld [vmem:[#allocation7 + $0x508] ss:$16 sps:$4 sm:$0xff]  }
 0x20a   :  { %v1067_v36 = vpop.f32.mrb[4].mxu0 }
 0x20b   :  { %v1068_v37 = vadd.f32 %v1067_v36, %v323_v29  ;;  %v1069_v38 = vpop.f32.mrb[5].mxu0  ;;  %v8554_v29 = vld [vmem:[#allocation7 + $0x52c] ss:$16 sps:$4 sm:$0xff]   ;;  %v8563_v36 = vld [vmem:[#allocation7 + $0x564] ss:$16 sps:$4 sm:$0xff]  }
 0x20c   :  { %v1070_v39 = vadd.f32 %v1069_v38, %v327_v33  ;;  %2800 = vmatpush1.bf16.msra.mxu0 %v8483_v31  ;;  %2964 = vmatpush1.bf16.msra.mxu1 %v8486_v32  ;;  %v1071_v40 = vpop.f32.mrb[6].mxu0  ;;  %v8552_v31 = vld [vmem:[#allocation7 + $0x528] ss:$16 sps:$4 sm:$0xff]   ;;  %v8557_v32 = vld [vmem:[#allocation7 + $0x544] ss:$16 sps:$4 sm:$0xff]  }
 0x20d   :  { %v1158_v43 = vmax.f32 %v1068_v37, 0.0  ;;  %v1072_v44 = vpop.f32.mrb[7].mxu0  ;;  %2801 = vmatprep.subr.bf16.mxu0 %v8491_v34  ;;  %2965 = vmatprep.subr.bf16.mxu1 %v8494_v35  ;;  %v8560_v33 = vld [vmem:[#allocation7 + $0x54c] ss:$16 sps:$4 sm:$0xff]   ;;  %v8555_v34 = vld [vmem:[#allocation7 + $0x540] ss:$16 sps:$4 sm:$0xff]  }
 0x20e   :  { %v1159_v48 = vmax.f32 %v1070_v39, 0.0  ;;  %v8558_v35 = vld [vmem:[#allocation7 + $0x548] ss:$16 sps:$4 sm:$0xff]   ;;  %v8566_v37 = vld [vmem:[#allocation7 + $0x56c] ss:$16 sps:$4 sm:$0xff]  }
 0x20f   :  { %v1166_v52 = vpack.c.bf16 %v1158_v43, %v1158_v43  ;;  %v8561_v38 = vld [vmem:[#allocation7 + $0x560] ss:$16 sps:$4 sm:$0xff]   ;;  %v8564_v39 = vld [vmem:[#allocation7 + $0x568] ss:$16 sps:$4 sm:$0xff]   ;;  %v8569_v40 = vld [vmem:[#allocation7 + $0x584] ss:$16 sps:$4 sm:$0xff]  }
 0x210   :  { %v1167_v49 = vpack.c.bf16 %v1159_v48, %v1159_v48  ;;  %2802 = vmatpush1.bf16.msra.mxu0 %v8489_v41  ;;  %2966 = vmatpush1.bf16.msra.mxu1 %v8492_v42  ;;  %v8572_v41 = vld [vmem:[#allocation7 + $0x58c] ss:$16 sps:$4 sm:$0xff]   ;;  %v8567_v42 = vld [vmem:[#allocation7 + $0x580] ss:$16 sps:$4 sm:$0xff]   ;;  %v8570_v43 = vld [vmem:[#allocation7 + $0x588] ss:$16 sps:$4 sm:$0xff]  }
 0x211   :  { %2812 = vmatprep.subr.bf16.mxu0 %v8497_v46  ;;  %2976 = vmatprep.subr.bf16.mxu1 %v8500_v47  ;;  %v8575_v44 = vld [vmem:[#allocation7 + $0x5a4] ss:$16 sps:$4 sm:$0xff]   ;;  %v8578_v46 = vld [vmem:[#allocation7 + $0x5ac] ss:$16 sps:$4 sm:$0xff]   ;;  %v342_v47 = vsub.s32 7, %v9607_v11  ;;  %v330_v48 = vsub.s32 4, %v9607_v11 }
 0x212   :  { %2803 = vmatprep.mubr.bf16.mxu0 %v1167_v49  ;;  %2967 = vmatprep.mubr.bf16.mxu1 %v1167_v49  ;;  %v8573_v49 = vld [vmem:[#allocation7 + $0x5a0] ss:$16 sps:$4 sm:$0xff]  }
 0x213   :  { %2804 = vmatmul.mubr.bf16.vlgmr.msra.gmra.mrb[12].mxu0 %v1166_v52  ;;  %2968 = vmatmul.mubr.bf16.vlgmr.msra.gmra.mrb[4].mxu1 %v1166_v52  ;;  %v8581_v52 = vld [vmem:[#allocation7 + $0x5c4] ss:$16 sps:$4 sm:$0xff]  }
 0x214   :  { %2813 = vmatpush1.bf16.msra.mxu0 %v8495_v50  ;;  %2977 = vmatpush1.bf16.msra.mxu1 %v8498_v51  ;;  %v8576_v50 = vld [vmem:[#allocation7 + $0x5a8] ss:$16 sps:$4 sm:$0xff]   ;;  %v334_v51 = vsub.s32 5, %v9607_v11 }
 0x215   :  { %2814 = vmatprep.subr.bf16.mxu0 %v8503_v53  ;;  %2978 = vmatprep.subr.bf16.mxu1 %v8506_v54  ;;  %v8584_v53 = vld [vmem:[#allocation7 + $0x5cc] ss:$16 sps:$4 sm:$0xff]   ;;  %v343_v54 = vrot.slane %v9615_v13, %v342_v47 }
 0x218   :  { %2815 = vmatpush1.bf16.msra.mxu0 %v8501_v45  ;;  %2979 = vmatpush1.bf16.msra.mxu1 %v8504_v18  ;;  %v331_v45 = vrot.slane %v9615_v13, %v330_v48  ;;  %v8579_v18 = vld [vmem:[#allocation7 + $0x5c0] ss:$16 sps:$4 sm:$0xff]  }
 0x219   :  { %2816 = vmatprep.subr.bf16.mxu0 %v8509_v55  ;;  %2980 = vmatprep.subr.bf16.mxu1 %v8512_v56  ;;  %v8582_v55 = vld [vmem:[#allocation7 + $0x5c8] ss:$16 sps:$4 sm:$0xff]   ;;  %v335_v56 = vrot.slane %v9615_v13, %v334_v51 }
 0x21c   :  { %2817 = vmatpush1.bf16.msra.mxu0 %v8507_v57  ;;  %2981 = vmatpush1.bf16.msra.mxu1 %v8510_v58  ;;  %v8587_v57 = vld [vmem:[#allocation7 + $0x5e4] ss:$16 sps:$4 sm:$0xff]   ;;  %v8590_v58 = vld [vmem:[#allocation7 + $0x5ec] ss:$16 sps:$4 sm:$0xff]  }
 0x21d   :  { %2818 = vmatprep.subr.bf16.mxu0 %v8515_v59  ;;  %2982 = vmatprep.subr.bf16.mxu1 %v8518_v60  ;;  %v1152_v60 = vadd.f32 %v9632_v27, %v343_v54  ;;  %v8591_v27 = vld [vmem:[#allocation7 + $0x600] ss:$16 sps:$4 sm:$0xff]   ;;  %v8641_v54 = vld [vmem:[#allocation7 + $0x704] ss:$16 sps:$4 sm:$0xff]  }
 0x220   :  { %2819 = vmatpush1.bf16.msra.mxu0 %v8513_v61  ;;  %2983 = vmatpush1.bf16.msra.mxu1 %v8516_v62 }
 0x221   :  { %2820 = vmatprep.subr.bf16.mxu0 %v8521_v63  ;;  %2984 = vmatprep.subr.bf16.mxu1 %v8524_v0 }
 0x224   :  { %2821 = vmatpush1.bf16.msra.mxu0 %v8519_v1  ;;  %2985 = vmatpush1.bf16.msra.mxu1 %v8522_v2  ;;  %v8585_v1 = vld [vmem:[#allocation7 + $0x5e0] ss:$16 sps:$4 sm:$0xff]   ;;  %v8588_v2 = vld [vmem:[#allocation7 + $0x5e8] ss:$16 sps:$4 sm:$0xff]  }
 0x225   :  { %2822 = vmatprep.subr.bf16.mxu0 %v8527_v3  ;;  %2986 = vmatprep.subr.bf16.mxu1 %v8530_v4 }
 0x228   :  { %2823 = vmatpush1.bf16.msra.mxu0 %v8525_v5  ;;  %2987 = vmatpush1.bf16.msra.mxu1 %v8528_v6  ;;  %v8593_v5 = vld [vmem:[#allocation7 + $0x604] ss:$16 sps:$4 sm:$0xff]   ;;  %v8596_v6 = vld [vmem:[#allocation7 + $0x60c] ss:$16 sps:$4 sm:$0xff]  }
 0x229   :  { %2824 = vmatprep.subr.bf16.mxu0 %v8533_v7  ;;  %2988 = vmatprep.subr.bf16.mxu1 %v8536_v8  ;;  %v1163_v8 = vmax.f32 %v1152_v60, 0.0  ;;  %v8653_v60 = vld [vmem:[#allocation7 + $0x744] ss:$16 sps:$4 sm:$0xff]  }
 0x22c   :  { %2825 = vmatpush1.bf16.msra.mxu0 %v8531_v9  ;;  %2989 = vmatpush1.bf16.msra.mxu1 %v8534_v10  ;;  %v8594_v10 = vld [vmem:[#allocation7 + $0x608] ss:$16 sps:$4 sm:$0xff]  }
 0x22d   :  { %2826 = vmatprep.subr.bf16.mxu0 %v8539_v15  ;;  %2990 = vmatprep.subr.bf16.mxu1 %v8542_v16  ;;  %v8599_v16 = vld [vmem:[#allocation7 + $0x624] ss:$16 sps:$4 sm:$0xff]  }
 0x230   :  { %2827 = vmatpush1.bf16.msra.mxu0 %v8537_v17  ;;  %2991 = vmatpush1.bf16.msra.mxu1 %v8540_v19  ;;  %v8602_v17 = vld [vmem:[#allocation7 + $0x62c] ss:$16 sps:$4 sm:$0xff]   ;;  %v1171_v19 = vpack.c.bf16 %v1163_v8, %v1163_v8  ;;  %v338_v8 = vsub.s32 6, %v9607_v11  ;;  %v6424_v11 = vld [vmem:[%s9789_s16] sm:$0x3] }
 0x231   :  { %2828 = vmatprep.subr.bf16.mxu0 %v8545_v21  ;;  %2992 = vmatprep.subr.bf16.mxu1 %v8548_v22  ;;  %v8597_v21 = vld [vmem:[#allocation7 + $0x620] ss:$16 sps:$4 sm:$0xff]   ;;  %v8600_v22 = vld [vmem:[#allocation7 + $0x628] ss:$16 sps:$4 sm:$0xff]  }
 0x234   :  { %2829 = vmatpush1.bf16.msra.mxu0 %v8543_v25  ;;  %2993 = vmatpush1.bf16.msra.mxu1 %v8546_v26  ;;  %v8605_v25 = vld [vmem:[#allocation7 + $0x644] ss:$16 sps:$4 sm:$0xff]   ;;  %v8608_v26 = vld [vmem:[#allocation7 + $0x64c] ss:$16 sps:$4 sm:$0xff]  }
 0x235   :  { %2830 = vmatprep.subr.bf16.mxu0 %v8551_v28  ;;  %2994 = vmatprep.subr.bf16.mxu1 %v8554_v29  ;;  %v8603_v28 = vld [vmem:[#allocation7 + $0x640] ss:$16 sps:$4 sm:$0xff]   ;;  %v8606_v29 = vld [vmem:[#allocation7 + $0x648] ss:$16 sps:$4 sm:$0xff]  }
 0x238   :  { %2831 = vmatpush1.bf16.msra.mxu0 %v8549_v30  ;;  %2995 = vmatpush1.bf16.msra.mxu1 %v8552_v31  ;;  %v8611_v30 = vld [vmem:[#allocation7 + $0x664] ss:$16 sps:$4 sm:$0xff]   ;;  %v8614_v31 = vld [vmem:[#allocation7 + $0x66c] ss:$16 sps:$4 sm:$0xff]  }
 0x239   :  { %2832 = vmatprep.subr.bf16.mxu0 %v8557_v32  ;;  %2996 = vmatprep.subr.bf16.mxu1 %v8560_v33  ;;  %v8609_v32 = vld [vmem:[#allocation7 + $0x660] ss:$16 sps:$4 sm:$0xff]   ;;  %v8612_v33 = vld [vmem:[#allocation7 + $0x668] ss:$16 sps:$4 sm:$0xff]  }
 0x23c   :  { %2833 = vmatpush1.bf16.msra.mxu0 %v8555_v34  ;;  %2997 = vmatpush1.bf16.msra.mxu1 %v8558_v35  ;;  %v8617_v34 = vld [vmem:[#allocation7 + $0x684] ss:$16 sps:$4 sm:$0xff]   ;;  %v8620_v35 = vld [vmem:[#allocation7 + $0x68c] ss:$16 sps:$4 sm:$0xff]  }
 0x23d   :  { %2834 = vmatprep.subr.bf16.mxu0 %v8563_v36  ;;  %2998 = vmatprep.subr.bf16.mxu1 %v8566_v37  ;;  %v8615_v36 = vld [vmem:[#allocation7 + $0x680] ss:$16 sps:$4 sm:$0xff]   ;;  %v8618_v37 = vld [vmem:[#allocation7 + $0x688] ss:$16 sps:$4 sm:$0xff]  }
 0x240   :  { %2835 = vmatpush1.bf16.msra.mxu0 %v8561_v38  ;;  %2999 = vmatpush1.bf16.msra.mxu1 %v8564_v39  ;;  %v8623_v38 = vld [vmem:[#allocation7 + $0x6a4] ss:$16 sps:$4 sm:$0xff]   ;;  %v8626_v39 = vld [vmem:[#allocation7 + $0x6ac] ss:$16 sps:$4 sm:$0xff]  }
 0x241   :  { %2836 = vmatprep.subr.bf16.mxu0 %v8569_v40  ;;  %3000 = vmatprep.subr.bf16.mxu1 %v8572_v41  ;;  %v8621_v40 = vld [vmem:[#allocation7 + $0x6a0] ss:$16 sps:$4 sm:$0xff]   ;;  %v8624_v41 = vld [vmem:[#allocation7 + $0x6a8] ss:$16 sps:$4 sm:$0xff]  }
 0x244   :  { %2837 = vmatpush1.bf16.msra.mxu0 %v8567_v42  ;;  %3001 = vmatpush1.bf16.msra.mxu1 %v8570_v43  ;;  %v8629_v42 = vld [vmem:[#allocation7 + $0x6c4] ss:$16 sps:$4 sm:$0xff]   ;;  %v8632_v43 = vld [vmem:[#allocation7 + $0x6cc] ss:$16 sps:$4 sm:$0xff]  }
 0x245   :  { %2838 = vmatprep.subr.bf16.mxu0 %v8575_v44  ;;  %3002 = vmatprep.subr.bf16.mxu1 %v8578_v46  ;;  %v8627_v44 = vld [vmem:[#allocation7 + $0x6c0] ss:$16 sps:$4 sm:$0xff]   ;;  %v8630_v46 = vld [vmem:[#allocation7 + $0x6c8] ss:$16 sps:$4 sm:$0xff]  }
 0x248   :  { %2839 = vmatpush1.bf16.msra.mxu0 %v8573_v49  ;;  %3003 = vmatpush1.bf16.msra.mxu1 %v8576_v50  ;;  %v8635_v49 = vld [vmem:[#allocation7 + $0x6e4] ss:$16 sps:$4 sm:$0xff]   ;;  %v8638_v50 = vld [vmem:[#allocation7 + $0x6ec] ss:$16 sps:$4 sm:$0xff]  }
 0x249   :  { %2840 = vmatprep.subr.bf16.mxu0 %v8581_v52  ;;  %3004 = vmatprep.subr.bf16.mxu1 %v8584_v53  ;;  %v8633_v52 = vld [vmem:[#allocation7 + $0x6e0] ss:$16 sps:$4 sm:$0xff]   ;;  %v8636_v53 = vld [vmem:[#allocation7 + $0x6e8] ss:$16 sps:$4 sm:$0xff]  }
 0x24a   :  { %v1108_v59 = vpop.f32.mrb[8].mxu0 }
 0x24b   :  { %v1109_v61 = vadd.f32 %v1108_v59, %v331_v45  ;;  %v1110_v62 = vpop.f32.mrb[9].mxu0  ;;  %v8644_v45 = vld [vmem:[#allocation7 + $0x70c] ss:$16 sps:$4 sm:$0xff]   ;;  %v8648_v59 = vld [vmem:[#allocation7 + $0x728] ss:$16 sps:$4 sm:$0xff]  }
 0x24c   :  { %v1111_v63 = vadd.f32 %v1110_v62, %v335_v56  ;;  %2841 = vmatpush1.bf16.msra.mxu0 %v8579_v18  ;;  %3005 = vmatpush1.bf16.msra.mxu1 %v8582_v55  ;;  %v1112_v0 = vpop.f32.mrb[10].mxu0  ;;  %v8639_v18 = vld [vmem:[#allocation7 + $0x700] ss:$16 sps:$4 sm:$0xff]   ;;  %v8642_v55 = vld [vmem:[#allocation7 + $0x708] ss:$16 sps:$4 sm:$0xff]  }
 0x24d   :  { %v1160_v3 = vmax.f32 %v1109_v61, 0.0  ;;  %v1113_v4 = vpop.f32.mrb[11].mxu0  ;;  %2842 = vmatprep.subr.bf16.mxu0 %v8587_v57  ;;  %3006 = vmatprep.subr.bf16.mxu1 %v8590_v58  ;;  %v8647_v56 = vld [vmem:[#allocation7 + $0x724] ss:$16 sps:$4 sm:$0xff]   ;;  %v8650_v57 = vld [vmem:[#allocation7 + $0x72c] ss:$16 sps:$4 sm:$0xff]  }
 0x24e   :  { %v1161_v7 = vmax.f32 %v1111_v63, 0.0  ;;  %v8645_v58 = vld [vmem:[#allocation7 + $0x720] ss:$16 sps:$4 sm:$0xff]   ;;  %v8656_v61 = vld [vmem:[#allocation7 + $0x74c] ss:$16 sps:$4 sm:$0xff]  }
 0x24f   :  { %v1168_v15 = vpack.c.bf16 %v1160_v3, %v1160_v3  ;;  %v8651_v62 = vld [vmem:[#allocation7 + $0x740] ss:$16 sps:$4 sm:$0xff]   ;;  %v8654_v63 = vld [vmem:[#allocation7 + $0x748] ss:$16 sps:$4 sm:$0xff]   ;;  %v8659_v0 = vld [vmem:[#allocation7 + $0x764] ss:$16 sps:$4 sm:$0xff]  }
 0x250   :  { %v1169_v9 = vpack.c.bf16 %v1161_v7, %v1161_v7  ;;  %2843 = vmatpush1.bf16.msra.mxu0 %v8585_v1  ;;  %3007 = vmatpush1.bf16.msra.mxu1 %v8588_v2  ;;  %v8662_v1 = vld [vmem:[#allocation7 + $0x76c] ss:$16 sps:$4 sm:$0xff]   ;;  %v8657_v2 = vld [vmem:[#allocation7 + $0x760] ss:$16 sps:$4 sm:$0xff]   ;;  %v8660_v3 = vld [vmem:[#allocation7 + $0x768] ss:$16 sps:$4 sm:$0xff]  }
 0x251   :  { %2853 = vmatprep.subr.bf16.mxu0 %v8593_v5  ;;  %3017 = vmatprep.subr.bf16.mxu1 %v8596_v6  ;;  %v8665_v4 = vld [vmem:[#allocation7 + $0x784] ss:$16 sps:$4 sm:$0xff]   ;;  %v8668_v5 = vld [vmem:[#allocation7 + $0x78c] ss:$16 sps:$4 sm:$0xff]   ;;  %v8663_v6 = vld [vmem:[#allocation7 + $0x780] ss:$16 sps:$4 sm:$0xff]  }
 0x252   :  { %2844 = vmatprep.mubr.bf16.mxu0 %v1169_v9  ;;  %3008 = vmatprep.mubr.bf16.mxu1 %v1169_v9  ;;  %v8666_v7 = vld [vmem:[#allocation7 + $0x788] ss:$16 sps:$4 sm:$0xff]   ;;  %v8671_v9 = vld [vmem:[#allocation7 + $0x7a4] ss:$16 sps:$4 sm:$0xff]  }
 0x253   :  { %2845 = vmatmul.mubr.bf16.vlgmr.msra.gmra.mrb[12].mxu0 %v1168_v15  ;;  %3009 = vmatmul.mubr.bf16.vlgmr.msra.gmra.mrb[4].mxu1 %v1168_v15  ;;  %v8672_v15 = vld [vmem:[#allocation7 + $0x7a8] ss:$16 sps:$4 sm:$0xff]  }
 0x254   :  { %2854 = vmatpush1.bf16.msra.mxu0 %v8591_v27  ;;  %3018 = vmatpush1.bf16.msra.mxu1 %v8594_v10  ;;  %v8674_v27 = vld [vmem:[#allocation7 + $0x7ac] ss:$16 sps:$4 sm:$0xff]   ;;  %v8669_v10 = vld [vmem:[#allocation7 + $0x7a0] ss:$16 sps:$4 sm:$0xff]  }
 0x255   :  { %2855 = vmatprep.subr.bf16.mxu0 %v8599_v16  ;;  %3019 = vmatprep.subr.bf16.mxu1 %v8602_v17  ;;  %v339_v16 = vrot.slane %v9615_v13, %v338_v8  ;;  %v8677_v17 = vld [vmem:[#allocation7 + $0x7c4] ss:$16 sps:$4 sm:$0xff]  }
 0x256   :  { %2885 = vmatprep.mubr.bf16.mxu0 %v1171_v19  ;;  %3049 = vmatprep.mubr.bf16.mxu1 %v1171_v19  ;;  %v8680_v19 = vld [vmem:[#allocation7 + $0x7cc] ss:$16 sps:$4 sm:$0xff]  }
 0x257   :  { %v8689_v13 = vld [vmem:[#allocation8 + $0x4] ss:$8 sps:$4 sm:$0xff]  }
 0x258   :  { %2856 = vmatpush1.bf16.msra.mxu0 %v8597_v21  ;;  %3020 = vmatpush1.bf16.msra.mxu1 %v8600_v22  ;;  %v8675_v21 = vld [vmem:[#allocation7 + $0x7c0] ss:$16 sps:$4 sm:$0xff]   ;;  %v8678_v22 = vld [vmem:[#allocation7 + $0x7c8] ss:$16 sps:$4 sm:$0xff]  }
 0x259   :  { %2857 = vmatprep.subr.bf16.mxu0 %v8605_v25  ;;  %3021 = vmatprep.subr.bf16.mxu1 %v8608_v26  ;;  %v1150_v25 = vadd.f32 %v9630_v24, %v339_v16  ;;  %v8683_v26 = vld [vmem:[#allocation7 + $0x7e4] ss:$16 sps:$4 sm:$0xff]   ;;  %v8690_v24 = vld [vmem:[#allocation8 + $0x10] ss:$8 sps:$4 sm:$0xff]  }
 0x25c   :  { %2858 = vmatpush1.bf16.msra.mxu0 %v8603_v28  ;;  %3022 = vmatpush1.bf16.msra.mxu1 %v8606_v29  ;;  %v8686_v28 = vld [vmem:[#allocation7 + $0x7ec] ss:$16 sps:$4 sm:$0xff]   ;;  %v8681_v29 = vld [vmem:[#allocation7 + $0x7e0] ss:$16 sps:$4 sm:$0xff]  }
 0x25d   :  { %2859 = vmatprep.subr.bf16.mxu0 %v8611_v30  ;;  %3023 = vmatprep.subr.bf16.mxu1 %v8614_v31  ;;  %v8684_v30 = vld [vmem:[#allocation7 + $0x7e8] ss:$16 sps:$4 sm:$0xff]   ;;  %v1162_v31 = vmax.f32 %v1150_v25, 0.0 }
 0x260   :  { %2860 = vmatpush1.bf16.msra.mxu0 %v8609_v32  ;;  %3024 = vmatpush1.bf16.msra.mxu1 %v8612_v33  ;;  %v8687_v32 = vld [vmem:[#allocation8] ss:$8 sps:$4 sm:$0xff]   ;;  %v1170_v33 = vpack.c.bf16 %v1162_v31, %v1162_v31 }
 0x261   :  { %2861 = vmatprep.subr.bf16.mxu0 %v8617_v34  ;;  %3025 = vmatprep.subr.bf16.mxu1 %v8620_v35  ;;  %v8692_v34 = vld [vmem:[#allocation8 + $0x14] ss:$8 sps:$4 sm:$0xff]   ;;  %v8695_v35 = vld [vmem:[#allocation8 + $0x24] ss:$8 sps:$4 sm:$0xff]  }
 0x264   :  { %2862 = vmatpush1.bf16.msra.mxu0 %v8615_v36  ;;  %3026 = vmatpush1.bf16.msra.mxu1 %v8618_v37  ;;  %v8693_v36 = vld [vmem:[#allocation8 + $0x20] ss:$8 sps:$4 sm:$0xff]   ;;  %v8698_v37 = vld [vmem:[#allocation8 + $0x34] ss:$8 sps:$4 sm:$0xff]  }
 0x265   :  { %2863 = vmatprep.subr.bf16.mxu0 %v8623_v38  ;;  %3027 = vmatprep.subr.bf16.mxu1 %v8626_v39  ;;  %v8696_v38 = vld [vmem:[#allocation8 + $0x30] ss:$8 sps:$4 sm:$0xff]   ;;  %v8701_v39 = vld [vmem:[#allocation8 + $0x44] ss:$8 sps:$4 sm:$0xff]  }
 0x268   :  { %2864 = vmatpush1.bf16.msra.mxu0 %v8621_v40  ;;  %3028 = vmatpush1.bf16.msra.mxu1 %v8624_v41  ;;  %v8699_v40 = vld [vmem:[#allocation8 + $0x40] ss:$8 sps:$4 sm:$0xff]   ;;  %v8704_v41 = vld [vmem:[#allocation8 + $0x54] ss:$8 sps:$4 sm:$0xff]  }
 0x269   :  { %2865 = vmatprep.subr.bf16.mxu0 %v8629_v42  ;;  %3029 = vmatprep.subr.bf16.mxu1 %v8632_v43  ;;  %v8702_v42 = vld [vmem:[#allocation8 + $0x50] ss:$8 sps:$4 sm:$0xff]   ;;  %v8707_v43 = vld [vmem:[#allocation8 + $0x64] ss:$8 sps:$4 sm:$0xff]  }
 0x26c   :  { %2866 = vmatpush1.bf16.msra.mxu0 %v8627_v44  ;;  %3030 = vmatpush1.bf16.msra.mxu1 %v8630_v46  ;;  %v8705_v44 = vld [vmem:[#allocation8 + $0x60] ss:$8 sps:$4 sm:$0xff]   ;;  %v8710_v46 = vld [vmem:[#allocation8 + $0x74] ss:$8 sps:$4 sm:$0xff]  }
 0x26d   :  { %2867 = vmatprep.subr.bf16.mxu0 %v8635_v49  ;;  %3031 = vmatprep.subr.bf16.mxu1 %v8638_v50  ;;  %v8708_v49 = vld [vmem:[#allocation8 + $0x70] ss:$8 sps:$4 sm:$0xff]   ;;  %v8713_v50 = vld [vmem:[#allocation8 + $0x84] ss:$8 sps:$4 sm:$0xff]  }
 0x270   :  { %2868 = vmatpush1.bf16.msra.mxu0 %v8633_v52  ;;  %3032 = vmatpush1.bf16.msra.mxu1 %v8636_v53  ;;  %v8711_v52 = vld [vmem:[#allocation8 + $0x80] ss:$8 sps:$4 sm:$0xff]   ;;  %v8716_v53 = vld [vmem:[#allocation8 + $0x94] ss:$8 sps:$4 sm:$0xff]  }
 0x271   :  { %2869 = vmatprep.subr.bf16.mxu0 %v8641_v54  ;;  %3033 = vmatprep.subr.bf16.mxu1 %v8644_v45  ;;  %v8714_v54 = vld [vmem:[#allocation8 + $0x90] ss:$8 sps:$4 sm:$0xff]   ;;  %v8719_v45 = vld [vmem:[#allocation8 + $0xa4] ss:$8 sps:$4 sm:$0xff]  }
 0x274   :  { %2870 = vmatpush1.bf16.msra.mxu0 %v8639_v18  ;;  %3034 = vmatpush1.bf16.msra.mxu1 %v8642_v55  ;;  %v8717_v18 = vld [vmem:[#allocation8 + $0xa0] ss:$8 sps:$4 sm:$0xff]   ;;  %v8722_v55 = vld [vmem:[#allocation8 + $0xb4] ss:$8 sps:$4 sm:$0xff]  }
 0x275   :  { %2871 = vmatprep.subr.bf16.mxu0 %v8647_v56  ;;  %3035 = vmatprep.subr.bf16.mxu1 %v8650_v57  ;;  %v8720_v56 = vld [vmem:[#allocation8 + $0xb0] ss:$8 sps:$4 sm:$0xff]   ;;  %v8725_v57 = vld [vmem:[#allocation8 + $0xc4] ss:$8 sps:$4 sm:$0xff]  }
 0x278   :  { %2872 = vmatpush1.bf16.msra.mxu0 %v8645_v58  ;;  %3036 = vmatpush1.bf16.msra.mxu1 %v8648_v59  ;;  %v8723_v58 = vld [vmem:[#allocation8 + $0xc0] ss:$8 sps:$4 sm:$0xff]   ;;  %v8728_v59 = vld [vmem:[#allocation8 + $0xd4] ss:$8 sps:$4 sm:$0xff]  }
 0x279   :  { %2873 = vmatprep.subr.bf16.mxu0 %v8653_v60  ;;  %3037 = vmatprep.subr.bf16.mxu1 %v8656_v61  ;;  %v8726_v60 = vld [vmem:[#allocation8 + $0xd0] ss:$8 sps:$4 sm:$0xff]   ;;  %v8731_v61 = vld [vmem:[#allocation8 + $0xe4] ss:$8 sps:$4 sm:$0xff]  }
 0x27c   :  { %2874 = vmatpush1.bf16.msra.mxu0 %v8651_v62  ;;  %3038 = vmatpush1.bf16.msra.mxu1 %v8654_v63  ;;  %v8729_v62 = vld [vmem:[#allocation8 + $0xe0] ss:$8 sps:$4 sm:$0xff]   ;;  %v8734_v63 = vld [vmem:[#allocation8 + $0xf4] ss:$8 sps:$4 sm:$0xff]  }
 0x27d   :  { %2875 = vmatprep.subr.bf16.mxu0 %v8659_v0  ;;  %3039 = vmatprep.subr.bf16.mxu1 %v8662_v1  ;;  %v8732_v0 = vld [vmem:[#allocation8 + $0xf0] ss:$8 sps:$4 sm:$0xff]   ;;  %v8737_v1 = vld [vmem:[#allocation8 + $0x104] ss:$8 sps:$4 sm:$0xff]  }
 0x280   :  { %2876 = vmatpush1.bf16.msra.mxu0 %v8657_v2  ;;  %3040 = vmatpush1.bf16.msra.mxu1 %v8660_v3  ;;  %v9659_v2 = vld [vmem:[%s9783_s10] sm:$0xf] }
 0x281   :  { %2877 = vmatprep.subr.bf16.mxu0 %v8665_v4  ;;  %3041 = vmatprep.subr.bf16.mxu1 %v8668_v5  ;;  %v1433_v3 = vrot.slane %v9659_v2, %v9610_v12  ;;  %v1437_v4 = vrot.slane %v9659_v2, %v9618_v14  ;;  %v1445_v5 = vrot.slane %v9659_v2, %v9628_v23 }
 0x284   :  { %2878 = vmatpush1.bf16.msra.mxu0 %v8663_v6  ;;  %3042 = vmatpush1.bf16.msra.mxu1 %v8666_v7 }
 0x285   :  { %2879 = vmatprep.subr.bf16.mxu0 %v8671_v9  ;;  %3043 = vmatprep.subr.bf16.mxu1 %v8674_v27 }
 0x288   :  { %2880 = vmatpush1.bf16.msra.mxu0 %v8669_v10  ;;  %3044 = vmatpush1.bf16.msra.mxu1 %v8672_v15 }
 0x289   :  { %2881 = vmatprep.subr.bf16.mxu0 %v8677_v17  ;;  %3045 = vmatprep.subr.bf16.mxu1 %v8680_v19 }
 0x28c   :  { %2882 = vmatpush1.bf16.msra.mxu0 %v8675_v21  ;;  %3046 = vmatpush1.bf16.msra.mxu1 %v8678_v22 }
 0x28d   :  { %2883 = vmatprep.subr.bf16.mxu0 %v8683_v26  ;;  %3047 = vmatprep.subr.bf16.mxu1 %v8686_v28 }
 0x290   :  { %2884 = vmatpush1.bf16.msra.mxu0 %v8681_v29  ;;  %3048 = vmatpush1.bf16.msra.mxu1 %v8684_v30  ;;  %v8735_v30 = vld [vmem:[#allocation8 + $0x100] ss:$8 sps:$4 sm:$0xff]  }
 0x291   :  { %3462 = vmatprep.subr.bf16.mxu0 %v8689_v13  ;;  %v8740_v13 = vld [vmem:[#allocation8 + $0x114] ss:$8 sps:$4 sm:$0xff]  }
 0x293   :  { %2886 = vmatmul.mubr.bf16.vlgmr.msra.gmra.mrb[12].mxu0 %v1170_v33  ;;  %3050 = vmatmul.mubr.bf16.vlgmr.msra.gmra.mrb[4].mxu1 %v1170_v33  ;;  %v8738_v33 = vld [vmem:[#allocation8 + $0x110] ss:$8 sps:$4 sm:$0xff]  }
 0x294   :  { %3463 = vmatpush1.bf16.msra.mxu0 %v8687_v32 }
 0x295   :  { %3464 = vmatprep.subr.bf16.mxu0 %v8692_v34  ;;  %v8743_v34 = vld [vmem:[#allocation8 + $0x124] ss:$8 sps:$4 sm:$0xff]  }
 0x298   :  { %3465 = vmatpush1.bf16.msra.mxu0 %v8690_v24  ;;  %v8741_v24 = vld [vmem:[#allocation8 + $0x120] ss:$8 sps:$4 sm:$0xff]  }
 0x299   :  { %3466 = vmatprep.subr.bf16.mxu0 %v8695_v35  ;;  %v8746_v35 = vld [vmem:[#allocation8 + $0x134] ss:$8 sps:$4 sm:$0xff]  }
 0x29c   :  { %3467 = vmatpush1.bf16.msra.mxu0 %v8693_v36  ;;  %v8744_v36 = vld [vmem:[#allocation8 + $0x130] ss:$8 sps:$4 sm:$0xff]  }
 0x29d   :  { %3468 = vmatprep.subr.bf16.mxu0 %v8698_v37  ;;  %v8749_v37 = vld [vmem:[#allocation8 + $0x144] ss:$8 sps:$4 sm:$0xff]  }
 0x2a0   :  { %3469 = vmatpush1.bf16.msra.mxu0 %v8696_v38  ;;  %v8747_v38 = vld [vmem:[#allocation8 + $0x140] ss:$8 sps:$4 sm:$0xff]  }
 0x2a1   :  { %3470 = vmatprep.subr.bf16.mxu0 %v8701_v39  ;;  %v8752_v39 = vld [vmem:[#allocation8 + $0x154] ss:$8 sps:$4 sm:$0xff]  }
 0x2a4   :  { %3471 = vmatpush1.bf16.msra.mxu0 %v8699_v40  ;;  %v8750_v40 = vld [vmem:[#allocation8 + $0x150] ss:$8 sps:$4 sm:$0xff]  }
 0x2a5   :  { %3472 = vmatprep.subr.bf16.mxu0 %v8704_v41  ;;  %v8755_v41 = vld [vmem:[#allocation8 + $0x164] ss:$8 sps:$4 sm:$0xff]  }
 0x2a8   :  { %3473 = vmatpush1.bf16.msra.mxu0 %v8702_v42  ;;  %v8753_v42 = vld [vmem:[#allocation8 + $0x160] ss:$8 sps:$4 sm:$0xff]  }
 0x2a9   :  { %3474 = vmatprep.subr.bf16.mxu0 %v8707_v43  ;;  %v8758_v43 = vld [vmem:[#allocation8 + $0x174] ss:$8 sps:$4 sm:$0xff]  }
 0x2ac   :  { %3475 = vmatpush1.bf16.msra.mxu0 %v8705_v44  ;;  %v8756_v44 = vld [vmem:[#allocation8 + $0x170] ss:$8 sps:$4 sm:$0xff]  }
 0x2ad   :  { %3476 = vmatprep.subr.bf16.mxu0 %v8710_v46  ;;  %v8761_v46 = vld [vmem:[#allocation8 + $0x184] ss:$8 sps:$4 sm:$0xff]  }
 0x2b0   :  { %3477 = vmatpush1.bf16.msra.mxu0 %v8708_v49  ;;  %v8759_v49 = vld [vmem:[#allocation8 + $0x180] ss:$8 sps:$4 sm:$0xff]  }
 0x2b1   :  { %3478 = vmatprep.subr.bf16.mxu0 %v8713_v50  ;;  %v8764_v50 = vld [vmem:[#allocation8 + $0x194] ss:$8 sps:$4 sm:$0xff]  }
 0x2b4   :  { %3479 = vmatpush1.bf16.msra.mxu0 %v8711_v52  ;;  %v8762_v52 = vld [vmem:[#allocation8 + $0x190] ss:$8 sps:$4 sm:$0xff]  }
 0x2b5   :  { %3480 = vmatprep.subr.bf16.mxu0 %v8716_v53  ;;  %v8767_v53 = vld [vmem:[#allocation8 + $0x1a4] ss:$8 sps:$4 sm:$0xff]  }
 0x2b8   :  { %3481 = vmatpush1.bf16.msra.mxu0 %v8714_v54  ;;  %v8765_v54 = vld [vmem:[#allocation8 + $0x1a0] ss:$8 sps:$4 sm:$0xff]  }
 0x2b9   :  { %3482 = vmatprep.subr.bf16.mxu0 %v8719_v45  ;;  %v8770_v45 = vld [vmem:[#allocation8 + $0x1b4] ss:$8 sps:$4 sm:$0xff]  }
 0x2bc   :  { %3483 = vmatpush1.bf16.msra.mxu0 %v8717_v18  ;;  %v8768_v18 = vld [vmem:[#allocation8 + $0x1b0] ss:$8 sps:$4 sm:$0xff]  }
 0x2bd   :  { %3484 = vmatprep.subr.bf16.mxu0 %v8722_v55  ;;  %v8773_v55 = vld [vmem:[#allocation8 + $0x1c4] ss:$8 sps:$4 sm:$0xff]  }
 0x2c0   :  { %3485 = vmatpush1.bf16.msra.mxu0 %v8720_v56  ;;  %v8771_v56 = vld [vmem:[#allocation8 + $0x1c0] ss:$8 sps:$4 sm:$0xff]  }
 0x2c1   :  { %3486 = vmatprep.subr.bf16.mxu0 %v8725_v57  ;;  %v8776_v57 = vld [vmem:[#allocation8 + $0x1d4] ss:$8 sps:$4 sm:$0xff]  }
 0x2c4   :  { %3487 = vmatpush1.bf16.msra.mxu0 %v8723_v58  ;;  %v8774_v58 = vld [vmem:[#allocation8 + $0x1d0] ss:$8 sps:$4 sm:$0xff]  }
 0x2c5   :  { %3488 = vmatprep.subr.bf16.mxu0 %v8728_v59  ;;  %v1441_v59 = vrot.slane %v9659_v2, %v9625_v20  ;;  %v8786_v2 = vld [vmem:[#allocation10 + $0x8] sm:$0xff]  }
 0x2c8   :  { %3489 = vmatpush1.bf16.msra.mxu0 %v8726_v60  ;;  %v8779_v60 = vld [vmem:[#allocation8 + $0x1e4] ss:$8 sps:$4 sm:$0xff]  }
 0x2c9   :  { %3490 = vmatprep.subr.bf16.mxu0 %v8731_v61  ;;  %v8777_v61 = vld [vmem:[#allocation8 + $0x1e0] ss:$8 sps:$4 sm:$0xff]  }
 0x2cc   :  { %3491 = vmatpush1.bf16.msra.mxu0 %v8729_v62 }
 0x2cd   :  { %3492 = vmatprep.subr.bf16.mxu0 %v8734_v63  ;;  %v8782_v63 = vld [vmem:[#allocation8 + $0x1f4] ss:$8 sps:$4 sm:$0xff]  }
 0x2d0   :  { %3493 = vmatpush1.bf16.msra.mxu0 %v8732_v0  ;;  %v8780_v0 = vld [vmem:[#allocation8 + $0x1f0] ss:$8 sps:$4 sm:$0xff]  }
 0x2d1   :  { %3503 = vmatprep.subr.bf16.mxu0 %v8737_v1 }
 0x366   :  { %v2887_v6 = vpop.f32.mrb[12].mxu0  ;;  %v9667_v7 = vpop.f32.mrb[4].mxu1 }
 0x367   :  { %v8212_v9 = vadd.f32 %v2887_v6, %v1433_v3  ;;  %v2889_v27 = vpop.f32.mrb[13].mxu0  ;;  %v3053_v10 = vpop.f32.mrb[5].mxu1  ;;  %v8214_v62 = vadd.f32 %v9667_v7, %v1441_v59  ;;  %v8783_v3 = vld [vmem:[#allocation10 + $0x40] sm:$0xff]   ;;  %v8785_v6 = vld [vmem:[#allocation10 + $0x48] sm:$0xff]   ;;  %v8789_v7 = vld [vmem:[#allocation10 + $0x58] sm:$0xff]  }
 0x368   :  { %v8213_v15 = vadd.f32 %v2889_v27, %v1437_v4  ;;  %v8215_v16 = vadd.f32 %v3053_v10, %v1445_v5  ;;  %v2891_v17 = vpop.f32.mrb[14].mxu0  ;;  %v3055_v19 = vpop.f32.mrb[6].mxu1  ;;  %v8784_v4 = vld [vmem:[#allocation10] sm:$0xff]   ;;  %v8788_v27 = vld [vmem:[#allocation10 + $0x10] sm:$0xff]   ;;  %v8790_v10 = vld [vmem:[#allocation10 + $0x18] sm:$0xff]  }
 0x369   :  { %v3058_v21 = vmax.f32 %v8212_v9, 0.0  ;;  %v2892_v22 = vpop.f32.mrb[15].mxu0  ;;  %v3056_v25 = vpop.f32.mrb[7].mxu1  ;;  %v3060_v1 = vmax.f32 %v8214_v62, 0.0  ;;  %v8787_v9 = vld [vmem:[#allocation10 + $0x50] sm:$0xff]   ;;  %v8793_v17 = vld [vmem:[#allocation10 + $0x68] sm:$0xff]  }
 0x36a   :  { %v3059_v26 = vmax.f32 %v8213_v15, 0.0  ;;  %v3061_v28 = vmax.f32 %v8215_v16, 0.0  ;;  %v8791_v15 = vld [vmem:[#allocation10 + $0x60] sm:$0xff]   ;;  %v8794_v19 = vld [vmem:[#allocation10 + $0x28] sm:$0xff]   ;;  %v8796_v22 = vld [vmem:[#allocation10 + $0x30] sm:$0xff]  }
 0x36b   :  { %v3062_v31 = vpack.c.bf16 %v3058_v21, %v3058_v21  ;;  %v3064_v5 = vpack.c.bf16 %v3060_v1, %v3060_v1  ;;  %v8792_v16 = vld [vmem:[#allocation10 + $0x20] sm:$0xff]   ;;  %v8795_v21 = vld [vmem:[#allocation10 + $0x70] sm:$0xff]   ;;  %v8797_v25 = vld [vmem:[#allocation10 + $0x78] sm:$0xff]  }
 0x36c   :  { %v3063_v29 = vpack.c.bf16 %v3059_v26, %v3059_v26  ;;  %v3065_v32 = vpack.c.bf16 %v3061_v28, %v3061_v28  ;;  %v8798_v26 = vld [vmem:[#allocation10 + $0x38] sm:$0xff]   ;;  %v8799_v28 = vld [vmem:[#allocation11] ss:$8 sps:$4 sm:$0xff]  }
 0x36d   :  { %v8826_v59 = vld [vmem:[#allocation13 + $0x8] ss:$16 sps:$4 sm:$0xff]   ;;  %v8846_v1 = vld [vmem:[#allocation13 + $0x6c] ss:$16 sps:$4 sm:$0xff]  }
 0x36e   :  { %3494 = vmatprep.mubr.bf16.mxu0 %v3063_v29  ;;  %v8801_v29 = vld [vmem:[#allocation11 + $0x4] ss:$8 sps:$4 sm:$0xff]   ;;  %v8832_v62 = vld [vmem:[#allocation13 + $0x28] ss:$16 sps:$4 sm:$0xff]  }
 0x36f   :  { %3495 = vmatmul.mubr.bf16.vlgmr.msra.gmra.mrb[16].mxu0 %v3062_v31  ;;  %3833 = vmatprep.subr.bf16.mxu1 %v8801_v29  ;;  %v8802_v31 = vld [vmem:[#allocation11 + $0x10] ss:$8 sps:$4 sm:$0xff]  }
 0x370   :  { %3504 = vmatpush1.bf16.msra.mxu0 %v8735_v30  ;;  %3535 = vmatprep.mubr.bf16.mxu0 %v3065_v32  ;;  %v8804_v30 = vld [vmem:[#allocation11 + $0x14] ss:$8 sps:$4 sm:$0xff]   ;;  %v8805_v32 = vld [vmem:[#allocation11 + $0x20] ss:$8 sps:$4 sm:$0xff]  }
 0x371   :  { %3505 = vmatprep.subr.bf16.mxu0 %v8740_v13  ;;  %3834 = vmatpush1.bf16.msra.mxu1 %v8799_v28  ;;  %v8807_v13 = vld [vmem:[#allocation11 + $0x24] ss:$8 sps:$4 sm:$0xff]   ;;  %v8898_v29 = vld [vmem:[#allocation13 + $0x188] ss:$16 sps:$4 sm:$0xff]  }
 0x372   :  { %3835 = vmatprep.subr.bf16.mxu1 %v8804_v30  ;;  %v8900_v28 = vld [vmem:[#allocation13 + $0x18c] ss:$16 sps:$4 sm:$0xff]  }
 0x373   :  { %v8906_v30 = vld [vmem:[#allocation13 + $0x1ac] ss:$16 sps:$4 sm:$0xff]  }
 0x374   :  { %3506 = vmatpush1.bf16.msra.mxu0 %v8738_v33  ;;  %v8810_v33 = vld [vmem:[#allocation11 + $0x34] ss:$8 sps:$4 sm:$0xff]  }
 0x375   :  { %3507 = vmatprep.subr.bf16.mxu0 %v8743_v34  ;;  %3836 = vmatpush1.bf16.msra.mxu1 %v8802_v31  ;;  %v8808_v34 = vld [vmem:[#allocation11 + $0x30] ss:$8 sps:$4 sm:$0xff]  }
 0x376   :  { %3837 = vmatprep.subr.bf16.mxu1 %v8807_v13  ;;  %v8904_v31 = vld [vmem:[#allocation13 + $0x1a8] ss:$16 sps:$4 sm:$0xff]  }
 0x378   :  { %3508 = vmatpush1.bf16.msra.mxu0 %v8741_v24  ;;  %v8813_v24 = vld [vmem:[#allocation11 + $0x44] ss:$8 sps:$4 sm:$0xff]  }
 0x379   :  { %3509 = vmatprep.subr.bf16.mxu0 %v8746_v35  ;;  %3838 = vmatpush1.bf16.msra.mxu1 %v8805_v32  ;;  %v8811_v35 = vld [vmem:[#allocation11 + $0x40] ss:$8 sps:$4 sm:$0xff]   ;;  %v7709_v32 = vld [vmem:[%s9785_s12] ss:$0 sm:$0xff] }
 0x37a   :  { %3839 = vmatprep.subr.bf16.mxu1 %v8810_v33 }
 0x37c   :  { %3510 = vmatpush1.bf16.msra.mxu0 %v8744_v36  ;;  %v8816_v36 = vld [vmem:[#allocation11 + $0x54] ss:$8 sps:$4 sm:$0xff]  }
 0x37d   :  { %3511 = vmatprep.subr.bf16.mxu0 %v8749_v37  ;;  %3840 = vmatpush1.bf16.msra.mxu1 %v8808_v34  ;;  %v8814_v37 = vld [vmem:[#allocation11 + $0x50] ss:$8 sps:$4 sm:$0xff]  }
 0x37e   :  { %3841 = vmatprep.subr.bf16.mxu1 %v8813_v24 }
 0x380   :  { %3512 = vmatpush1.bf16.msra.mxu0 %v8747_v38  ;;  %v3130_v38 = vld [vmem:[%s9784_s11] sm:$0x3] }
 0x381   :  { %3513 = vmatprep.subr.bf16.mxu0 %v8752_v39  ;;  %3842 = vmatpush1.bf16.msra.mxu1 %v8811_v35  ;;  %v3135_v39 = vrot.slane %v3130_v38, %v9610_v12 }
 0x382   :  { %3843 = vmatprep.subr.bf16.mxu1 %v8816_v36 }
 0x384   :  { %3514 = vmatpush1.bf16.msra.mxu0 %v8750_v40  ;;  %v3139_v40 = vrot.slane %v3130_v38, %v9618_v14  ;;  %v8823_v38 = vld [vmem:[#allocation13] ss:$16 sps:$4 sm:$0xff]  }
 0x385   :  { %3515 = vmatprep.subr.bf16.mxu0 %v8755_v41  ;;  %3844 = vmatpush1.bf16.msra.mxu1 %v8814_v37 }
 0x388   :  { %3516 = vmatpush1.bf16.msra.mxu0 %v8753_v42 }
 0x389   :  { %3517 = vmatprep.subr.bf16.mxu0 %v8758_v43 }
 0x38c   :  { %3518 = vmatpush1.bf16.msra.mxu0 %v8756_v44 }
 0x38d   :  { %3519 = vmatprep.subr.bf16.mxu0 %v8761_v46 }
 0x390   :  { %3520 = vmatpush1.bf16.msra.mxu0 %v8759_v49 }
 0x391   :  { %3521 = vmatprep.subr.bf16.mxu0 %v8764_v50 }
 0x394   :  { %3522 = vmatpush1.bf16.msra.mxu0 %v8762_v52 }
 0x395   :  { %3523 = vmatprep.subr.bf16.mxu0 %v8767_v53 }
 0x398   :  { %3524 = vmatpush1.bf16.msra.mxu0 %v8765_v54 }
 0x399   :  { %3525 = vmatprep.subr.bf16.mxu0 %v8770_v45  ;;  %v8819_v45 = vld [vmem:[#allocation11 + $0x64] ss:$8 sps:$4 sm:$0xff]  }
 0x39a   :  { %3845 = vmatprep.subr.bf16.mxu1 %v8819_v45  ;;  %v8859_v45 = vld [vmem:[#allocation13 + $0xc0] ss:$16 sps:$4 sm:$0xff]  }
 0x39c   :  { %3526 = vmatpush1.bf16.msra.mxu0 %v8768_v18  ;;  %v8817_v18 = vld [vmem:[#allocation11 + $0x60] ss:$8 sps:$4 sm:$0xff]  }
 0x39d   :  { %3527 = vmatprep.subr.bf16.mxu0 %v8773_v55  ;;  %3846 = vmatpush1.bf16.msra.mxu1 %v8817_v18  ;;  %v8822_v55 = vld [vmem:[#allocation11 + $0x74] ss:$8 sps:$4 sm:$0xff]  }
 0x39e   :  { %3847 = vmatprep.subr.bf16.mxu1 %v8822_v55  ;;  %v8867_v18 = vld [vmem:[#allocation13 + $0xe4] ss:$16 sps:$4 sm:$0xff]   ;;  %v8865_v55 = vld [vmem:[#allocation13 + $0xe0] ss:$16 sps:$4 sm:$0xff]  }
 0x3a0   :  { %3528 = vmatpush1.bf16.msra.mxu0 %v8771_v56  ;;  %v8820_v56 = vld [vmem:[#allocation11 + $0x70] ss:$8 sps:$4 sm:$0xff]  }
 0x3a1   :  { %3529 = vmatprep.subr.bf16.mxu0 %v8776_v57  ;;  %3848 = vmatpush1.bf16.msra.mxu1 %v8820_v56  ;;  %v9360_v57 = vmov 0   ;;  %v8873_v56 = vld [vmem:[#allocation13 + $0x104] ss:$16 sps:$4 sm:$0xff]  }
 0x3a2   :  { %3865 = vmatprep.mubr.bf16.mxu1 %v9360_v57  ;;  %v8871_v57 = vld [vmem:[#allocation13 + $0x100] ss:$16 sps:$4 sm:$0xff]  }
 0x3a4   :  { %3530 = vmatpush1.bf16.msra.mxu0 %v8774_v58  ;;  %v8825_v58 = vld [vmem:[#allocation13 + $0x4] ss:$16 sps:$4 sm:$0xff]  }
 0x3a5   :  { %3531 = vmatprep.subr.bf16.mxu0 %v8779_v60  ;;  %v8828_v60 = vld [vmem:[#allocation13 + $0xc] ss:$16 sps:$4 sm:$0xff]   ;;  %4284 = vmatprep.subr.bf16.mxu1 %v8825_v58  ;;  %v8879_v58 = vld [vmem:[#allocation13 + $0x124] ss:$16 sps:$4 sm:$0xff]  }
 0x3a8   :  { %3532 = vmatpush1.bf16.msra.mxu0 %v8777_v61  ;;  %v8834_v61 = vld [vmem:[#allocation13 + $0x2c] ss:$16 sps:$4 sm:$0xff]  }
 0x3a9   :  { %3533 = vmatprep.subr.bf16.mxu0 %v8782_v63  ;;  %v8840_v63 = vld [vmem:[#allocation13 + $0x4c] ss:$16 sps:$4 sm:$0xff]  }
 0x3ac   :  { %3534 = vmatpush1.bf16.msra.mxu0 %v8780_v0  ;;  %v8838_v0 = vld [vmem:[#allocation13 + $0x48] ss:$16 sps:$4 sm:$0xff]  }
 0x3ad   :  { %8190 = vmatprep.subr.bf16.mxu0 %v8783_v3  ;;  %v8844_v3 = vld [vmem:[#allocation13 + $0x68] ss:$16 sps:$4 sm:$0xff]  }
 0x3af   :  { %3536 = vmatmul.mubr.bf16.vlgmr.msra.gmra.mrb[16].mxu0 %v3064_v5  ;;  %v8850_v5 = vld [vmem:[#allocation13 + $0x88] ss:$16 sps:$4 sm:$0xff]  }
 0x3b0   :  { %8191 = vmatpush3.bf16.msra.mxu0 %v8784_v4  ;;  %v8852_v4 = vld [vmem:[#allocation13 + $0x8c] ss:$16 sps:$4 sm:$0xff]  }
 0x3b1   :  { %8192 = vmatprep.subr.bf16.mxu0 %v8785_v6  ;;  %v8858_v6 = vld [vmem:[#allocation13 + $0xac] ss:$16 sps:$4 sm:$0xff]  }
 0x3b4   :  { %8193 = vmatpush3.bf16.msra.mxu0 %v8786_v2  ;;  %v8856_v2 = vld [vmem:[#allocation13 + $0xa8] ss:$16 sps:$4 sm:$0xff]  }
 0x3b5   :  { %8194 = vmatprep.subr.bf16.mxu0 %v8787_v9  ;;  %v8864_v9 = vld [vmem:[#allocation13 + $0xcc] ss:$16 sps:$4 sm:$0xff]  }
 0x3b8   :  { %8195 = vmatpush3.bf16.msra.mxu0 %v8788_v27  ;;  %v8862_v27 = vld [vmem:[#allocation13 + $0xc8] ss:$16 sps:$4 sm:$0xff]  }
 0x3b9   :  { %8196 = vmatprep.subr.bf16.mxu0 %v8789_v7  ;;  %v8870_v7 = vld [vmem:[#allocation13 + $0xec] ss:$16 sps:$4 sm:$0xff]  }
 0x3bc   :  { %8197 = vmatpush3.bf16.msra.mxu0 %v8790_v10  ;;  %v8868_v10 = vld [vmem:[#allocation13 + $0xe8] ss:$16 sps:$4 sm:$0xff]  }
 0x3bd   :  { %8198 = vmatprep.subr.bf16.mxu0 %v8791_v15  ;;  %v8876_v15 = vld [vmem:[#allocation13 + $0x10c] ss:$16 sps:$4 sm:$0xff]  }
 0x3c0   :  { %8199 = vmatpush3.bf16.msra.mxu0 %v8792_v16  ;;  %v8874_v16 = vld [vmem:[#allocation13 + $0x108] ss:$16 sps:$4 sm:$0xff]  }
 0x3c1   :  { %8200 = vmatprep.subr.bf16.mxu0 %v8793_v17  ;;  %v8882_v17 = vld [vmem:[#allocation13 + $0x12c] ss:$16 sps:$4 sm:$0xff]  }
 0x3c4   :  { %8201 = vmatpush3.bf16.msra.mxu0 %v8794_v19  ;;  %v8880_v19 = vld [vmem:[#allocation13 + $0x128] ss:$16 sps:$4 sm:$0xff]  }
 0x3c5   :  { %8202 = vmatprep.subr.bf16.mxu0 %v8795_v21  ;;  %v8888_v21 = vld [vmem:[#allocation13 + $0x14c] ss:$16 sps:$4 sm:$0xff]  }
 0x3c8   :  { %8203 = vmatpush3.bf16.msra.mxu0 %v8796_v22  ;;  %v8886_v22 = vld [vmem:[#allocation13 + $0x148] ss:$16 sps:$4 sm:$0xff]  }
 0x3c9   :  { %8204 = vmatprep.subr.bf16.mxu0 %v8797_v25  ;;  %v8894_v25 = vld [vmem:[#allocation13 + $0x16c] ss:$16 sps:$4 sm:$0xff]  }
 0x3cc   :  { %8205 = vmatpush3.bf16.msra.mxu0 %v8798_v26  ;;  %v8892_v26 = vld [vmem:[#allocation13 + $0x168] ss:$16 sps:$4 sm:$0xff]  }
 0x3cd   :  { %4325 = vmatprep.subr.bf16.mxu0 %v8828_v60  ;;  %v8885_v60 = vld [vmem:[#allocation13 + $0x144] ss:$16 sps:$4 sm:$0xff]  }
 0x482   :  { %v3537_v41 = vpop.f32.mrb[16].mxu0 }
 0x483   :  { %v8216_v42 = vadd.f32 %v3537_v41, %v3135_v39  ;;  %v3539_v43 = vpop.f32.mrb[17].mxu0  ;;  %v8829_v41 = vld [vmem:[#allocation13 + $0x20] ss:$16 sps:$4 sm:$0xff]  }
 0x484   :  { %v8217_v44 = vadd.f32 %v3539_v43, %v3139_v40  ;;  %v3541_v46 = vpop.f32.mrb[18].mxu0  ;;  %v8831_v40 = vld [vmem:[#allocation13 + $0x24] ss:$16 sps:$4 sm:$0xff]   ;;  %v8835_v43 = vld [vmem:[#allocation13 + $0x40] ss:$16 sps:$4 sm:$0xff]  }
 0x485   :  { %v3544_v49 = vmax.f32 %v8216_v42, 0.0  ;;  %v3542_v50 = vpop.f32.mrb[19].mxu0  ;;  %v8837_v42 = vld [vmem:[#allocation13 + $0x44] ss:$16 sps:$4 sm:$0xff]   ;;  %v8841_v46 = vld [vmem:[#allocation13 + $0x60] ss:$16 sps:$4 sm:$0xff]  }
 0x486   :  { %v3545_v52 = vmax.f32 %v8217_v44, 0.0  ;;  %v8843_v44 = vld [vmem:[#allocation13 + $0x64] ss:$16 sps:$4 sm:$0xff]   ;;  %v8847_v50 = vld [vmem:[#allocation13 + $0x80] ss:$16 sps:$4 sm:$0xff]  }
 0x487   :  { %v3546_v54 = vpack.c.bf16 %v3544_v49, %v3544_v49  ;;  %v8849_v49 = vld [vmem:[#allocation13 + $0x84] ss:$16 sps:$4 sm:$0xff]  }
 0x488   :  { %v3547_v53 = vpack.c.bf16 %v3545_v52, %v3545_v52  ;;  %v8855_v52 = vld [vmem:[#allocation13 + $0xa4] ss:$16 sps:$4 sm:$0xff]  }
 0x48a   :  { %3715 = vmatprep.mubr.bf16.mxu0 %v3547_v53  ;;  %v8853_v53 = vld [vmem:[#allocation13 + $0xa0] ss:$16 sps:$4 sm:$0xff]  }
 0x48b   :  { %3716 = vmatmul.mubr.bf16.vlgmr.msra.gmra.mrb[20].mxu0 %v3546_v54  ;;  %v8861_v54 = vld [vmem:[#allocation13 + $0xc4] ss:$16 sps:$4 sm:$0xff]  }
 0x48c   :  { %4326 = vmatpush1.bf16.msra.mxu0 %v8826_v59  ;;  %v8877_v59 = vld [vmem:[#allocation13 + $0x120] ss:$16 sps:$4 sm:$0xff]  }
 0x48d   :  { %4327 = vmatprep.subr.bf16.mxu0 %v8834_v61  ;;  %v8883_v61 = vld [vmem:[#allocation13 + $0x140] ss:$16 sps:$4 sm:$0xff]  }
 0x490   :  { %4328 = vmatpush1.bf16.msra.mxu0 %v8832_v62  ;;  %v8891_v62 = vld [vmem:[#allocation13 + $0x164] ss:$16 sps:$4 sm:$0xff]  }
 0x491   :  { %4329 = vmatprep.subr.bf16.mxu0 %v8840_v63  ;;  %v8889_v63 = vld [vmem:[#allocation13 + $0x160] ss:$16 sps:$4 sm:$0xff]  }
 0x494   :  { %4330 = vmatpush1.bf16.msra.mxu0 %v8838_v0  ;;  %v8897_v0 = vld [vmem:[#allocation13 + $0x184] ss:$16 sps:$4 sm:$0xff]  }
 0x495   :  { %4331 = vmatprep.subr.bf16.mxu0 %v8846_v1  ;;  %v8895_v1 = vld [vmem:[#allocation13 + $0x180] ss:$16 sps:$4 sm:$0xff]  }
 0x498   :  { %4332 = vmatpush1.bf16.msra.mxu0 %v8844_v3  ;;  %v8903_v3 = vld [vmem:[#allocation13 + $0x1a4] ss:$16 sps:$4 sm:$0xff]  }
 0x499   :  { %4333 = vmatprep.subr.bf16.mxu0 %v8852_v4  ;;  %v8901_v4 = vld [vmem:[#allocation13 + $0x1a0] ss:$16 sps:$4 sm:$0xff]  }
 0x49c   :  { %4334 = vmatpush1.bf16.msra.mxu0 %v8850_v5  ;;  %v8909_v5 = vld [vmem:[#allocation13 + $0x1c4] ss:$16 sps:$4 sm:$0xff]  }
 0x49d   :  { %4335 = vmatprep.subr.bf16.mxu0 %v8858_v6  ;;  %v8912_v6 = vld [vmem:[#allocation13 + $0x1cc] ss:$16 sps:$4 sm:$0xff]  }
 0x4a0   :  { %4336 = vmatpush1.bf16.msra.mxu0 %v8856_v2  ;;  %v8907_v2 = vld [vmem:[#allocation13 + $0x1c0] ss:$16 sps:$4 sm:$0xff]  }
 0x4a1   :  { %4337 = vmatprep.subr.bf16.mxu0 %v8864_v9  ;;  %v8910_v9 = vld [vmem:[#allocation13 + $0x1c8] ss:$16 sps:$4 sm:$0xff]  }
 0x4a4   :  { %4338 = vmatpush1.bf16.msra.mxu0 %v8862_v27  ;;  %v8915_v27 = vld [vmem:[#allocation13 + $0x1e4] ss:$16 sps:$4 sm:$0xff]  }
 0x4a5   :  { %4339 = vmatprep.subr.bf16.mxu0 %v8870_v7  ;;  %v8918_v7 = vld [vmem:[#allocation13 + $0x1ec] ss:$16 sps:$4 sm:$0xff]  }
 0x4a8   :  { %4340 = vmatpush1.bf16.msra.mxu0 %v8868_v10  ;;  %v8913_v10 = vld [vmem:[#allocation13 + $0x1e0] ss:$16 sps:$4 sm:$0xff]  }
 0x4a9   :  { %4341 = vmatprep.subr.bf16.mxu0 %v8876_v15  ;;  %v8916_v15 = vld [vmem:[#allocation13 + $0x1e8] ss:$16 sps:$4 sm:$0xff]  }
 0x4ac   :  { %4342 = vmatpush1.bf16.msra.mxu0 %v8874_v16  ;;  %v4374_v16 = vld [vmem:[#allocation14] sm:$0xff] }
 0x4ad   :  { %4343 = vmatprep.subr.bf16.mxu0 %v8882_v17  ;;  %v4378_v17 = vld [vmem:[#allocation14 + $0x20] sm:$0xff] }
 0x4b0   :  { %4344 = vmatpush1.bf16.msra.mxu0 %v8880_v19  ;;  %v4375_v19 = vld [vmem:[#allocation14 + $0x8] sm:$0xff] }
 0x4b1   :  { %4345 = vmatprep.subr.bf16.mxu0 %v8888_v21  ;;  %v7806_v21 = vcombine.low %v4374_v16, %v4378_v17 }
 0x4b4   :  { %4346 = vmatpush1.bf16.msra.mxu0 %v8886_v22  ;;  %v7807_v22 = vcombine.high %v4374_v16, %v4378_v17 }
 0x4b5   :  { %4347 = vmatprep.subr.bf16.mxu0 %v8894_v25  ;;  %v4379_v25 = vld [vmem:[#allocation14 + $0x28] sm:$0xff] }
 0x4b8   :  { %4348 = vmatpush1.bf16.msra.mxu0 %v8892_v26  ;;  %v7808_v26 = vcombine.low %v4375_v19, %v4379_v25 }
 0x4b9   :  { %4349 = vmatprep.subr.bf16.mxu0 %v8900_v28  ;;  %v7809_v28 = vcombine.high %v4375_v19, %v4379_v25  ;;  %v4426_v25 = vld [vmem:[#allocation14 + $0x1a0] sm:$0xff] }
 0x4bc   :  { %4350 = vmatpush1.bf16.msra.mxu0 %v8898_v29  ;;  %v3741_v29 = vld [vmem:[%s9786_s13] sm:$0x3] }
 0x4bd   :  { %4351 = vmatprep.subr.bf16.mxu0 %v8906_v30  ;;  %v3746_v30 = vrot.slane %v3741_v29, %v9610_v12 }
 0x4c0   :  { %4352 = vmatpush1.bf16.msra.mxu0 %v8904_v31  ;;  %v3750_v31 = vrot.slane %v3741_v29, %v9618_v14 }
 0x4c1   :  { %4353 = vmatprep.subr.bf16.mxu0 %v8912_v6 }
 0x4c4   :  { %4354 = vmatpush1.bf16.msra.mxu0 %v8910_v9 }
 0x4c5   :  { %4355 = vmatprep.subr.bf16.mxu0 %v8918_v7  ;;  %v4418_v7 = vld [vmem:[#allocation14 + $0x160] sm:$0xff] }
 0x4c8   :  { %4356 = vmatpush1.bf16.msra.mxu0 %v8916_v15  ;;  %v4419_v15 = vld [vmem:[#allocation14 + $0x168] sm:$0xff] }
 0x4c9   :  { %6034 = vmatprep.subr.bf16.mxu0 %v7809_v28  ;;  %v4427_v28 = vld [vmem:[#allocation14 + $0x1a8] sm:$0xff] }
 0x55e   :  { %v8206_v13 = vpop.f32.mrb[20].mxu0 }
 0x55f   :  { %v8207_v33 = vpop.f32.mrb[21].mxu0 }
 0x560   :  { %v8208_v34 = vadd.f32 %v8207_v33, %v8206_v13  ;;  %v8209_v24 = vpop.f32.mrb[22].mxu0 }
 0x561   :  { %v8210_v35 = vpop.f32.mrb[23].mxu0 }
 0x562   :  { %v3718_v36 = vadd.f32 %v8208_v34, %v7709_v32 }
 0x564   :  { %v3723_v37 = vmax.f32 %v3718_v36, 0.0 }
 0x566   :  { %v3724_v39 = vpack.c.bf16 %v3723_v37, %v3723_v37  ;;  %v4382_v37 = vld [vmem:[#allocation14 + $0x40] sm:$0xff] }
 0x568   :  { %3866 = vmatmul.mubr.bf16.vlgmr.msra.gmra.mrb[8].mxu1 %v3724_v39  ;;  %v4386_v39 = vld [vmem:[#allocation14 + $0x60] sm:$0xff] }
 0x569   :  { %4285 = vmatpush1.bf16.msra.mxu1 %v8823_v38 }
 0x56a   :  { %4286 = vmatprep.subr.bf16.mxu1 %v8831_v40  ;;  %v4383_v40 = vld [vmem:[#allocation14 + $0x48] sm:$0xff] }
 0x56d   :  { %4287 = vmatpush1.bf16.msra.mxu1 %v8829_v41  ;;  %v4387_v41 = vld [vmem:[#allocation14 + $0x68] sm:$0xff] }
 0x56e   :  { %4288 = vmatprep.subr.bf16.mxu1 %v8837_v42 }
 0x571   :  { %4289 = vmatpush1.bf16.msra.mxu1 %v8835_v43 }
 0x572   :  { %4290 = vmatprep.subr.bf16.mxu1 %v8843_v44  ;;  %v7815_v44 = vcombine.high %v4382_v37, %v4386_v39 }
 0x575   :  { %4291 = vmatpush1.bf16.msra.mxu1 %v8841_v46  ;;  %v7817_v46 = vcombine.high %v4383_v40, %v4387_v41 }
 0x576   :  { %4292 = vmatprep.subr.bf16.mxu1 %v8849_v49  ;;  %v4390_v49 = vld [vmem:[#allocation14 + $0x80] sm:$0xff] }
 0x579   :  { %4293 = vmatpush1.bf16.msra.mxu1 %v8847_v50  ;;  %v4394_v50 = vld [vmem:[#allocation14 + $0xa0] sm:$0xff] }
 0x57a   :  { %4294 = vmatprep.subr.bf16.mxu1 %v8855_v52  ;;  %v4391_v52 = vld [vmem:[#allocation14 + $0x88] sm:$0xff] }
 0x57d   :  { %4295 = vmatpush1.bf16.msra.mxu1 %v8853_v53  ;;  %v4395_v53 = vld [vmem:[#allocation14 + $0xa8] sm:$0xff] }
 0x57e   :  { %4296 = vmatprep.subr.bf16.mxu1 %v8861_v54  ;;  %v7814_v54 = vcombine.low %v4382_v37, %v4386_v39  ;;  %v4438_v39 = vld [vmem:[#allocation14 + $0x200] sm:$0xff] }
 0x581   :  { %4297 = vmatpush1.bf16.msra.mxu1 %v8859_v45  ;;  %v7816_v45 = vcombine.low %v4383_v40, %v4387_v41  ;;  %v4442_v40 = vld [vmem:[#allocation14 + $0x220] sm:$0xff]  ;;  %v4439_v41 = vld [vmem:[#allocation14 + $0x208] sm:$0xff] }
 0x582   :  { %4298 = vmatprep.subr.bf16.mxu1 %v8867_v18  ;;  %v7823_v18 = vcombine.high %v4390_v49, %v4394_v50 }
 0x585   :  { %4299 = vmatpush1.bf16.msra.mxu1 %v8865_v55  ;;  %v7825_v55 = vcombine.high %v4391_v52, %v4395_v53 }
 0x586   :  { %4300 = vmatprep.subr.bf16.mxu1 %v8873_v56  ;;  %v4398_v56 = vld [vmem:[#allocation14 + $0xc0] sm:$0xff] }
 0x589   :  { %4301 = vmatpush1.bf16.msra.mxu1 %v8871_v57  ;;  %v4402_v57 = vld [vmem:[#allocation14 + $0xe0] sm:$0xff] }
 0x58a   :  { %4302 = vmatprep.subr.bf16.mxu1 %v8879_v58  ;;  %v4399_v58 = vld [vmem:[#allocation14 + $0xc8] sm:$0xff] }
 0x58d   :  { %4303 = vmatpush1.bf16.msra.mxu1 %v8877_v59  ;;  %v4403_v59 = vld [vmem:[#allocation14 + $0xe8] sm:$0xff] }
 0x58e   :  { %4304 = vmatprep.subr.bf16.mxu1 %v8885_v60  ;;  %v7822_v60 = vcombine.low %v4390_v49, %v4394_v50  ;;  %v7832_v6 = vcombine.low %v4399_v58, %v4403_v59  ;;  %v4446_v50 = vld [vmem:[#allocation14 + $0x240] sm:$0xff] }
 0x591   :  { %4305 = vmatpush1.bf16.msra.mxu1 %v8883_v61  ;;  %v7824_v61 = vcombine.low %v4391_v52, %v4395_v53  ;;  %v4450_v52 = vld [vmem:[#allocation14 + $0x260] sm:$0xff]  ;;  %v4447_v53 = vld [vmem:[#allocation14 + $0x248] sm:$0xff] }
 0x592   :  { %4306 = vmatprep.subr.bf16.mxu1 %v8891_v62  ;;  %v7831_v62 = vcombine.high %v4398_v56, %v4402_v57 }
 0x595   :  { %4307 = vmatpush1.bf16.msra.mxu1 %v8889_v63  ;;  %v7833_v63 = vcombine.high %v4399_v58, %v4403_v59  ;;  %v4458_v58 = vld [vmem:[#allocation14 + $0x2a0] sm:$0xff]  ;;  %v4455_v59 = vld [vmem:[#allocation14 + $0x288] sm:$0xff] }
 0x596   :  { %4308 = vmatprep.subr.bf16.mxu1 %v8897_v0  ;;  %v4406_v0 = vld [vmem:[#allocation14 + $0x100] sm:$0xff] }
 0x599   :  { %4309 = vmatpush1.bf16.msra.mxu1 %v8895_v1  ;;  %v4410_v1 = vld [vmem:[#allocation14 + $0x120] sm:$0xff] }
 0x59a   :  { %4310 = vmatprep.subr.bf16.mxu1 %v8903_v3  ;;  %v4407_v3 = vld [vmem:[#allocation14 + $0x108] sm:$0xff]  ;;  %v7838_v16 = vcombine.low %v4406_v0, %v4410_v1 }
 0x59d   :  { %4311 = vmatpush1.bf16.msra.mxu1 %v8901_v4  ;;  %v4411_v4 = vld [vmem:[#allocation14 + $0x128] sm:$0xff] }
 0x59e   :  { %4312 = vmatprep.subr.bf16.mxu1 %v8909_v5  ;;  %v7830_v5 = vcombine.low %v4398_v56, %v4402_v57  ;;  %v7841_v9 = vcombine.high %v4407_v3, %v4411_v4  ;;  %v7840_v17 = vcombine.low %v4407_v3, %v4411_v4  ;;  %v4454_v57 = vld [vmem:[#allocation14 + $0x280] sm:$0xff]  ;;  %v4463_v4 = vld [vmem:[#allocation14 + $0x2c8] sm:$0xff] }
 0x59f   :  { %v4466_v3 = vld [vmem:[#allocation14 + $0x2e0] sm:$0xff] }
 0x5a1   :  { %4313 = vmatpush1.bf16.msra.mxu1 %v8907_v2  ;;  %v7839_v2 = vcombine.high %v4406_v0, %v4410_v1  ;;  %v4462_v1 = vld [vmem:[#allocation14 + $0x2c0] sm:$0xff] }
 0x5a2   :  { %4314 = vmatprep.subr.bf16.mxu1 %v8915_v27  ;;  %v4414_v27 = vld [vmem:[#allocation14 + $0x140] sm:$0xff] }
 0x5a3   :  { %v7847_v19 = vcombine.high %v4414_v27, %v4418_v7  ;;  %v7846_v29 = vcombine.low %v4414_v27, %v4418_v7  ;;  %v4470_v7 = vld [vmem:[#allocation14 + $0x300] sm:$0xff] }
 0x5a5   :  { %4315 = vmatpush1.bf16.msra.mxu1 %v8913_v10  ;;  %v4415_v10 = vld [vmem:[#allocation14 + $0x148] sm:$0xff] }
 0x5a6   :  { %5952 = vmatprep.subr.bf16.mxu1 %v7807_v22  ;;  %v4422_v22 = vld [vmem:[#allocation14 + $0x180] sm:$0xff] }
 0x63b   :  { %v3867_v13 = vpop.f32.mrb[8].mxu1 }
 0x63c   :  { %v3868_v32 = vadd.f32 %v3867_v13, %v3746_v30  ;;  %v3869_v33 = vpop.f32.mrb[9].mxu1  ;;  %v7848_v30 = vcombine.low %v4415_v10, %v4419_v15 }
 0x63d   :  { %v3870_v34 = vadd.f32 %v3869_v33, %v3750_v31  ;;  %v3871_v24 = vpop.f32.mrb[10].mxu1  ;;  %v7855_v31 = vcombine.high %v4422_v22, %v4426_v25  ;;  %v4434_v33 = vld [vmem:[#allocation14 + $0x1e0] sm:$0xff] }
 0x63e   :  { %v3874_v35 = vmax.f32 %v3868_v32, 0.0  ;;  %v3872_v36 = vpop.f32.mrb[11].mxu1  ;;  %v4430_v32 = vld [vmem:[#allocation14 + $0x1c0] sm:$0xff]  ;;  %v4435_v24 = vld [vmem:[#allocation14 + $0x1e8] sm:$0xff] }
 0x63f   :  { %v3875_v38 = vmax.f32 %v3870_v34, 0.0  ;;  %v4431_v34 = vld [vmem:[#allocation14 + $0x1c8] sm:$0xff]  ;;  %v7863_v37 = vcombine.high %v4430_v32, %v4434_v33 }
 0x640   :  { %v3876_v43 = vpack.c.bf16 %v3874_v35, %v3874_v35  ;;  %v7854_v35 = vcombine.low %v4422_v22, %v4426_v25  ;;  %v4478_v25 = vld [vmem:[#allocation14 + $0x340] sm:$0xff] }
 0x641   :  { %v3877_v42 = vpack.c.bf16 %v3875_v38, %v3875_v38  ;;  %v7865_v38 = vcombine.high %v4431_v34, %v4435_v24 }
 0x643   :  { %4316 = vmatprep.mubr.bf16.mxu1 %v3877_v42  ;;  %4357 = vmatprep.mubr.bf16.mxu0 %v3877_v42  ;;  %v4443_v42 = vld [vmem:[#allocation14 + $0x228] sm:$0xff] }
 0x644   :  { %4317 = vmatmul.mubr.bf16.vlgmr.msra.gmra.mrb[12].mxu1 %v3876_v43  ;;  %4358 = vmatmul.mubr.bf16.vlgmr.msra.gmra.mrb[24].mxu0 %v3876_v43  ;;  %v7862_v43 = vcombine.low %v4430_v32, %v4434_v33  ;;  %v7873_v49 = vcombine.high %v4439_v41, %v4443_v42 }
 0x645   :  { %5953 = vmatpush1.bf16.msra.mxu1 %v7806_v21  ;;  %6035 = vmatpush1.bf16.msra.mxu0 %v7808_v26  ;;  %v7849_v21 = vcombine.high %v4415_v10, %v4419_v15  ;;  %v4423_v26 = vld [vmem:[#allocation14 + $0x188] sm:$0xff]  ;;  %v4474_v10 = vld [vmem:[#allocation14 + $0x320] sm:$0xff] }
 0x646   :  { %5954 = vmatprep.subr.bf16.mxu1 %v7815_v44  ;;  %6036 = vmatprep.subr.bf16.mxu0 %v7817_v46  ;;  %v7857_v13 = vcombine.high %v4423_v26, %v4427_v28  ;;  %v7856_v36 = vcombine.low %v4423_v26, %v4427_v28  ;;  %v7864_v44 = vcombine.low %v4431_v34, %v4435_v24  ;;  %v4471_v15 = vld [vmem:[#allocation14 + $0x308] sm:$0xff]  ;;  %v4482_v26 = vld [vmem:[#allocation14 + $0x360] sm:$0xff] }
 0x647   :  { %v7871_v46 = vcombine.high %v4438_v39, %v4442_v40  ;;  %v4479_v28 = vld [vmem:[#allocation14 + $0x348] sm:$0xff]  ;;  %v7910_v33 = vcombine.low %v4478_v25, %v4482_v26  ;;  %v4486_v24 = vld [vmem:[#allocation14 + $0x380] sm:$0xff] }
 0x649   :  { %5955 = vmatpush1.bf16.msra.mxu1 %v7814_v54  ;;  %6037 = vmatpush1.bf16.msra.mxu0 %v7816_v45  ;;  %v4451_v54 = vld [vmem:[#allocation14 + $0x268] sm:$0xff]  ;;  %v7870_v45 = vcombine.low %v4438_v39, %v4442_v40 }
 0x64a   :  { %5956 = vmatprep.subr.bf16.mxu1 %v7823_v18  ;;  %6038 = vmatprep.subr.bf16.mxu0 %v7825_v55  ;;  %v7872_v18 = vcombine.low %v4439_v41, %v4443_v42  ;;  %v7879_v55 = vcombine.high %v4446_v50, %v4450_v52  ;;  %v7881_v56 = vcombine.high %v4447_v53, %v4451_v54  ;;  %v4494_v42 = vld [vmem:[#allocation14 + $0x3c0] sm:$0xff] }
 0x64d   :  { %5957 = vmatpush1.bf16.msra.mxu1 %v7822_v60  ;;  %6039 = vmatpush1.bf16.msra.mxu0 %v7824_v61  ;;  %v4459_v60 = vld [vmem:[#allocation14 + $0x2a8] sm:$0xff]  ;;  %v7878_v61 = vcombine.low %v4446_v50, %v4450_v52 }
 0x64e   :  { %5958 = vmatprep.subr.bf16.mxu1 %v7831_v62  ;;  %6040 = vmatprep.subr.bf16.mxu0 %v7833_v63  ;;  %v7880_v62 = vcombine.low %v4447_v53, %v4451_v54  ;;  %v7887_v63 = vcombine.high %v4454_v57, %v4458_v58  ;;  %v7889_v0 = vcombine.high %v4455_v59, %v4459_v60  ;;  %v4502_v54 = vld [vmem:[#allocation14 + $0x400] sm:$0xff] }
 0x651   :  { %5959 = vmatpush1.bf16.msra.mxu1 %v7830_v5  ;;  %6041 = vmatpush1.bf16.msra.mxu0 %v7832_v6  ;;  %v4467_v5 = vld [vmem:[#allocation14 + $0x2e8] sm:$0xff]  ;;  %v7886_v6 = vcombine.low %v4454_v57, %v4458_v58 }
 0x652   :  { %5960 = vmatprep.subr.bf16.mxu1 %v7839_v2  ;;  %6042 = vmatprep.subr.bf16.mxu0 %v7841_v9  ;;  %v7888_v2 = vcombine.low %v4455_v59, %v4459_v60  ;;  %v7895_v9 = vcombine.high %v4462_v1, %v4466_v3  ;;  %v7897_v27 = vcombine.high %v4463_v4, %v4467_v5  ;;  %v9688_v60 = vld [vmem:[%s9787_s14] sm:$0xf] }
 0x655   :  { %5961 = vmatpush1.bf16.msra.mxu1 %v7838_v16  ;;  %6043 = vmatpush1.bf16.msra.mxu0 %v7840_v17  ;;  %v4475_v16 = vld [vmem:[#allocation14 + $0x328] sm:$0xff]  ;;  %v7894_v17 = vcombine.low %v4462_v1, %v4466_v3 }
 0x656   :  { %5962 = vmatprep.subr.bf16.mxu1 %v7847_v19  ;;  %6044 = vmatprep.subr.bf16.mxu0 %v7849_v21  ;;  %v7896_v19 = vcombine.low %v4463_v4, %v4467_v5  ;;  %v7903_v21 = vcombine.high %v4470_v7, %v4474_v10  ;;  %v7905_v22 = vcombine.high %v4471_v15, %v4475_v16 }
 0x659   :  { %5963 = vmatpush1.bf16.msra.mxu1 %v7846_v29  ;;  %6045 = vmatpush1.bf16.msra.mxu0 %v7848_v30  ;;  %v4483_v29 = vld [vmem:[#allocation14 + $0x368] sm:$0xff]  ;;  %v7902_v30 = vcombine.low %v4470_v7, %v4474_v10 }
 0x65a   :  { %5964 = vmatprep.subr.bf16.mxu1 %v7855_v31  ;;  %6046 = vmatprep.subr.bf16.mxu0 %v7857_v13  ;;  %v7904_v31 = vcombine.low %v4471_v15, %v4475_v16  ;;  %v7911_v13 = vcombine.high %v4478_v25, %v4482_v26  ;;  %v7913_v32 = vcombine.high %v4479_v28, %v4483_v29  ;;  %v4515_v25 = vld [vmem:[#allocation14 + $0x468] sm:$0xff] }
 0x65b   :  { %v7912_v34 = vcombine.low %v4479_v28, %v4483_v29  ;;  %v4518_v29 = vld [vmem:[#allocation14 + $0x480] sm:$0xff] }
 0x65d   :  { %5965 = vmatpush1.bf16.msra.mxu1 %v7854_v35  ;;  %6047 = vmatpush1.bf16.msra.mxu0 %v7856_v36  ;;  %v4490_v35 = vld [vmem:[#allocation14 + $0x3a0] sm:$0xff]  ;;  %v4487_v36 = vld [vmem:[#allocation14 + $0x388] sm:$0xff] }
 0x65e   :  { %5966 = vmatprep.subr.bf16.mxu1 %v7863_v37  ;;  %6048 = vmatprep.subr.bf16.mxu0 %v7865_v38  ;;  %v7919_v37 = vcombine.high %v4486_v24, %v4490_v35  ;;  %v4491_v38 = vld [vmem:[#allocation14 + $0x3a8] sm:$0xff]  ;;  %v7918_v39 = vcombine.low %v4486_v24, %v4490_v35 }
 0x65f   :  { %v7920_v40 = vcombine.low %v4487_v36, %v4491_v38  ;;  %v7921_v41 = vcombine.high %v4487_v36, %v4491_v38  ;;  %v4526_v38 = vld [vmem:[#allocation14 + $0x4c0] sm:$0xff] }
 0x661   :  { %5967 = vmatpush1.bf16.msra.mxu1 %v7862_v43  ;;  %6049 = vmatpush1.bf16.msra.mxu0 %v7864_v44  ;;  %v4498_v43 = vld [vmem:[#allocation14 + $0x3e0] sm:$0xff]  ;;  %v4495_v44 = vld [vmem:[#allocation14 + $0x3c8] sm:$0xff] }
 0x662   :  { %5968 = vmatprep.subr.bf16.mxu1 %v7871_v46  ;;  %6050 = vmatprep.subr.bf16.mxu0 %v7873_v49  ;;  %v7927_v46 = vcombine.high %v4494_v42, %v4498_v43  ;;  %v4499_v49 = vld [vmem:[#allocation14 + $0x3e8] sm:$0xff]  ;;  %v7926_v50 = vcombine.low %v4494_v42, %v4498_v43 }
 0x663   :  { %v7928_v52 = vcombine.low %v4495_v44, %v4499_v49  ;;  %v7929_v53 = vcombine.high %v4495_v44, %v4499_v49  ;;  %v4534_v49 = vld [vmem:[#allocation14 + $0x500] sm:$0xff] }
 0x665   :  { %5969 = vmatpush1.bf16.msra.mxu1 %v7870_v45  ;;  %6051 = vmatpush1.bf16.msra.mxu0 %v7872_v18  ;;  %v4506_v45 = vld [vmem:[#allocation14 + $0x420] sm:$0xff]  ;;  %v4503_v18 = vld [vmem:[#allocation14 + $0x408] sm:$0xff] }
 0x666   :  { %5970 = vmatprep.subr.bf16.mxu1 %v7879_v55  ;;  %6052 = vmatprep.subr.bf16.mxu0 %v7881_v56  ;;  %v7935_v55 = vcombine.high %v4502_v54, %v4506_v45  ;;  %v4507_v56 = vld [vmem:[#allocation14 + $0x428] sm:$0xff]  ;;  %v7934_v57 = vcombine.low %v4502_v54, %v4506_v45 }
 0x667   :  { %v7936_v58 = vcombine.low %v4503_v18, %v4507_v56  ;;  %v7937_v59 = vcombine.high %v4503_v18, %v4507_v56  ;;  %v4542_v56 = vld [vmem:[#allocation14 + $0x540] sm:$0xff] }
 0x669   :  { %5971 = vmatpush1.bf16.msra.mxu1 %v7878_v61  ;;  %6053 = vmatpush1.bf16.msra.mxu0 %v7880_v62  ;;  %v3947_v61 = vrot.slane %v9688_v60, %v9610_v12  ;;  %v3951_v62 = vrot.slane %v9688_v60, %v9618_v14 }
 0x66a   :  { %5972 = vmatprep.subr.bf16.mxu1 %v7887_v63  ;;  %6054 = vmatprep.subr.bf16.mxu0 %v7889_v0  ;;  %v3959_v63 = vrot.slane %v9688_v60, %v9628_v23 }
 0x66d   :  { %5973 = vmatpush1.bf16.msra.mxu1 %v7886_v6  ;;  %6055 = vmatpush1.bf16.msra.mxu0 %v7888_v2 }
 0x66e   :  { %5974 = vmatprep.subr.bf16.mxu1 %v7895_v9  ;;  %6056 = vmatprep.subr.bf16.mxu0 %v7897_v27 }
 0x671   :  { %5975 = vmatpush1.bf16.msra.mxu1 %v7894_v17  ;;  %6057 = vmatpush1.bf16.msra.mxu0 %v7896_v19  ;;  %v4510_v17 = vld [vmem:[#allocation14 + $0x440] sm:$0xff] }
 0x672   :  { %5976 = vmatprep.subr.bf16.mxu1 %v7903_v21  ;;  %6058 = vmatprep.subr.bf16.mxu0 %v7905_v22  ;;  %v4514_v21 = vld [vmem:[#allocation14 + $0x460] sm:$0xff]  ;;  %v4511_v22 = vld [vmem:[#allocation14 + $0x448] sm:$0xff] }
 0x673   :  { %v7942_v24 = vcombine.low %v4510_v17, %v4514_v21  ;;  %v7944_v35 = vcombine.low %v4511_v22, %v4515_v25 }
 0x675   :  { %5977 = vmatpush1.bf16.msra.mxu1 %v7902_v30  ;;  %6059 = vmatpush1.bf16.msra.mxu0 %v7904_v31  ;;  %v7943_v30 = vcombine.high %v4510_v17, %v4514_v21  ;;  %v7945_v31 = vcombine.high %v4511_v22, %v4515_v25  ;;  %v4563_v17 = vld [vmem:[#allocation14 + $0x5e8] sm:$0xff] }
 0x676   :  { %5978 = vmatprep.subr.bf16.mxu1 %v7911_v13  ;;  %6060 = vmatprep.subr.bf16.mxu0 %v7913_v32  ;;  %v4522_v13 = vld [vmem:[#allocation14 + $0x4a0] sm:$0xff]  ;;  %v4519_v32 = vld [vmem:[#allocation14 + $0x488] sm:$0xff] }
 0x677   :  { %v7951_v36 = vcombine.high %v4518_v29, %v4522_v13  ;;  %v7950_v42 = vcombine.low %v4518_v29, %v4522_v13  ;;  %v4566_v29 = vld [vmem:[#allocation14 + $0x600] sm:$0xff]  ;;  %v4571_v13 = vld [vmem:[#allocation14 + $0x628] sm:$0xff] }
 0x679   :  { %5979 = vmatpush1.bf16.msra.mxu1 %v7910_v33  ;;  %6061 = vmatpush1.bf16.msra.mxu0 %v7912_v34  ;;  %v4523_v33 = vld [vmem:[#allocation14 + $0x4a8] sm:$0xff] }
 0x67a   :  { %5980 = vmatprep.subr.bf16.mxu1 %v7919_v37  ;;  %6062 = vmatprep.subr.bf16.mxu0 %v7921_v41  ;;  %v7953_v37 = vcombine.high %v4519_v32, %v4523_v33  ;;  %v4531_v41 = vld [vmem:[#allocation14 + $0x4e8] sm:$0xff]  ;;  %v7952_v43 = vcombine.low %v4519_v32, %v4523_v33 }
 0x67d   :  { %5981 = vmatpush1.bf16.msra.mxu1 %v7918_v39  ;;  %6063 = vmatpush1.bf16.msra.mxu0 %v7920_v40  ;;  %v4530_v39 = vld [vmem:[#allocation14 + $0x4e0] sm:$0xff]  ;;  %v4527_v40 = vld [vmem:[#allocation14 + $0x4c8] sm:$0xff] }
 0x67e   :  { %5982 = vmatprep.subr.bf16.mxu1 %v7927_v46  ;;  %6064 = vmatprep.subr.bf16.mxu0 %v7929_v53  ;;  %v7959_v44 = vcombine.high %v4526_v38, %v4530_v39  ;;  %v7961_v46 = vcombine.high %v4527_v40, %v4531_v41  ;;  %v4539_v53 = vld [vmem:[#allocation14 + $0x528] sm:$0xff]  ;;  %v7958_v54 = vcombine.low %v4526_v38, %v4530_v39 }
 0x67f   :  { %v7960_v45 = vcombine.low %v4527_v40, %v4531_v41  ;;  %v4575_v38 = vld [vmem:[#allocation14 + $0x648] sm:$0xff] }
 0x680   :  { %v4579_v39 = vld [vmem:[#allocation14 + $0x668] sm:$0xff] }
 0x681   :  { %5983 = vmatpush1.bf16.msra.mxu1 %v7926_v50  ;;  %6065 = vmatpush1.bf16.msra.mxu0 %v7928_v52  ;;  %v4538_v50 = vld [vmem:[#allocation14 + $0x520] sm:$0xff]  ;;  %v4535_v52 = vld [vmem:[#allocation14 + $0x508] sm:$0xff] }
 0x682   :  { %5993 = vmatprep.subr.bf16.mxu1 %v7935_v55  ;;  %6075 = vmatprep.subr.bf16.mxu0 %v7937_v59  ;;  %v7967_v18 = vcombine.high %v4534_v49, %v4538_v50  ;;  %v7969_v55 = vcombine.high %v4535_v52, %v4539_v53  ;;  %v4547_v59 = vld [vmem:[#allocation14 + $0x568] sm:$0xff] }
 0x717   :  { %v4318_v0 = vpop.f32.mrb[12].mxu1  ;;  %v9696_v1 = vpop.f32.mrb[24].mxu0 }
 0x718   :  { %v4319_v3 = vadd.f32 %v4318_v0, %v3947_v61  ;;  %v4320_v4 = vpop.f32.mrb[13].mxu1  ;;  %v4361_v5 = vpop.f32.mrb[25].mxu0  ;;  %v7966_v61 = vcombine.low %v4534_v49, %v4538_v50  ;;  %v4583_v49 = vld [vmem:[#allocation14 + $0x688] sm:$0xff] }
 0x719   :  { %v4321_v6 = vadd.f32 %v4320_v4, %v3951_v62  ;;  %v4362_v2 = vadd.f32 %v4361_v5, %v3959_v63  ;;  %v4322_v9 = vpop.f32.mrb[14].mxu1  ;;  %v4363_v27 = vpop.f32.mrb[26].mxu0  ;;  %v7968_v62 = vcombine.low %v4535_v52, %v4539_v53  ;;  %v4554_v4 = vld [vmem:[#allocation14 + $0x5a0] sm:$0xff]  ;;  %v4551_v5 = vld [vmem:[#allocation14 + $0x588] sm:$0xff]  ;;  %v8008_v53 = vcombine.low %v4575_v38, %v4579_v39 }
 0x71a   :  { %v4366_v7 = vmax.f32 %v4319_v3, 0.0  ;;  %v4323_v10 = vpop.f32.mrb[15].mxu1  ;;  %v4364_v15 = vpop.f32.mrb[27].mxu0  ;;  %v4550_v3 = vld [vmem:[#allocation14 + $0x580] sm:$0xff]  ;;  %v4587_v50 = vld [vmem:[#allocation14 + $0x6a8] sm:$0xff] }
 0x71b   :  { %v4367_v16 = vmax.f32 %v4321_v6, 0.0  ;;  %v4369_v19 = vmax.f32 %v4362_v2, 0.0  ;;  %v4555_v6 = vld [vmem:[#allocation14 + $0x5a8] sm:$0xff]  ;;  %v7983_v27 = vcombine.high %v4550_v3, %v4554_v4  ;;  %v4558_v10 = vld [vmem:[#allocation14 + $0x5c0] sm:$0xff] }
 0x71c   :  { %v9700_v28 = vpack.c.bf16 %v4366_v7, %v4366_v7  ;;  %v7985_v7 = vcombine.high %v4551_v5, %v4555_v6  ;;  %v4562_v15 = vld [vmem:[#allocation14 + $0x5e0] sm:$0xff]  ;;  %v7984_v21 = vcombine.low %v4551_v5, %v4555_v6 }
 0x71d   :  { %v9698_v26 = vpack.c.bf16 %v4367_v16, %v4367_v16  ;;  %v9704_v34 = vpack.c.bf16 %v4369_v19, %v4369_v19  ;;  %v4559_v16 = vld [vmem:[#allocation14 + $0x5c8] sm:$0xff]  ;;  %v7982_v19 = vcombine.low %v4550_v3, %v4554_v4  ;;  %v7991_v22 = vcombine.high %v4558_v10, %v4562_v15 }
 0x71e   :  { %v7993_v25 = vcombine.high %v4559_v16, %v4563_v17  ;;  %v7990_v32 = vcombine.low %v4558_v10, %v4562_v15  ;;  %v7992_v33 = vcombine.low %v4559_v16, %v4563_v17  ;;  %v4599_v3 = vld [vmem:[#allocation14 + $0x708] sm:$0xff] }
 0x71f   :  { %5984 = vmatprep.mubr.bf16.mxu1 %v9698_v26  ;;  %6066 = vmatprep.mubr.bf16.mxu0 %v9698_v26  ;;  %v4603_v4 = vld [vmem:[#allocation14 + $0x728] sm:$0xff] }
 0x720   :  { %5985 = vmatmul.mubr.bf16.vlgmr.msra.gmra.mrb[16].mxu1 %v9700_v28  ;;  %6067 = vmatmul.mubr.bf16.vlgmr.msra.gmra.mrb[28].mxu0 %v9700_v28  ;;  %v4607_v10 = vld [vmem:[#allocation14 + $0x748] sm:$0xff]  ;;  %v8032_v17 = vcombine.low %v4599_v3, %v4603_v4 }
 0x721   :  { %5994 = vmatpush1.bf16.msra.mxu1 %v7934_v57  ;;  %6076 = vmatpush1.bf16.msra.mxu0 %v7936_v58  ;;  %v4546_v57 = vld [vmem:[#allocation14 + $0x560] sm:$0xff]  ;;  %v4543_v58 = vld [vmem:[#allocation14 + $0x548] sm:$0xff] }
 0x722   :  { %6025 = vmatprep.mubr.bf16.mxu1 %v9704_v34  ;;  %6107 = vmatprep.mubr.bf16.mxu0 %v9704_v34  ;;  %v7975_v63 = vcombine.high %v4542_v56, %v4546_v57  ;;  %v7977_v0 = vcombine.high %v4543_v58, %v4547_v59  ;;  %v7974_v2 = vcombine.low %v4542_v56, %v4546_v57  ;;  %v4591_v56 = vld [vmem:[#allocation14 + $0x6c8] sm:$0xff] }
 0x723   :  { %5995 = vmatprep.subr.bf16.mxu1 %v7943_v30  ;;  %6077 = vmatprep.subr.bf16.mxu0 %v7945_v31  ;;  %v7976_v9 = vcombine.low %v4543_v58, %v4547_v59  ;;  %v4570_v30 = vld [vmem:[#allocation14 + $0x620] sm:$0xff]  ;;  %v4567_v31 = vld [vmem:[#allocation14 + $0x608] sm:$0xff]  ;;  %v8016_v59 = vcombine.low %v4583_v49, %v4587_v50 }
 0x724   :  { %v7998_v40 = vcombine.low %v4566_v29, %v4570_v30  ;;  %v8000_v41 = vcombine.low %v4567_v31, %v4571_v13  ;;  %v4595_v57 = vld [vmem:[#allocation14 + $0x6e8] sm:$0xff] }
 0x725   :  { %5996 = vmatpush1.bf16.msra.mxu1 %v7942_v24  ;;  %6078 = vmatpush1.bf16.msra.mxu0 %v7944_v35  ;;  %v7999_v24 = vcombine.high %v4566_v29, %v4570_v30  ;;  %v8001_v35 = vcombine.high %v4567_v31, %v4571_v13  ;;  %v8024_v6 = vcombine.low %v4591_v56, %v4595_v57  ;;  %v4611_v15 = vld [vmem:[#allocation14 + $0x768] sm:$0xff] }
 0x726   :  { %5997 = vmatprep.subr.bf16.mxu1 %v7951_v36  ;;  %6079 = vmatprep.subr.bf16.mxu0 %v7953_v37  ;;  %v4574_v36 = vld [vmem:[#allocation14 + $0x640] sm:$0xff]  ;;  %v4615_v29 = vld [vmem:[#allocation14 + $0x788] sm:$0xff]  ;;  %v8040_v13 = vcombine.low %v4607_v10, %v4611_v15 }
 0x727   :  { %v4578_v37 = vld [vmem:[#allocation14 + $0x660] sm:$0xff]  ;;  %v4619_v30 = vld [vmem:[#allocation14 + $0x7a8] sm:$0xff] }
 0x728   :  { %v8006_v52 = vcombine.low %v4574_v36, %v4578_v37 }
 0x729   :  { %5998 = vmatpush1.bf16.msra.mxu1 %v7950_v42  ;;  %6080 = vmatpush1.bf16.msra.mxu0 %v7952_v43  ;;  %v8007_v42 = vcombine.high %v4574_v36, %v4578_v37  ;;  %v8009_v43 = vcombine.high %v4575_v38, %v4579_v39  ;;  %v4626_v36 = vld [vmem:[#allocation14 + $0x7e0] sm:$0xff]  ;;  %v4623_v37 = vld [vmem:[#allocation14 + $0x7c8] sm:$0xff] }
 0x72a   :  { %5999 = vmatprep.subr.bf16.mxu1 %v7959_v44  ;;  %6081 = vmatprep.subr.bf16.mxu0 %v7961_v46  ;;  %v4582_v44 = vld [vmem:[#allocation14 + $0x680] sm:$0xff]  ;;  %v4627_v38 = vld [vmem:[#allocation14 + $0x7e8] sm:$0xff] }
 0x72b   :  { %v4586_v46 = vld [vmem:[#allocation14 + $0x6a0] sm:$0xff] }
 0x72c   :  { %v8014_v58 = vcombine.low %v4582_v44, %v4586_v46 }
 0x72d   :  { %6000 = vmatpush1.bf16.msra.mxu1 %v7958_v54  ;;  %6082 = vmatpush1.bf16.msra.mxu0 %v7960_v45  ;;  %v8015_v54 = vcombine.high %v4582_v44, %v4586_v46  ;;  %v8017_v45 = vcombine.high %v4583_v49, %v4587_v50  ;;  %v4376_v44 = vld [vmem:[#allocation14 + $0x10] sm:$0xff]  ;;  %v4377_v46 = vld [vmem:[#allocation14 + $0x18] sm:$0xff] }
 0x72e   :  { %6001 = vmatprep.subr.bf16.mxu1 %v7967_v18  ;;  %6083 = vmatprep.subr.bf16.mxu0 %v7969_v55  ;;  %v4590_v18 = vld [vmem:[#allocation14 + $0x6c0] sm:$0xff]  ;;  %v4381_v49 = vld [vmem:[#allocation14 + $0x38] sm:$0xff] }
 0x72f   :  { %v4594_v55 = vld [vmem:[#allocation14 + $0x6e0] sm:$0xff] }
 0x730   :  { %v8022_v5 = vcombine.low %v4590_v18, %v4594_v55 }
 0x731   :  { %6002 = vmatpush1.bf16.msra.mxu1 %v7966_v61  ;;  %6084 = vmatpush1.bf16.msra.mxu0 %v7968_v62  ;;  %v8023_v61 = vcombine.high %v4590_v18, %v4594_v55  ;;  %v8025_v62 = vcombine.high %v4591_v56, %v4595_v57  ;;  %v4384_v18 = vld [vmem:[#allocation14 + $0x50] sm:$0xff]  ;;  %v4389_v56 = vld [vmem:[#allocation14 + $0x78] sm:$0xff] }
 0x732   :  { %6003 = vmatprep.subr.bf16.mxu1 %v7975_v63  ;;  %6085 = vmatprep.subr.bf16.mxu0 %v7977_v0  ;;  %v4598_v63 = vld [vmem:[#allocation14 + $0x700] sm:$0xff]  ;;  %v4388_v55 = vld [vmem:[#allocation14 + $0x70] sm:$0xff] }
 0x733   :  { %v4602_v0 = vld [vmem:[#allocation14 + $0x720] sm:$0xff] }
 0x734   :  { %v8030_v16 = vcombine.low %v4598_v63, %v4602_v0 }
 0x735   :  { %6004 = vmatpush1.bf16.msra.mxu1 %v7974_v2  ;;  %6086 = vmatpush1.bf16.msra.mxu0 %v7976_v9  ;;  %v8031_v2 = vcombine.high %v4598_v63, %v4602_v0  ;;  %v8033_v9 = vcombine.high %v4599_v3, %v4603_v4  ;;  %v4392_v63 = vld [vmem:[#allocation14 + $0x90] sm:$0xff]  ;;  %v4393_v3 = vld [vmem:[#allocation14 + $0x98] sm:$0xff] }
 0x736   :  { %6005 = vmatprep.subr.bf16.mxu1 %v7983_v27  ;;  %6087 = vmatprep.subr.bf16.mxu0 %v7985_v7  ;;  %v4606_v27 = vld [vmem:[#allocation14 + $0x740] sm:$0xff]  ;;  %v4396_v0 = vld [vmem:[#allocation14 + $0xb0] sm:$0xff]  ;;  %v4397_v4 = vld [vmem:[#allocation14 + $0xb8] sm:$0xff] }
 0x737   :  { %v4610_v7 = vld [vmem:[#allocation14 + $0x760] sm:$0xff] }
 0x738   :  { %v8038_v31 = vcombine.low %v4606_v27, %v4610_v7 }
 0x739   :  { %6006 = vmatpush1.bf16.msra.mxu1 %v7982_v19  ;;  %6088 = vmatpush1.bf16.msra.mxu0 %v7984_v21  ;;  %v8039_v19 = vcombine.high %v4606_v27, %v4610_v7  ;;  %v8041_v21 = vcombine.high %v4607_v10, %v4611_v15  ;;  %v4400_v27 = vld [vmem:[#allocation14 + $0xd0] sm:$0xff]  ;;  %v4401_v10 = vld [vmem:[#allocation14 + $0xd8] sm:$0xff] }
 0x73a   :  { %6007 = vmatprep.subr.bf16.mxu1 %v7991_v22  ;;  %6089 = vmatprep.subr.bf16.mxu0 %v7993_v25  ;;  %v4614_v22 = vld [vmem:[#allocation14 + $0x780] sm:$0xff]  ;;  %v4404_v7 = vld [vmem:[#allocation14 + $0xf0] sm:$0xff]  ;;  %v4405_v15 = vld [vmem:[#allocation14 + $0xf8] sm:$0xff] }
 0x73b   :  { %v4618_v25 = vld [vmem:[#allocation14 + $0x7a0] sm:$0xff] }
 0x73c   :  { %v8046_v39 = vcombine.low %v4614_v22, %v4618_v25 }
 0x73d   :  { %6008 = vmatpush1.bf16.msra.mxu1 %v7990_v32  ;;  %6090 = vmatpush1.bf16.msra.mxu0 %v7992_v33  ;;  %v3955_v32 = vrot.slane %v9688_v60, %v9625_v20  ;;  %v8047_v33 = vcombine.high %v4614_v22, %v4618_v25  ;;  %v4380_v60 = vld [vmem:[#allocation14 + $0x30] sm:$0xff] }
 0x73e   :  { %6009 = vmatprep.subr.bf16.mxu1 %v7999_v24  ;;  %6091 = vmatprep.subr.bf16.mxu0 %v8001_v35  ;;  %v8049_v24 = vcombine.high %v4615_v29, %v4619_v30  ;;  %v4622_v35 = vld [vmem:[#allocation14 + $0x7c0] sm:$0xff]  ;;  %v7810_v57 = vcombine.low %v4376_v44, %v4380_v60  ;;  %v4408_v22 = vld [vmem:[#allocation14 + $0x110] sm:$0xff] }
 0x73f   :  { %v8054_v50 = vcombine.low %v4622_v35, %v4626_v36  ;;  %v4412_v25 = vld [vmem:[#allocation14 + $0x130] sm:$0xff] }
 0x741   :  { %6010 = vmatpush1.bf16.msra.mxu1 %v7998_v40  ;;  %6092 = vmatpush1.bf16.msra.mxu0 %v8000_v41  ;;  %v8048_v40 = vcombine.low %v4615_v29, %v4619_v30  ;;  %v4360_v41 = vadd.f32 %v9696_v1, %v3955_v32  ;;  %v4385_v1 = vld [vmem:[#allocation14 + $0x58] sm:$0xff]  ;;  %v7834_v30 = vcombine.low %v4400_v27, %v4404_v7 }
 0x742   :  { %6011 = vmatprep.subr.bf16.mxu1 %v8007_v42  ;;  %6093 = vmatprep.subr.bf16.mxu0 %v8009_v43  ;;  %v8055_v42 = vcombine.high %v4622_v35, %v4626_v36  ;;  %v8057_v43 = vcombine.high %v4623_v37, %v4627_v38  ;;  %v4413_v29 = vld [vmem:[#allocation14 + $0x138] sm:$0xff] }
 0x743   :  { %v4417_v35 = vld [vmem:[#allocation14 + $0x158] sm:$0xff] }
 0x744   :  { %v4421_v36 = vld [vmem:[#allocation14 + $0x178] sm:$0xff] }
 0x745   :  { %6012 = vmatpush1.bf16.msra.mxu1 %v8006_v52  ;;  %6094 = vmatpush1.bf16.msra.mxu0 %v8008_v53  ;;  %v8056_v52 = vcombine.low %v4623_v37, %v4627_v38  ;;  %v4368_v53 = vmax.f32 %v4360_v41, 0.0  ;;  %v7842_v37 = vcombine.low %v4408_v22, %v4412_v25  ;;  %v4424_v41 = vld [vmem:[#allocation14 + $0x190] sm:$0xff] }
 0x746   :  { %6013 = vmatprep.subr.bf16.mxu1 %v8015_v54  ;;  %6095 = vmatprep.subr.bf16.mxu0 %v8017_v45  ;;  %v7811_v54 = vcombine.high %v4376_v44, %v4380_v60  ;;  %v7813_v45 = vcombine.high %v4377_v46, %v4381_v49  ;;  %v4429_v44 = vld [vmem:[#allocation14 + $0x1b8] sm:$0xff] }
 0x749   :  { %6014 = vmatpush1.bf16.msra.mxu1 %v8014_v58  ;;  %6096 = vmatpush1.bf16.msra.mxu0 %v8016_v59  ;;  %v9713_v58 = vpack.c.bf16 %v4368_v53, %v4368_v53  ;;  %v7812_v59 = vcombine.low %v4377_v46, %v4381_v49  ;;  %v7852_v46 = vcombine.low %v4417_v35, %v4421_v36  ;;  %v4436_v53 = vld [vmem:[#allocation14 + $0x1f0] sm:$0xff] }
 0x74a   :  { %6015 = vmatprep.subr.bf16.mxu1 %v8023_v61  ;;  %6097 = vmatprep.subr.bf16.mxu0 %v8025_v62  ;;  %v7819_v61 = vcombine.high %v4384_v18, %v4388_v55  ;;  %v7821_v62 = vcombine.high %v4385_v1, %v4389_v56 }
 0x74d   :  { %6016 = vmatpush1.bf16.msra.mxu1 %v8022_v5  ;;  %6098 = vmatpush1.bf16.msra.mxu0 %v8024_v6  ;;  %v7818_v5 = vcombine.low %v4384_v18, %v4388_v55  ;;  %v7820_v6 = vcombine.low %v4385_v1, %v4389_v56 }
 0x74e   :  { %6017 = vmatprep.subr.bf16.mxu1 %v8031_v2  ;;  %6099 = vmatprep.subr.bf16.mxu0 %v8033_v9  ;;  %v7827_v2 = vcombine.high %v4392_v63, %v4396_v0  ;;  %v7829_v9 = vcombine.high %v4393_v3, %v4397_v4 }
 0x751   :  { %6018 = vmatpush1.bf16.msra.mxu1 %v8030_v16  ;;  %6100 = vmatpush1.bf16.msra.mxu0 %v8032_v17  ;;  %v7826_v16 = vcombine.low %v4392_v63, %v4396_v0  ;;  %v7828_v17 = vcombine.low %v4393_v3, %v4397_v4 }
 0x752   :  { %6019 = vmatprep.subr.bf16.mxu1 %v8039_v19  ;;  %6101 = vmatprep.subr.bf16.mxu0 %v8041_v21  ;;  %v7835_v19 = vcombine.high %v4400_v27, %v4404_v7  ;;  %v7837_v21 = vcombine.high %v4401_v10, %v4405_v15 }
 0x755   :  { %6020 = vmatpush1.bf16.msra.mxu1 %v8038_v31  ;;  %6102 = vmatpush1.bf16.msra.mxu0 %v8040_v13  ;;  %v7836_v31 = vcombine.low %v4401_v10, %v4405_v15  ;;  %v7843_v13 = vcombine.high %v4408_v22, %v4412_v25 }
 0x756   :  { %6021 = vmatprep.subr.bf16.mxu1 %v8047_v33  ;;  %6103 = vmatprep.subr.bf16.mxu0 %v8049_v24  ;;  %v4416_v33 = vld [vmem:[#allocation14 + $0x150] sm:$0xff] }
 0x757   :  { %v4420_v24 = vld [vmem:[#allocation14 + $0x170] sm:$0xff] }
 0x758   :  { %v7850_v60 = vcombine.low %v4416_v33, %v4420_v24 }
 0x759   :  { %6022 = vmatpush1.bf16.msra.mxu1 %v8046_v39  ;;  %6104 = vmatpush1.bf16.msra.mxu0 %v8048_v40  ;;  %v7851_v39 = vcombine.high %v4416_v33, %v4420_v24  ;;  %v7853_v40 = vcombine.high %v4417_v35, %v4421_v36 }
 0x75a   :  { %6023 = vmatprep.subr.bf16.mxu1 %v8055_v42  ;;  %6105 = vmatprep.subr.bf16.mxu0 %v8057_v43  ;;  %v4428_v42 = vld [vmem:[#allocation14 + $0x1b0] sm:$0xff]  ;;  %v4425_v43 = vld [vmem:[#allocation14 + $0x198] sm:$0xff] }
 0x75b   :  { %v7859_v49 = vcombine.high %v4424_v41, %v4428_v42  ;;  %v7858_v18 = vcombine.low %v4424_v41, %v4428_v42  ;;  %v7860_v55 = vcombine.low %v4425_v43, %v4429_v44 }
 0x75d   :  { %6024 = vmatpush1.bf16.msra.mxu1 %v8054_v50  ;;  %6106 = vmatpush1.bf16.msra.mxu0 %v8056_v52  ;;  %v7861_v50 = vcombine.high %v4425_v43, %v4429_v44  ;;  %v4432_v52 = vld [vmem:[#allocation14 + $0x1d0] sm:$0xff] }
 0x75e   :  { %6116 = vmatprep.subr.bf16.mxu1 %v7811_v54  ;;  %6198 = vmatprep.subr.bf16.mxu0 %v7813_v45  ;;  %v4433_v54 = vld [vmem:[#allocation14 + $0x1d8] sm:$0xff]  ;;  %v7867_v1 = vcombine.high %v4432_v52, %v4436_v53  ;;  %v7866_v63 = vcombine.low %v4432_v52, %v4436_v53 }
 0x75f   :  { %v4437_v45 = vld [vmem:[#allocation14 + $0x1f8] sm:$0xff] }
 0x760   :  { %6026 = vmatmul.mubr.bf16.vlgmr.msra.gmra.mrb[16].mxu1 %v9713_v58  ;;  %6108 = vmatmul.mubr.bf16.vlgmr.msra.gmra.mrb[28].mxu0 %v9713_v58  ;;  %v7869_v56 = vcombine.high %v4433_v54, %v4437_v45  ;;  %v7868_v0 = vcombine.low %v4433_v54, %v4437_v45 }
 0x761   :  { %6117 = vmatpush1.bf16.msra.mxu1 %v7810_v57  ;;  %6148 = vmatprep.mubr.bf16.mxu1 %v9698_v26  ;;  %v4440_v57 = vld [vmem:[#allocation14 + $0x210] sm:$0xff] }
 0x762   :  { %6199 = vmatpush1.bf16.msra.mxu0 %v7812_v59  ;;  %6230 = vmatprep.mubr.bf16.mxu0 %v9698_v26  ;;  %v4409_v26 = vld [vmem:[#allocation14 + $0x118] sm:$0xff]  ;;  %v4444_v59 = vld [vmem:[#allocation14 + $0x230] sm:$0xff] }
 0x763   :  { %6118 = vmatprep.subr.bf16.mxu1 %v7819_v61  ;;  %6200 = vmatprep.subr.bf16.mxu0 %v7821_v62  ;;  %v7845_v32 = vcombine.high %v4409_v26, %v4413_v29  ;;  %v7844_v38 = vcombine.low %v4409_v26, %v4413_v29  ;;  %v4441_v61 = vld [vmem:[#allocation14 + $0x218] sm:$0xff]  ;;  %v7875_v3 = vcombine.high %v4440_v57, %v4444_v59 }
 0x764   :  { %v4445_v62 = vld [vmem:[#allocation14 + $0x238] sm:$0xff]  ;;  %v7874_v27 = vcombine.low %v4440_v57, %v4444_v59 }
 0x765   :  { %6119 = vmatpush1.bf16.msra.mxu1 %v7818_v5  ;;  %v7877_v4 = vcombine.high %v4441_v61, %v4445_v62  ;;  %v4448_v5 = vld [vmem:[#allocation14 + $0x250] sm:$0xff]  ;;  %v7876_v7 = vcombine.low %v4441_v61, %v4445_v62 }
 0x766   :  { %6201 = vmatpush1.bf16.msra.mxu0 %v7820_v6  ;;  %6120 = vmatprep.subr.bf16.mxu1 %v7827_v2  ;;  %v4452_v6 = vld [vmem:[#allocation14 + $0x270] sm:$0xff]  ;;  %v4449_v2 = vld [vmem:[#allocation14 + $0x258] sm:$0xff] }
 0x767   :  { %6202 = vmatprep.subr.bf16.mxu0 %v7829_v9  ;;  %v4453_v9 = vld [vmem:[#allocation14 + $0x278] sm:$0xff]  ;;  %v7883_v10 = vcombine.high %v4448_v5, %v4452_v6  ;;  %v7882_v22 = vcombine.low %v4448_v5, %v4452_v6 }
 0x768   :  { %v7885_v15 = vcombine.high %v4449_v2, %v4453_v9  ;;  %v7884_v25 = vcombine.low %v4449_v2, %v4453_v9 }
 0x769   :  { %6121 = vmatpush1.bf16.msra.mxu1 %v7826_v16  ;;  %v4456_v16 = vld [vmem:[#allocation14 + $0x290] sm:$0xff] }
 0x76a   :  { %6203 = vmatpush1.bf16.msra.mxu0 %v7828_v17  ;;  %6122 = vmatprep.subr.bf16.mxu1 %v7835_v19  ;;  %v4460_v17 = vld [vmem:[#allocation14 + $0x2b0] sm:$0xff]  ;;  %v4457_v19 = vld [vmem:[#allocation14 + $0x298] sm:$0xff] }
 0x76b   :  { %6204 = vmatprep.subr.bf16.mxu0 %v7837_v21  ;;  %v4461_v21 = vld [vmem:[#allocation14 + $0x2b8] sm:$0xff]  ;;  %v7891_v26 = vcombine.high %v4456_v16, %v4460_v17  ;;  %v7890_v33 = vcombine.low %v4456_v16, %v4460_v17 }
 0x76c   :  { %v7893_v29 = vcombine.high %v4457_v19, %v4461_v21  ;;  %v7892_v24 = vcombine.low %v4457_v19, %v4461_v21 }
 0x76d   :  { %6123 = vmatpush1.bf16.msra.mxu1 %v7834_v30  ;;  %v4464_v30 = vld [vmem:[#allocation14 + $0x2d0] sm:$0xff] }
 0x76e   :  { %6205 = vmatpush1.bf16.msra.mxu0 %v7836_v31  ;;  %6124 = vmatprep.subr.bf16.mxu1 %v7843_v13  ;;  %v4468_v31 = vld [vmem:[#allocation14 + $0x2f0] sm:$0xff]  ;;  %v4465_v13 = vld [vmem:[#allocation14 + $0x2d8] sm:$0xff] }
 0x76f   :  { %6206 = vmatprep.subr.bf16.mxu0 %v7845_v32  ;;  %v4469_v32 = vld [vmem:[#allocation14 + $0x2f8] sm:$0xff]  ;;  %v7899_v35 = vcombine.high %v4464_v30, %v4468_v31  ;;  %v7898_v41 = vcombine.low %v4464_v30, %v4468_v31 }
 0x770   :  { %v7901_v36 = vcombine.high %v4465_v13, %v4469_v32  ;;  %v7900_v42 = vcombine.low %v4465_v13, %v4469_v32  ;;  %v4517_v30 = vld [vmem:[#allocation14 + $0x478] sm:$0xff]  ;;  %v4520_v32 = vld [vmem:[#allocation14 + $0x490] sm:$0xff] }
 0x771   :  { %6125 = vmatpush1.bf16.msra.mxu1 %v7842_v37  ;;  %v4472_v37 = vld [vmem:[#allocation14 + $0x310] sm:$0xff] }
 0x772   :  { %6207 = vmatpush1.bf16.msra.mxu0 %v7844_v38  ;;  %6126 = vmatprep.subr.bf16.mxu1 %v7851_v39  ;;  %v4476_v38 = vld [vmem:[#allocation14 + $0x330] sm:$0xff]  ;;  %v4473_v39 = vld [vmem:[#allocation14 + $0x318] sm:$0xff] }
 0x773   :  { %6208 = vmatprep.subr.bf16.mxu0 %v7853_v40  ;;  %v4477_v40 = vld [vmem:[#allocation14 + $0x338] sm:$0xff]  ;;  %v7907_v43 = vcombine.high %v4472_v37, %v4476_v38  ;;  %v7906_v52 = vcombine.low %v4472_v37, %v4476_v38 }
 0x774   :  { %v7909_v44 = vcombine.high %v4473_v39, %v4477_v40  ;;  %v7908_v53 = vcombine.low %v4473_v39, %v4477_v40 }
 0x775   :  { %6127 = vmatpush1.bf16.msra.mxu1 %v7850_v60  ;;  %v4480_v60 = vld [vmem:[#allocation14 + $0x350] sm:$0xff] }
 0x776   :  { %6209 = vmatpush1.bf16.msra.mxu0 %v7852_v46  ;;  %6128 = vmatprep.subr.bf16.mxu1 %v7859_v49  ;;  %v4484_v46 = vld [vmem:[#allocation14 + $0x370] sm:$0xff]  ;;  %v4481_v49 = vld [vmem:[#allocation14 + $0x358] sm:$0xff] }
 0x777   :  { %6210 = vmatprep.subr.bf16.mxu0 %v7861_v50  ;;  %v4485_v50 = vld [vmem:[#allocation14 + $0x378] sm:$0xff]  ;;  %v7915_v54 = vcombine.high %v4480_v60, %v4484_v46  ;;  %v7914_v57 = vcombine.low %v4480_v60, %v4484_v46 }
 0x778   :  { %v7917_v45 = vcombine.high %v4481_v49, %v4485_v50  ;;  %v7916_v59 = vcombine.low %v4481_v49, %v4485_v50  ;;  %v4536_v50 = vld [vmem:[#allocation14 + $0x510] sm:$0xff] }
 0x779   :  { %6129 = vmatpush1.bf16.msra.mxu1 %v7858_v18  ;;  %v4488_v18 = vld [vmem:[#allocation14 + $0x390] sm:$0xff] }
 0x77a   :  { %6211 = vmatpush1.bf16.msra.mxu0 %v7860_v55  ;;  %6130 = vmatprep.subr.bf16.mxu1 %v7867_v1  ;;  %v4492_v55 = vld [vmem:[#allocation14 + $0x3b0] sm:$0xff]  ;;  %v4489_v1 = vld [vmem:[#allocation14 + $0x398] sm:$0xff] }
 0x77b   :  { %6212 = vmatprep.subr.bf16.mxu0 %v7869_v56  ;;  %v4493_v56 = vld [vmem:[#allocation14 + $0x3b8] sm:$0xff]  ;;  %v7923_v61 = vcombine.high %v4488_v18, %v4492_v55  ;;  %v7922_v5 = vcombine.low %v4488_v18, %v4492_v55 }
 0x77c   :  { %v7925_v62 = vcombine.high %v4489_v1, %v4493_v56  ;;  %v7924_v6 = vcombine.low %v4489_v1, %v4493_v56  ;;  %v4544_v1 = vld [vmem:[#allocation14 + $0x550] sm:$0xff] }
 0x77d   :  { %6131 = vmatpush1.bf16.msra.mxu1 %v7866_v63  ;;  %v4496_v63 = vld [vmem:[#allocation14 + $0x3d0] sm:$0xff] }
 0x77e   :  { %6213 = vmatpush1.bf16.msra.mxu0 %v7868_v0  ;;  %6132 = vmatprep.subr.bf16.mxu1 %v7875_v3  ;;  %v4500_v0 = vld [vmem:[#allocation14 + $0x3f0] sm:$0xff]  ;;  %v4497_v3 = vld [vmem:[#allocation14 + $0x3d8] sm:$0xff] }
 0x77f   :  { %6214 = vmatprep.subr.bf16.mxu0 %v7877_v4  ;;  %v4501_v4 = vld [vmem:[#allocation14 + $0x3f8] sm:$0xff]  ;;  %v7931_v2 = vcombine.high %v4496_v63, %v4500_v0  ;;  %v7930_v16 = vcombine.low %v4496_v63, %v4500_v0  ;;  %v4548_v56 = vld [vmem:[#allocation14 + $0x570] sm:$0xff] }
 0x780   :  { %v7933_v9 = vcombine.high %v4497_v3, %v4501_v4  ;;  %v7932_v17 = vcombine.low %v4497_v3, %v4501_v4  ;;  %v7979_v63 = vcombine.high %v4544_v1, %v4548_v56  ;;  %v4552_v3 = vld [vmem:[#allocation14 + $0x590] sm:$0xff] }
 0x781   :  { %6133 = vmatpush1.bf16.msra.mxu1 %v7874_v27  ;;  %v4504_v27 = vld [vmem:[#allocation14 + $0x410] sm:$0xff] }
 0x782   :  { %6215 = vmatpush1.bf16.msra.mxu0 %v7876_v7  ;;  %6134 = vmatprep.subr.bf16.mxu1 %v7883_v10  ;;  %v4508_v7 = vld [vmem:[#allocation14 + $0x430] sm:$0xff]  ;;  %v4505_v10 = vld [vmem:[#allocation14 + $0x418] sm:$0xff] }
 0x783   :  { %6216 = vmatprep.subr.bf16.mxu0 %v7885_v15  ;;  %v4509_v15 = vld [vmem:[#allocation14 + $0x438] sm:$0xff]  ;;  %v7939_v19 = vcombine.high %v4504_v27, %v4508_v7  ;;  %v4556_v4 = vld [vmem:[#allocation14 + $0x5b0] sm:$0xff] }
 0x784   :  { %v7941_v21 = vcombine.high %v4505_v10, %v4509_v15  ;;  %v7940_v31 = vcombine.low %v4505_v10, %v4509_v15  ;;  %v4560_v10 = vld [vmem:[#allocation14 + $0x5d0] sm:$0xff] }
 0x785   :  { %6135 = vmatpush1.bf16.msra.mxu1 %v7882_v22  ;;  %v4512_v22 = vld [vmem:[#allocation14 + $0x450] sm:$0xff] }
 0x786   :  { %6217 = vmatpush1.bf16.msra.mxu0 %v7884_v25  ;;  %6136 = vmatprep.subr.bf16.mxu1 %v7891_v26  ;;  %v4516_v25 = vld [vmem:[#allocation14 + $0x470] sm:$0xff]  ;;  %v7938_v26 = vcombine.low %v4504_v27, %v4508_v7  ;;  %v7987_v27 = vcombine.high %v4552_v3, %v4556_v4 }
 0x787   :  { %6218 = vmatprep.subr.bf16.mxu0 %v7893_v29  ;;  %v4513_v29 = vld [vmem:[#allocation14 + $0x458] sm:$0xff]  ;;  %v7947_v13 = vcombine.high %v4512_v22, %v4516_v25  ;;  %v7946_v37 = vcombine.low %v4512_v22, %v4516_v25  ;;  %v4564_v15 = vld [vmem:[#allocation14 + $0x5f0] sm:$0xff] }
 0x788   :  { %v7948_v38 = vcombine.low %v4513_v29, %v4517_v30  ;;  %v7995_v22 = vcombine.high %v4560_v10, %v4564_v15 }
 0x789   :  { %6137 = vmatpush1.bf16.msra.mxu1 %v7890_v33  ;;  %v4524_v33 = vld [vmem:[#allocation14 + $0x4b0] sm:$0xff] }
 0x78a   :  { %6219 = vmatpush1.bf16.msra.mxu0 %v7892_v24  ;;  %6138 = vmatprep.subr.bf16.mxu1 %v7899_v35  ;;  %v7949_v24 = vcombine.high %v4513_v29, %v4517_v30  ;;  %v4521_v35 = vld [vmem:[#allocation14 + $0x498] sm:$0xff]  ;;  %v7955_v39 = vcombine.high %v4520_v32, %v4524_v33  ;;  %v7954_v60 = vcombine.low %v4520_v32, %v4524_v33  ;;  %v4572_v29 = vld [vmem:[#allocation14 + $0x630] sm:$0xff] }
 0x78b   :  { %6220 = vmatprep.subr.bf16.mxu0 %v7901_v36  ;;  %v4525_v36 = vld [vmem:[#allocation14 + $0x4b8] sm:$0xff] }
 0x78c   :  { %v7957_v40 = vcombine.high %v4521_v35, %v4525_v36  ;;  %v4569_v30 = vld [vmem:[#allocation14 + $0x618] sm:$0xff] }
 0x78d   :  { %6139 = vmatpush1.bf16.msra.mxu1 %v7898_v41  ;;  %v4528_v41 = vld [vmem:[#allocation14 + $0x4d0] sm:$0xff] }
 0x78e   :  { %6221 = vmatpush1.bf16.msra.mxu0 %v7900_v42  ;;  %6140 = vmatprep.subr.bf16.mxu1 %v7907_v43  ;;  %v4532_v42 = vld [vmem:[#allocation14 + $0x4f0] sm:$0xff]  ;;  %v4529_v43 = vld [vmem:[#allocation14 + $0x4d8] sm:$0xff] }
 0x78f   :  { %6222 = vmatprep.subr.bf16.mxu0 %v7909_v44  ;;  %v4533_v44 = vld [vmem:[#allocation14 + $0x4f8] sm:$0xff]  ;;  %v7963_v46 = vcombine.high %v4528_v41, %v4532_v42 }
 0x790   :  { %v7965_v49 = vcombine.high %v4529_v43, %v4533_v44 }
 0x791   :  { %6141 = vmatpush1.bf16.msra.mxu1 %v7906_v52  ;;  %v4540_v52 = vld [vmem:[#allocation14 + $0x530] sm:$0xff] }
 0x792   :  { %6223 = vmatpush1.bf16.msra.mxu0 %v7908_v53  ;;  %6142 = vmatprep.subr.bf16.mxu1 %v7915_v54  ;;  %v4537_v53 = vld [vmem:[#allocation14 + $0x518] sm:$0xff]  ;;  %v7971_v18 = vcombine.high %v4536_v50, %v4540_v52 }
 0x793   :  { %6224 = vmatprep.subr.bf16.mxu0 %v7917_v45  ;;  %v4541_v54 = vld [vmem:[#allocation14 + $0x538] sm:$0xff]  ;;  %v7964_v45 = vcombine.low %v4529_v43, %v4533_v44  ;;  %v4584_v43 = vld [vmem:[#allocation14 + $0x690] sm:$0xff] }
 0x794   :  { %v7973_v55 = vcombine.high %v4537_v53, %v4541_v54  ;;  %v4588_v44 = vld [vmem:[#allocation14 + $0x6b0] sm:$0xff] }
 0x795   :  { %6143 = vmatpush1.bf16.msra.mxu1 %v7914_v57  ;;  %v4545_v57 = vld [vmem:[#allocation14 + $0x558] sm:$0xff] }
 0x796   :  { %6225 = vmatpush1.bf16.msra.mxu0 %v7916_v59  ;;  %6144 = vmatprep.subr.bf16.mxu1 %v7923_v61  ;;  %v4549_v59 = vld [vmem:[#allocation14 + $0x578] sm:$0xff]  ;;  %v7970_v61 = vcombine.low %v4536_v50, %v4540_v52  ;;  %v8019_v50 = vcombine.high %v4584_v43, %v4588_v44 }
 0x797   :  { %6226 = vmatprep.subr.bf16.mxu0 %v7925_v62  ;;  %v7972_v62 = vcombine.low %v4537_v53, %v4541_v54  ;;  %v7981_v0 = vcombine.high %v4545_v57, %v4549_v59  ;;  %v4592_v53 = vld [vmem:[#allocation14 + $0x6d0] sm:$0xff] }
 0x798   :  { %v4596_v54 = vld [vmem:[#allocation14 + $0x6f0] sm:$0xff] }
 0x799   :  { %6145 = vmatpush1.bf16.msra.mxu1 %v7922_v5  ;;  %v4553_v5 = vld [vmem:[#allocation14 + $0x598] sm:$0xff] }
 0x79a   :  { %6227 = vmatpush1.bf16.msra.mxu0 %v7924_v6  ;;  %6146 = vmatprep.subr.bf16.mxu1 %v7931_v2  ;;  %v4557_v6 = vld [vmem:[#allocation14 + $0x5b8] sm:$0xff]  ;;  %v7978_v2 = vcombine.low %v4544_v1, %v4548_v56  ;;  %v8027_v1 = vcombine.high %v4592_v53, %v4596_v54 }
 0x79b   :  { %6228 = vmatprep.subr.bf16.mxu0 %v7933_v9  ;;  %v7980_v9 = vcombine.low %v4545_v57, %v4549_v59  ;;  %v7989_v7 = vcombine.high %v4553_v5, %v4557_v6  ;;  %v4600_v57 = vld [vmem:[#allocation14 + $0x710] sm:$0xff] }
 0x79c   :  { %v4604_v59 = vld [vmem:[#allocation14 + $0x730] sm:$0xff] }
 0x79d   :  { %6147 = vmatpush1.bf16.msra.mxu1 %v7930_v16  ;;  %v4561_v16 = vld [vmem:[#allocation14 + $0x5d8] sm:$0xff] }
 0x79e   :  { %6229 = vmatpush1.bf16.msra.mxu0 %v7932_v17  ;;  %6157 = vmatprep.subr.bf16.mxu1 %v7939_v19  ;;  %v4565_v17 = vld [vmem:[#allocation14 + $0x5f8] sm:$0xff]  ;;  %v7986_v19 = vcombine.low %v4552_v3, %v4556_v4  ;;  %v8035_v3 = vcombine.high %v4600_v57, %v4604_v59 }
 0x79f   :  { %6239 = vmatprep.subr.bf16.mxu0 %v7941_v21  ;;  %v7988_v21 = vcombine.low %v4553_v5, %v4557_v6  ;;  %v7997_v25 = vcombine.high %v4561_v16, %v4565_v17  ;;  %v7996_v32 = vcombine.low %v4561_v16, %v4565_v17  ;;  %v4608_v5 = vld [vmem:[#allocation14 + $0x750] sm:$0xff] }
 0x7a0   :  { %6149 = vmatmul.mubr.bf16.vlgmr.msra.gmra.mrb[20].mxu1 %v9700_v28  ;;  %v4612_v6 = vld [vmem:[#allocation14 + $0x770] sm:$0xff] }
 0x7a1   :  { %6231 = vmatmul.mubr.bf16.vlgmr.msra.gmra.mrb[32].mxu0 %v9700_v28  ;;  %6158 = vmatpush1.bf16.msra.mxu1 %v7938_v26  ;;  %v7956_v28 = vcombine.low %v4521_v35, %v4525_v36  ;;  %v4568_v26 = vld [vmem:[#allocation14 + $0x610] sm:$0xff] }
 0x7a2   :  { %6189 = vmatprep.mubr.bf16.mxu1 %v9704_v34  ;;  %6240 = vmatpush1.bf16.msra.mxu0 %v7940_v31  ;;  %v4573_v31 = vld [vmem:[#allocation14 + $0x638] sm:$0xff]  ;;  %v8003_v33 = vcombine.high %v4568_v26, %v4572_v29  ;;  %v4576_v35 = vld [vmem:[#allocation14 + $0x650] sm:$0xff] }
 0x7a3   :  { %6271 = vmatprep.mubr.bf16.mxu0 %v9704_v34  ;;  %6159 = vmatprep.subr.bf16.mxu1 %v7947_v13  ;;  %v7962_v34 = vcombine.low %v4528_v41, %v4532_v42  ;;  %v7994_v13 = vcombine.low %v4560_v10, %v4564_v15  ;;  %v4580_v36 = vld [vmem:[#allocation14 + $0x670] sm:$0xff]  ;;  %v8043_v10 = vcombine.high %v4608_v5, %v4612_v6 }
 0x7a4   :  { %6241 = vmatprep.subr.bf16.mxu0 %v7949_v24  ;;  %v8005_v24 = vcombine.high %v4569_v30, %v4573_v31  ;;  %v8011_v41 = vcombine.high %v4576_v35, %v4580_v36  ;;  %v4616_v16 = vld [vmem:[#allocation14 + $0x790] sm:$0xff] }
 0x7a5   :  { %6160 = vmatpush1.bf16.msra.mxu1 %v7946_v37  ;;  %v4577_v37 = vld [vmem:[#allocation14 + $0x658] sm:$0xff]  ;;  %v4620_v17 = vld [vmem:[#allocation14 + $0x7b0] sm:$0xff] }
 0x7a6   :  { %6242 = vmatpush1.bf16.msra.mxu0 %v7948_v38  ;;  %6161 = vmatprep.subr.bf16.mxu1 %v7955_v39  ;;  %v4581_v38 = vld [vmem:[#allocation14 + $0x678] sm:$0xff]  ;;  %v8002_v39 = vcombine.low %v4568_v26, %v4572_v29  ;;  %v8051_v26 = vcombine.high %v4616_v16, %v4620_v17 }
 0x7a7   :  { %6243 = vmatprep.subr.bf16.mxu0 %v7957_v40  ;;  %v8004_v40 = vcombine.low %v4569_v30, %v4573_v31  ;;  %v8013_v42 = vcombine.high %v4577_v37, %v4581_v38  ;;  %v4624_v30 = vld [vmem:[#allocation14 + $0x7d0] sm:$0xff] }
 0x7a8   :  { %v4628_v31 = vld [vmem:[#allocation14 + $0x7f0] sm:$0xff] }
 0x7a9   :  { %6162 = vmatpush1.bf16.msra.mxu1 %v7954_v60  ;;  %v4585_v60 = vld [vmem:[#allocation14 + $0x698] sm:$0xff] }
 0x7aa   :  { %6244 = vmatpush1.bf16.msra.mxu0 %v7956_v28  ;;  %6163 = vmatprep.subr.bf16.mxu1 %v7963_v46  ;;  %v4589_v28 = vld [vmem:[#allocation14 + $0x6b8] sm:$0xff]  ;;  %v8010_v46 = vcombine.low %v4576_v35, %v4580_v36  ;;  %v8059_v35 = vcombine.high %v4624_v30, %v4628_v31 }
 0x7ab   :  { %6245 = vmatprep.subr.bf16.mxu0 %v7965_v49  ;;  %v8012_v49 = vcombine.low %v4577_v37, %v4581_v38  ;;  %v8021_v52 = vcombine.high %v4585_v60, %v4589_v28  ;;  %v8058_v37 = vcombine.low %v4624_v30, %v4628_v31 }
 0x7ad   :  { %6164 = vmatpush1.bf16.msra.mxu1 %v7962_v34  ;;  %v4593_v34 = vld [vmem:[#allocation14 + $0x6d8] sm:$0xff] }
 0x7ae   :  { %6246 = vmatpush1.bf16.msra.mxu0 %v7964_v45  ;;  %6165 = vmatprep.subr.bf16.mxu1 %v7971_v18  ;;  %v4597_v45 = vld [vmem:[#allocation14 + $0x6f8] sm:$0xff]  ;;  %v8018_v18 = vcombine.low %v4584_v43, %v4588_v44  ;;  %v8927_v43 = vld [vmem:[#allocation16 + $0x24] ss:$8 sps:$4 sm:$0xff]   ;;  %v8925_v44 = vld [vmem:[#allocation16 + $0x20] ss:$8 sps:$4 sm:$0xff]  }
 0x7af   :  { %6247 = vmatprep.subr.bf16.mxu0 %v7973_v55  ;;  %v8020_v55 = vcombine.low %v4585_v60, %v4589_v28  ;;  %v8029_v56 = vcombine.high %v4593_v34, %v4597_v45  ;;  %v8930_v60 = vld [vmem:[#allocation16 + $0x34] ss:$8 sps:$4 sm:$0xff]   ;;  %v8928_v28 = vld [vmem:[#allocation16 + $0x30] ss:$8 sps:$4 sm:$0xff]  }
 0x7b1   :  { %6166 = vmatpush1.bf16.msra.mxu1 %v7970_v61  ;;  %v4601_v61 = vld [vmem:[#allocation14 + $0x718] sm:$0xff] }
 0x7b2   :  { %6248 = vmatpush1.bf16.msra.mxu0 %v7972_v62  ;;  %6167 = vmatprep.subr.bf16.mxu1 %v7979_v63  ;;  %v4605_v62 = vld [vmem:[#allocation14 + $0x738] sm:$0xff]  ;;  %v8026_v63 = vcombine.low %v4592_v53, %v4596_v54  ;;  %v8937_v53 = vld [vmem:[#allocation16 + $0x60] ss:$8 sps:$4 sm:$0xff]  }
 0x7b3   :  { %6249 = vmatprep.subr.bf16.mxu0 %v7981_v0  ;;  %v8028_v0 = vcombine.low %v4593_v34, %v4597_v45  ;;  %v8037_v4 = vcombine.high %v4601_v61, %v4605_v62  ;;  %v8942_v54 = vld [vmem:[#allocation16 + $0x74] ss:$8 sps:$4 sm:$0xff]   ;;  %v8940_v34 = vld [vmem:[#allocation16 + $0x70] ss:$8 sps:$4 sm:$0xff]   ;;  %v8945_v45 = vld [vmem:[#allocation16 + $0x84] ss:$8 sps:$4 sm:$0xff]  }
 0x7b5   :  { %6168 = vmatpush1.bf16.msra.mxu1 %v7978_v2  ;;  %v4609_v2 = vld [vmem:[#allocation14 + $0x758] sm:$0xff] }
 0x7b6   :  { %6250 = vmatpush1.bf16.msra.mxu0 %v7980_v9  ;;  %6169 = vmatprep.subr.bf16.mxu1 %v7987_v27  ;;  %v4613_v9 = vld [vmem:[#allocation14 + $0x778] sm:$0xff]  ;;  %v8034_v27 = vcombine.low %v4600_v57, %v4604_v59  ;;  %v8949_v57 = vld [vmem:[#allocation16 + $0xa0] ss:$8 sps:$4 sm:$0xff]  }
 0x7b7   :  { %6251 = vmatprep.subr.bf16.mxu0 %v7989_v7  ;;  %v8036_v7 = vcombine.low %v4601_v61, %v4605_v62  ;;  %v8045_v15 = vcombine.high %v4609_v2, %v4613_v9  ;;  %v8954_v59 = vld [vmem:[#allocation16 + $0xb4] ss:$8 sps:$4 sm:$0xff]   ;;  %v8952_v61 = vld [vmem:[#allocation16 + $0xb0] ss:$8 sps:$4 sm:$0xff]   ;;  %v8957_v62 = vld [vmem:[#allocation16 + $0xc4] ss:$8 sps:$4 sm:$0xff]  }
 0x7b9   :  { %6170 = vmatpush1.bf16.msra.mxu1 %v7986_v19  ;;  %v4617_v19 = vld [vmem:[#allocation14 + $0x798] sm:$0xff] }
 0x7ba   :  { %6252 = vmatpush1.bf16.msra.mxu0 %v7988_v21  ;;  %6171 = vmatprep.subr.bf16.mxu1 %v7995_v22  ;;  %v4621_v21 = vld [vmem:[#allocation14 + $0x7b8] sm:$0xff]  ;;  %v8042_v22 = vcombine.low %v4608_v5, %v4612_v6  ;;  %v8961_v5 = vld [vmem:[#allocation16 + $0xe0] ss:$8 sps:$4 sm:$0xff]  }
 0x7bb   :  { %6253 = vmatprep.subr.bf16.mxu0 %v7997_v25  ;;  %v8044_v25 = vcombine.low %v4609_v2, %v4613_v9  ;;  %v8053_v29 = vcombine.high %v4617_v19, %v4621_v21  ;;  %v8966_v6 = vld [vmem:[#allocation16 + $0xf4] ss:$8 sps:$4 sm:$0xff]   ;;  %v8964_v2 = vld [vmem:[#allocation16 + $0xf0] ss:$8 sps:$4 sm:$0xff]   ;;  %v8969_v9 = vld [vmem:[#allocation16 + $0x104] ss:$8 sps:$4 sm:$0xff]  }
 0x7bd   :  { %6172 = vmatpush1.bf16.msra.mxu1 %v7994_v13  ;;  %v4625_v13 = vld [vmem:[#allocation14 + $0x7d8] sm:$0xff] }
 0x7be   :  { %6254 = vmatpush1.bf16.msra.mxu0 %v7996_v32  ;;  %6173 = vmatprep.subr.bf16.mxu1 %v8003_v33  ;;  %v4629_v32 = vld [vmem:[#allocation14 + $0x7f8] sm:$0xff]  ;;  %v8050_v33 = vcombine.low %v4616_v16, %v4620_v17 }
 0x7bf   :  { %6255 = vmatprep.subr.bf16.mxu0 %v8005_v24  ;;  %v8052_v24 = vcombine.low %v4617_v19, %v4621_v21  ;;  %v8061_v36 = vcombine.high %v4625_v13, %v4629_v32  ;;  %v8060_v38 = vcombine.low %v4625_v13, %v4629_v32 }
 0x7c1   :  { %6174 = vmatpush1.bf16.msra.mxu1 %v8002_v39  ;;  %v8921_v39 = vld [vmem:[#allocation16 + $0x4] ss:$8 sps:$4 sm:$0xff]  }
 0x7c2   :  { %6256 = vmatpush1.bf16.msra.mxu0 %v8004_v40  ;;  %6175 = vmatprep.subr.bf16.mxu1 %v8011_v41  ;;  %v8919_v40 = vld [vmem:[#allocation16] ss:$8 sps:$4 sm:$0xff]   ;;  %v8924_v41 = vld [vmem:[#allocation16 + $0x14] ss:$8 sps:$4 sm:$0xff]  }
 0x7c3   :  { %6257 = vmatprep.subr.bf16.mxu0 %v8013_v42  ;;  %v8922_v42 = vld [vmem:[#allocation16 + $0x10] ss:$8 sps:$4 sm:$0xff]  }
 0x7c5   :  { %6176 = vmatpush1.bf16.msra.mxu1 %v8010_v46  ;;  %v8933_v46 = vld [vmem:[#allocation16 + $0x44] ss:$8 sps:$4 sm:$0xff]  }
 0x7c6   :  { %6258 = vmatpush1.bf16.msra.mxu0 %v8012_v49  ;;  %6177 = vmatprep.subr.bf16.mxu1 %v8019_v50  ;;  %v8931_v49 = vld [vmem:[#allocation16 + $0x40] ss:$8 sps:$4 sm:$0xff]   ;;  %v8936_v50 = vld [vmem:[#allocation16 + $0x54] ss:$8 sps:$4 sm:$0xff]  }
 0x7c7   :  { %6259 = vmatprep.subr.bf16.mxu0 %v8021_v52  ;;  %v8934_v52 = vld [vmem:[#allocation16 + $0x50] ss:$8 sps:$4 sm:$0xff]  }
 0x7c9   :  { %6178 = vmatpush1.bf16.msra.mxu1 %v8018_v18  ;;  %v8943_v18 = vld [vmem:[#allocation16 + $0x80] ss:$8 sps:$4 sm:$0xff]  }
 0x7ca   :  { %6260 = vmatpush1.bf16.msra.mxu0 %v8020_v55  ;;  %6179 = vmatprep.subr.bf16.mxu1 %v8027_v1  ;;  %v8948_v55 = vld [vmem:[#allocation16 + $0x94] ss:$8 sps:$4 sm:$0xff]   ;;  %v8946_v1 = vld [vmem:[#allocation16 + $0x90] ss:$8 sps:$4 sm:$0xff]  }
 0x7cb   :  { %6261 = vmatprep.subr.bf16.mxu0 %v8029_v56  ;;  %v8951_v56 = vld [vmem:[#allocation16 + $0xa4] ss:$8 sps:$4 sm:$0xff]  }
 0x7cd   :  { %6180 = vmatpush1.bf16.msra.mxu1 %v8026_v63  ;;  %v8955_v63 = vld [vmem:[#allocation16 + $0xc0] ss:$8 sps:$4 sm:$0xff]  }
 0x7ce   :  { %6262 = vmatpush1.bf16.msra.mxu0 %v8028_v0  ;;  %6181 = vmatprep.subr.bf16.mxu1 %v8035_v3  ;;  %v8960_v0 = vld [vmem:[#allocation16 + $0xd4] ss:$8 sps:$4 sm:$0xff]   ;;  %v8958_v3 = vld [vmem:[#allocation16 + $0xd0] ss:$8 sps:$4 sm:$0xff]  }
 0x7cf   :  { %6263 = vmatprep.subr.bf16.mxu0 %v8037_v4  ;;  %v8963_v4 = vld [vmem:[#allocation16 + $0xe4] ss:$8 sps:$4 sm:$0xff]  }
 0x7d1   :  { %6182 = vmatpush1.bf16.msra.mxu1 %v8034_v27  ;;  %v9728_v27 = vld [vmem:[%s9788_s15] sm:$0xff] }
 0x7d2   :  { %6264 = vmatpush1.bf16.msra.mxu0 %v8036_v7  ;;  %6183 = vmatprep.subr.bf16.mxu1 %v8043_v10  ;;  %v4635_v7 = vrot.slane %v9728_v27, %v9610_v12  ;;  %v4639_v10 = vrot.slane %v9728_v27, %v9618_v14 }
 0x7d3   :  { %6265 = vmatprep.subr.bf16.mxu0 %v8045_v15  ;;  %v4647_v15 = vrot.slane %v9728_v27, %v9628_v23 }
 0x7d5   :  { %6184 = vmatpush1.bf16.msra.mxu1 %v8042_v22 }
 0x7d6   :  { %6266 = vmatpush1.bf16.msra.mxu0 %v8044_v25  ;;  %6185 = vmatprep.subr.bf16.mxu1 %v8051_v26 }
 0x7d7   :  { %6267 = vmatprep.subr.bf16.mxu0 %v8053_v29 }
 0x7d9   :  { %6186 = vmatpush1.bf16.msra.mxu1 %v8050_v33 }
 0x7da   :  { %6268 = vmatpush1.bf16.msra.mxu0 %v8052_v24  ;;  %6187 = vmatprep.subr.bf16.mxu1 %v8059_v35 }
 0x7db   :  { %6269 = vmatprep.subr.bf16.mxu0 %v8061_v36  ;;  %v8967_v36 = vld [vmem:[#allocation16 + $0x100] ss:$8 sps:$4 sm:$0xff]  }
 0x7dd   :  { %6188 = vmatpush1.bf16.msra.mxu1 %v8058_v37 }
 0x7de   :  { %6270 = vmatpush1.bf16.msra.mxu0 %v8060_v38  ;;  %7076 = vmatprep.subr.bf16.mxu1 %v8921_v39  ;;  %v8972_v38 = vld [vmem:[#allocation16 + $0x114] ss:$8 sps:$4 sm:$0xff]   ;;  %v8970_v39 = vld [vmem:[#allocation16 + $0x110] ss:$8 sps:$4 sm:$0xff]  }
 0x7e0   :  { %6190 = vmatmul.mubr.bf16.vlgmr.msra.gmra.mrb[20].mxu1 %v9713_v58 }
 0x7e1   :  { %6272 = vmatmul.mubr.bf16.vlgmr.msra.gmra.mrb[32].mxu0 %v9713_v58  ;;  %7077 = vmatpush1.bf16.msra.mxu1 %v8919_v40  ;;  %v8939_v58 = vld [vmem:[#allocation16 + $0x64] ss:$8 sps:$4 sm:$0xff]  }
 0x7e2   :  { %7078 = vmatprep.subr.bf16.mxu1 %v8924_v41  ;;  %v8975_v40 = vld [vmem:[#allocation16 + $0x124] ss:$8 sps:$4 sm:$0xff]   ;;  %v8973_v41 = vld [vmem:[#allocation16 + $0x120] ss:$8 sps:$4 sm:$0xff]  }
 0x7e5   :  { %7079 = vmatpush1.bf16.msra.mxu1 %v8922_v42  ;;  %v8978_v42 = vld [vmem:[#allocation16 + $0x134] ss:$8 sps:$4 sm:$0xff]  }
 0x7e6   :  { %7080 = vmatprep.subr.bf16.mxu1 %v8927_v43  ;;  %v8976_v43 = vld [vmem:[#allocation16 + $0x130] ss:$8 sps:$4 sm:$0xff]  }
 0x7e9   :  { %7081 = vmatpush1.bf16.msra.mxu1 %v8925_v44  ;;  %v8981_v44 = vld [vmem:[#allocation16 + $0x144] ss:$8 sps:$4 sm:$0xff]  }
 0x7ea   :  { %7082 = vmatprep.subr.bf16.mxu1 %v8930_v60  ;;  %v8979_v60 = vld [vmem:[#allocation16 + $0x140] ss:$8 sps:$4 sm:$0xff]  }
 0x7ed   :  { %7083 = vmatpush1.bf16.msra.mxu1 %v8928_v28  ;;  %v8984_v28 = vld [vmem:[#allocation16 + $0x154] ss:$8 sps:$4 sm:$0xff]  }
 0x7ee   :  { %7084 = vmatprep.subr.bf16.mxu1 %v8933_v46  ;;  %v8982_v46 = vld [vmem:[#allocation16 + $0x150] ss:$8 sps:$4 sm:$0xff]  }
 0x7f1   :  { %7085 = vmatpush1.bf16.msra.mxu1 %v8931_v49  ;;  %v8987_v49 = vld [vmem:[#allocation16 + $0x164] ss:$8 sps:$4 sm:$0xff]  }
 0x7f2   :  { %7086 = vmatprep.subr.bf16.mxu1 %v8936_v50  ;;  %v8985_v50 = vld [vmem:[#allocation16 + $0x160] ss:$8 sps:$4 sm:$0xff]  }
 0x7f5   :  { %7087 = vmatpush1.bf16.msra.mxu1 %v8934_v52  ;;  %v8990_v52 = vld [vmem:[#allocation16 + $0x174] ss:$8 sps:$4 sm:$0xff]  }
 0x7f6   :  { %7088 = vmatprep.subr.bf16.mxu1 %v8939_v58  ;;  %v8988_v58 = vld [vmem:[#allocation16 + $0x170] ss:$8 sps:$4 sm:$0xff]  }
 0x7f9   :  { %7089 = vmatpush1.bf16.msra.mxu1 %v8937_v53  ;;  %v8993_v53 = vld [vmem:[#allocation16 + $0x184] ss:$8 sps:$4 sm:$0xff]  }
 0x7fa   :  { %7090 = vmatprep.subr.bf16.mxu1 %v8942_v54  ;;  %v8991_v54 = vld [vmem:[#allocation16 + $0x180] ss:$8 sps:$4 sm:$0xff]  }
 0x7fd   :  { %7091 = vmatpush1.bf16.msra.mxu1 %v8940_v34  ;;  %v8996_v34 = vld [vmem:[#allocation16 + $0x194] ss:$8 sps:$4 sm:$0xff]  }
 0x7fe   :  { %7092 = vmatprep.subr.bf16.mxu1 %v8945_v45  ;;  %v8994_v45 = vld [vmem:[#allocation16 + $0x190] ss:$8 sps:$4 sm:$0xff]  }
 0x801   :  { %7093 = vmatpush1.bf16.msra.mxu1 %v8943_v18  ;;  %v8999_v18 = vld [vmem:[#allocation16 + $0x1a4] ss:$8 sps:$4 sm:$0xff]  }
 0x802   :  { %7094 = vmatprep.subr.bf16.mxu1 %v8948_v55  ;;  %v8997_v55 = vld [vmem:[#allocation16 + $0x1a0] ss:$8 sps:$4 sm:$0xff]  }
 0x805   :  { %7095 = vmatpush1.bf16.msra.mxu1 %v8946_v1  ;;  %v9002_v1 = vld [vmem:[#allocation16 + $0x1b4] ss:$8 sps:$4 sm:$0xff]  }
 0x806   :  { %7096 = vmatprep.subr.bf16.mxu1 %v8951_v56  ;;  %v9000_v56 = vld [vmem:[#allocation16 + $0x1b0] ss:$8 sps:$4 sm:$0xff]  }
 0x809   :  { %7097 = vmatpush1.bf16.msra.mxu1 %v8949_v57  ;;  %v9005_v57 = vld [vmem:[#allocation16 + $0x1c4] ss:$8 sps:$4 sm:$0xff]  }
 0x80a   :  { %7098 = vmatprep.subr.bf16.mxu1 %v8954_v59  ;;  %v9003_v59 = vld [vmem:[#allocation16 + $0x1c0] ss:$8 sps:$4 sm:$0xff]  }
 0x80d   :  { %7099 = vmatpush1.bf16.msra.mxu1 %v8952_v61  ;;  %v9008_v61 = vld [vmem:[#allocation16 + $0x1d4] ss:$8 sps:$4 sm:$0xff]  }
 0x80e   :  { %7100 = vmatprep.subr.bf16.mxu1 %v8957_v62  ;;  %v9006_v62 = vld [vmem:[#allocation16 + $0x1d0] ss:$8 sps:$4 sm:$0xff]  }
 0x811   :  { %7101 = vmatpush1.bf16.msra.mxu1 %v8955_v63  ;;  %v4643_v63 = vrot.slane %v9728_v27, %v9625_v20  ;;  %v9018_v20 = vld [vmem:[#allocation16 + $0x210] ss:$8 sps:$4 sm:$0xff]  }
 0x812   :  { %7102 = vmatprep.subr.bf16.mxu1 %v8960_v0  ;;  %v9011_v0 = vld [vmem:[#allocation16 + $0x1e4] ss:$8 sps:$4 sm:$0xff]  }
 0x815   :  { %7103 = vmatpush1.bf16.msra.mxu1 %v8958_v3  ;;  %v9009_v3 = vld [vmem:[#allocation16 + $0x1e0] ss:$8 sps:$4 sm:$0xff]  }
 0x816   :  { %7104 = vmatprep.subr.bf16.mxu1 %v8963_v4 }
 0x819   :  { %7105 = vmatpush1.bf16.msra.mxu1 %v8961_v5  ;;  %v9014_v5 = vld [vmem:[#allocation16 + $0x1f4] ss:$8 sps:$4 sm:$0xff]  }
 0x81a   :  { %7106 = vmatprep.subr.bf16.mxu1 %v8966_v6  ;;  %v9012_v6 = vld [vmem:[#allocation16 + $0x1f0] ss:$8 sps:$4 sm:$0xff]  }
 0x81d   :  { %7107 = vmatpush1.bf16.msra.mxu1 %v8964_v2 }
 0x81e   :  { %7117 = vmatprep.subr.bf16.mxu1 %v8969_v9  ;;  %v9017_v9 = vld [vmem:[#allocation16 + $0x204] ss:$8 sps:$4 sm:$0xff]  }
 0x833   :  { %v6027_v16 = vpop.f32.mrb[16].mxu1  ;;  %v9736_v17 = vpop.f32.mrb[28].mxu0 }
 0x834   :  { %v8218_v19 = vadd.f32 %v6027_v16, %v4635_v7  ;;  %v6029_v21 = vpop.f32.mrb[17].mxu1  ;;  %v6111_v22 = vpop.f32.mrb[29].mxu0  ;;  %v8220_v4 = vadd.f32 %v9736_v17, %v4643_v63  ;;  %v9015_v7 = vld [vmem:[#allocation16 + $0x200] ss:$8 sps:$4 sm:$0xff]   ;;  %v9023_v16 = vld [vmem:[#allocation16 + $0x224] ss:$8 sps:$4 sm:$0xff]  }
 0x835   :  { %v8219_v25 = vadd.f32 %v6029_v21, %v4639_v10  ;;  %v8221_v26 = vadd.f32 %v6111_v22, %v4647_v15  ;;  %v6031_v29 = vpop.f32.mrb[18].mxu1  ;;  %v6113_v30 = vpop.f32.mrb[30].mxu0  ;;  %v9020_v15 = vld [vmem:[#allocation16 + $0x214] ss:$8 sps:$4 sm:$0xff]   ;;  %v9024_v21 = vld [vmem:[#allocation16 + $0x230] ss:$8 sps:$4 sm:$0xff]  }
 0x836   :  { %v6280_v31 = vmax.f32 %v8218_v19, 0.0  ;;  %v6032_v13 = vpop.f32.mrb[19].mxu1  ;;  %v6114_v32 = vpop.f32.mrb[31].mxu0  ;;  %v6282_v2 = vmax.f32 %v8220_v4, 0.0  ;;  %v9021_v19 = vld [vmem:[#allocation16 + $0x220] ss:$8 sps:$4 sm:$0xff]  }
 0x837   :  { %v6281_v33 = vmax.f32 %v8219_v25, 0.0  ;;  %v6283_v24 = vmax.f32 %v8221_v26, 0.0  ;;  %v9026_v17 = vld [vmem:[#allocation16 + $0x234] ss:$8 sps:$4 sm:$0xff]   ;;  %v9029_v22 = vld [vmem:[#allocation16 + $0x244] ss:$8 sps:$4 sm:$0xff]  }
 0x838   :  { %v6288_v37 = vpack.c.bf16 %v6280_v31, %v6280_v31  ;;  %v6290_v10 = vpack.c.bf16 %v6282_v2, %v6282_v2  ;;  %v9027_v25 = vld [vmem:[#allocation16 + $0x240] ss:$8 sps:$4 sm:$0xff]   ;;  %v9032_v26 = vld [vmem:[#allocation16 + $0x254] ss:$8 sps:$4 sm:$0xff]   ;;  %v9030_v29 = vld [vmem:[#allocation16 + $0x250] ss:$8 sps:$4 sm:$0xff]  }
 0x839   :  { %v6289_v35 = vpack.c.bf16 %v6281_v33, %v6281_v33  ;;  %v6291_v23 = vpack.c.bf16 %v6283_v24, %v6283_v24  ;;  %v9035_v30 = vld [vmem:[#allocation16 + $0x264] ss:$8 sps:$4 sm:$0xff]   ;;  %v9033_v31 = vld [vmem:[#allocation16 + $0x260] ss:$8 sps:$4 sm:$0xff]   ;;  %v9038_v13 = vld [vmem:[#allocation16 + $0x274] ss:$8 sps:$4 sm:$0xff]  }
 0x83a   :  { %v9036_v32 = vld [vmem:[#allocation16 + $0x270] ss:$8 sps:$4 sm:$0xff]   ;;  %v9041_v33 = vld [vmem:[#allocation16 + $0x284] ss:$8 sps:$4 sm:$0xff]   ;;  %v9039_v24 = vld [vmem:[#allocation16 + $0x280] ss:$8 sps:$4 sm:$0xff]  }
 0x83b   :  { %7108 = vmatprep.mubr.bf16.mxu1 %v6289_v35  ;;  %v9044_v35 = vld [vmem:[#allocation16 + $0x294] ss:$8 sps:$4 sm:$0xff]   ;;  %v9063_v63 = vld [vmem:[#allocation16 + $0x300] ss:$8 sps:$4 sm:$0xff]  }
 0x83c   :  { %7109 = vmatmul.mubr.bf16.vlgmr.msra.gmra.mrb[24].mxu1 %v6288_v37  ;;  %v9047_v37 = vld [vmem:[#allocation16 + $0x2a4] ss:$8 sps:$4 sm:$0xff]   ;;  %v9069_v2 = vld [vmem:[#allocation16 + $0x320] ss:$8 sps:$4 sm:$0xff]  }
 0x83d   :  { %7118 = vmatpush1.bf16.msra.mxu1 %v8967_v36  ;;  %7149 = vmatprep.mubr.bf16.mxu1 %v6291_v23  ;;  %v9042_v36 = vld [vmem:[#allocation16 + $0x290] ss:$8 sps:$4 sm:$0xff]   ;;  %v9050_v23 = vld [vmem:[#allocation16 + $0x2b4] ss:$8 sps:$4 sm:$0xff]  }
 0x83e   :  { %7119 = vmatprep.subr.bf16.mxu1 %v8972_v38  ;;  %v9045_v38 = vld [vmem:[#allocation16 + $0x2a0] ss:$8 sps:$4 sm:$0xff]  }
 0x841   :  { %7120 = vmatpush1.bf16.msra.mxu1 %v8970_v39  ;;  %v9048_v39 = vld [vmem:[#allocation16 + $0x2b0] ss:$8 sps:$4 sm:$0xff]  }
 0x842   :  { %7121 = vmatprep.subr.bf16.mxu1 %v8975_v40  ;;  %v9053_v40 = vld [vmem:[#allocation16 + $0x2c4] ss:$8 sps:$4 sm:$0xff]  }
 0x845   :  { %7122 = vmatpush1.bf16.msra.mxu1 %v8973_v41  ;;  %v9051_v41 = vld [vmem:[#allocation16 + $0x2c0] ss:$8 sps:$4 sm:$0xff]  }
 0x846   :  { %7123 = vmatprep.subr.bf16.mxu1 %v8978_v42  ;;  %v9056_v42 = vld [vmem:[#allocation16 + $0x2d4] ss:$8 sps:$4 sm:$0xff]  }
 0x849   :  { %7124 = vmatpush1.bf16.msra.mxu1 %v8976_v43  ;;  %v9054_v43 = vld [vmem:[#allocation16 + $0x2d0] ss:$8 sps:$4 sm:$0xff]  }
 0x84a   :  { %7125 = vmatprep.subr.bf16.mxu1 %v8981_v44  ;;  %v9059_v44 = vld [vmem:[#allocation16 + $0x2e4] ss:$8 sps:$4 sm:$0xff]  }
 0x84d   :  { %7126 = vmatpush1.bf16.msra.mxu1 %v8979_v60  ;;  %v4651_v60 = vrot.slane %v9728_v27, %v330_v48 }
 0x84e   :  { %7127 = vmatprep.subr.bf16.mxu1 %v8984_v28  ;;  %v9057_v28 = vld [vmem:[#allocation16 + $0x2e0] ss:$8 sps:$4 sm:$0xff]  }
 0x851   :  { %7128 = vmatpush1.bf16.msra.mxu1 %v8982_v46  ;;  %v4655_v46 = vrot.slane %v9728_v27, %v334_v51 }
 0x852   :  { %7129 = vmatprep.subr.bf16.mxu1 %v8987_v49  ;;  %v4663_v49 = vrot.slane %v9728_v27, %v342_v47 }
 0x855   :  { %7130 = vmatpush1.bf16.msra.mxu1 %v8985_v50  ;;  %v9062_v50 = vld [vmem:[#allocation16 + $0x2f4] ss:$8 sps:$4 sm:$0xff]  }
 0x856   :  { %7131 = vmatprep.subr.bf16.mxu1 %v8990_v52 }
 0x859   :  { %7132 = vmatpush1.bf16.msra.mxu1 %v8988_v58 }
 0x85a   :  { %7133 = vmatprep.subr.bf16.mxu1 %v8993_v53 }
 0x85d   :  { %7134 = vmatpush1.bf16.msra.mxu1 %v8991_v54 }
 0x85e   :  { %7135 = vmatprep.subr.bf16.mxu1 %v8996_v34 }
 0x861   :  { %7136 = vmatpush1.bf16.msra.mxu1 %v8994_v45 }
 0x862   :  { %7137 = vmatprep.subr.bf16.mxu1 %v8999_v18  ;;  %v9060_v18 = vld [vmem:[#allocation16 + $0x2f0] ss:$8 sps:$4 sm:$0xff]  }
 0x865   :  { %7138 = vmatpush1.bf16.msra.mxu1 %v8997_v55 }
 0x866   :  { %7139 = vmatprep.subr.bf16.mxu1 %v9002_v1 }
 0x869   :  { %7140 = vmatpush1.bf16.msra.mxu1 %v9000_v56 }
 0x86a   :  { %7141 = vmatprep.subr.bf16.mxu1 %v9005_v57  ;;  %v9065_v57 = vld [vmem:[#allocation16 + $0x304] ss:$8 sps:$4 sm:$0xff]  }
 0x86d   :  { %7142 = vmatpush1.bf16.msra.mxu1 %v9003_v59 }
 0x86e   :  { %7143 = vmatprep.subr.bf16.mxu1 %v9008_v61 }
 0x871   :  { %7144 = vmatpush1.bf16.msra.mxu1 %v9006_v62 }
 0x872   :  { %7145 = vmatprep.subr.bf16.mxu1 %v9011_v0 }
 0x875   :  { %7146 = vmatpush1.bf16.msra.mxu1 %v9009_v3  ;;  %v9068_v3 = vld [vmem:[#allocation16 + $0x314] ss:$8 sps:$4 sm:$0xff]  }
 0x876   :  { %7147 = vmatprep.subr.bf16.mxu1 %v9014_v5  ;;  %v9066_v5 = vld [vmem:[#allocation16 + $0x310] ss:$8 sps:$4 sm:$0xff]  }
 0x879   :  { %7148 = vmatpush1.bf16.msra.mxu1 %v9012_v6  ;;  %v9071_v6 = vld [vmem:[#allocation16 + $0x324] ss:$8 sps:$4 sm:$0xff]  }
 0x87a   :  { %7158 = vmatprep.subr.bf16.mxu1 %v9017_v9  ;;  %v9074_v9 = vld [vmem:[#allocation16 + $0x334] ss:$8 sps:$4 sm:$0xff]  }
 0x87c   :  { %7150 = vmatmul.mubr.bf16.vlgmr.msra.gmra.mrb[24].mxu1 %v6290_v10  ;;  %v9077_v10 = vld [vmem:[#allocation16 + $0x344] ss:$8 sps:$4 sm:$0xff]  }
 0x87d   :  { %7159 = vmatpush1.bf16.msra.mxu1 %v9015_v7  ;;  %v9072_v7 = vld [vmem:[#allocation16 + $0x330] ss:$8 sps:$4 sm:$0xff]  }
 0x87e   :  { %7160 = vmatprep.subr.bf16.mxu1 %v9020_v15  ;;  %v9075_v15 = vld [vmem:[#allocation16 + $0x340] ss:$8 sps:$4 sm:$0xff]  }
 0x881   :  { %7161 = vmatpush1.bf16.msra.mxu1 %v9018_v20  ;;  %v9080_v20 = vld [vmem:[#allocation16 + $0x354] ss:$8 sps:$4 sm:$0xff]  }
 0x882   :  { %7162 = vmatprep.subr.bf16.mxu1 %v9023_v16  ;;  %v9078_v16 = vld [vmem:[#allocation16 + $0x350] ss:$8 sps:$4 sm:$0xff]  }
 0x885   :  { %7163 = vmatpush1.bf16.msra.mxu1 %v9021_v19  ;;  %v9083_v19 = vld [vmem:[#allocation16 + $0x364] ss:$8 sps:$4 sm:$0xff]  }
 0x886   :  { %7164 = vmatprep.subr.bf16.mxu1 %v9026_v17  ;;  %v9081_v17 = vld [vmem:[#allocation16 + $0x360] ss:$8 sps:$4 sm:$0xff]  }
 0x889   :  { %7165 = vmatpush1.bf16.msra.mxu1 %v9024_v21  ;;  %v9086_v21 = vld [vmem:[#allocation16 + $0x374] ss:$8 sps:$4 sm:$0xff]  }
 0x88a   :  { %7166 = vmatprep.subr.bf16.mxu1 %v9029_v22  ;;  %v9084_v22 = vld [vmem:[#allocation16 + $0x370] ss:$8 sps:$4 sm:$0xff]  }
 0x88d   :  { %7167 = vmatpush1.bf16.msra.mxu1 %v9027_v25  ;;  %v9089_v25 = vld [vmem:[#allocation16 + $0x384] ss:$8 sps:$4 sm:$0xff]  }
 0x88e   :  { %7168 = vmatprep.subr.bf16.mxu1 %v9032_v26  ;;  %v9087_v26 = vld [vmem:[#allocation16 + $0x380] ss:$8 sps:$4 sm:$0xff]  }
 0x891   :  { %7169 = vmatpush1.bf16.msra.mxu1 %v9030_v29  ;;  %v9092_v29 = vld [vmem:[#allocation16 + $0x394] ss:$8 sps:$4 sm:$0xff]  }
 0x892   :  { %7170 = vmatprep.subr.bf16.mxu1 %v9035_v30  ;;  %v9090_v30 = vld [vmem:[#allocation16 + $0x390] ss:$8 sps:$4 sm:$0xff]  }
 0x895   :  { %7171 = vmatpush1.bf16.msra.mxu1 %v9033_v31  ;;  %v9095_v31 = vld [vmem:[#allocation16 + $0x3a4] ss:$8 sps:$4 sm:$0xff]  }
 0x896   :  { %7172 = vmatprep.subr.bf16.mxu1 %v9038_v13  ;;  %v9093_v13 = vld [vmem:[#allocation16 + $0x3a0] ss:$8 sps:$4 sm:$0xff]  }
 0x899   :  { %7173 = vmatpush1.bf16.msra.mxu1 %v9036_v32  ;;  %v9098_v32 = vld [vmem:[#allocation16 + $0x3b4] ss:$8 sps:$4 sm:$0xff]  }
 0x89a   :  { %7174 = vmatprep.subr.bf16.mxu1 %v9041_v33  ;;  %v9096_v33 = vld [vmem:[#allocation16 + $0x3b0] ss:$8 sps:$4 sm:$0xff]  }
 0x89d   :  { %7175 = vmatpush1.bf16.msra.mxu1 %v9039_v24  ;;  %v9101_v24 = vld [vmem:[#allocation16 + $0x3c4] ss:$8 sps:$4 sm:$0xff]  }
 0x89e   :  { %7176 = vmatprep.subr.bf16.mxu1 %v9044_v35  ;;  %v9099_v35 = vld [vmem:[#allocation16 + $0x3c0] ss:$8 sps:$4 sm:$0xff]  }
 0x8a1   :  { %7177 = vmatpush1.bf16.msra.mxu1 %v9042_v36  ;;  %v9104_v36 = vld [vmem:[#allocation16 + $0x3d4] ss:$8 sps:$4 sm:$0xff]  }
 0x8a2   :  { %7178 = vmatprep.subr.bf16.mxu1 %v9047_v37  ;;  %v9102_v37 = vld [vmem:[#allocation16 + $0x3d0] ss:$8 sps:$4 sm:$0xff]  }
 0x8a5   :  { %7179 = vmatpush1.bf16.msra.mxu1 %v9045_v38  ;;  %v4659_v38 = vrot.slane %v9728_v27, %v338_v8  ;;  %v6429_v8 = vrot.slane %v6424_v11, %v9610_v12  ;;  %v6433_v27 = vrot.slane %v6424_v11, %v9618_v14 }
 0x8a6   :  { %7180 = vmatprep.subr.bf16.mxu1 %v9050_v23  ;;  %v9107_v23 = vld [vmem:[#allocation16 + $0x3e4] ss:$8 sps:$4 sm:$0xff]  }
 0x8a9   :  { %7181 = vmatpush1.bf16.msra.mxu1 %v9048_v39  ;;  %v9105_v39 = vld [vmem:[#allocation16 + $0x3e0] ss:$8 sps:$4 sm:$0xff]  }
 0x8aa   :  { %7182 = vmatprep.subr.bf16.mxu1 %v9053_v40 }
 0x8ad   :  { %7183 = vmatpush1.bf16.msra.mxu1 %v9051_v41  ;;  %v9110_v41 = vld [vmem:[#allocation16 + $0x3f4] ss:$8 sps:$4 sm:$0xff]  }
 0x8ae   :  { %7184 = vmatprep.subr.bf16.mxu1 %v9056_v42  ;;  %v9108_v42 = vld [vmem:[#allocation16 + $0x3f0] ss:$8 sps:$4 sm:$0xff]  }
 0x8b1   :  { %7185 = vmatpush1.bf16.msra.mxu1 %v9054_v43 }
 0x8b2   :  { %7186 = vmatprep.subr.bf16.mxu1 %v9059_v44 }
 0x8b3   :  { %v6191_v52 = vpop.f32.mrb[20].mxu1 }
 0x8b4   :  { %v8222_v58 = vadd.f32 %v6191_v52, %v4651_v60  ;;  %v9750_v53 = vpop.f32.mrb[32].mxu0  ;;  %v6193_v54 = vpop.f32.mrb[21].mxu1 }
 0x8b5   :  { %v8223_v34 = vadd.f32 %v6193_v54, %v4655_v46  ;;  %v6275_v45 = vpop.f32.mrb[33].mxu0  ;;  %7187 = vmatpush1.bf16.msra.mxu1 %v9057_v28  ;;  %v6195_v48 = vpop.f32.mrb[22].mxu1  ;;  %v8224_v40 = vadd.f32 %v9750_v53, %v4659_v38 }
 0x8b6   :  { %v6284_v55 = vmax.f32 %v8222_v58, 0.0  ;;  %v8225_v1 = vadd.f32 %v6275_v45, %v4663_v49  ;;  %v6277_v56 = vpop.f32.mrb[34].mxu0  ;;  %v6196_v51 = vpop.f32.mrb[23].mxu1  ;;  %7188 = vmatprep.subr.bf16.mxu1 %v9062_v50 }
 0x8b7   :  { %v6285_v59 = vmax.f32 %v8223_v34, 0.0  ;;  %v6278_v61 = vpop.f32.mrb[35].mxu0  ;;  %v6286_v43 = vmax.f32 %v8224_v40, 0.0 }
 0x8b8   :  { %v6287_v47 = vmax.f32 %v8225_v1, 0.0  ;;  %v6292_v0 = vpack.c.bf16 %v6284_v55, %v6284_v55 }
 0x8b9   :  { %v6293_v62 = vpack.c.bf16 %v6285_v59, %v6285_v59  ;;  %7189 = vmatpush1.bf16.msra.mxu1 %v9060_v18  ;;  %v6294_v44 = vpack.c.bf16 %v6286_v43, %v6286_v43 }
 0x8ba   :  { %7199 = vmatprep.subr.bf16.mxu1 %v9065_v57  ;;  %v6295_v4 = vpack.c.bf16 %v6287_v47, %v6287_v47 }
 0x8bb   :  { %7190 = vmatprep.mubr.bf16.mxu1 %v6293_v62 }
 0x8bc   :  { %7191 = vmatmul.mubr.bf16.vlgmr.msra.gmra.mrb[24].mxu1 %v6292_v0 }
 0x8bd   :  { %7200 = vmatpush1.bf16.msra.mxu1 %v9063_v63  ;;  %7231 = vmatprep.mubr.bf16.mxu1 %v6295_v4 }
 0x8be   :  { %7201 = vmatprep.subr.bf16.mxu1 %v9068_v3 }
 0x8c1   :  { %7202 = vmatpush1.bf16.msra.mxu1 %v9066_v5 }
 0x8c2   :  { %7203 = vmatprep.subr.bf16.mxu1 %v9071_v6 }
 0x8c5   :  { %7204 = vmatpush1.bf16.msra.mxu1 %v9069_v2 }
 0x8c6   :  { %7205 = vmatprep.subr.bf16.mxu1 %v9074_v9 }
 0x8c9   :  { %7206 = vmatpush1.bf16.msra.mxu1 %v9072_v7 }
 0x8ca   :  { %7207 = vmatprep.subr.bf16.mxu1 %v9077_v10 }
 0x8cd   :  { %7208 = vmatpush1.bf16.msra.mxu1 %v9075_v15 }
 0x8ce   :  { %7209 = vmatprep.subr.bf16.mxu1 %v9080_v20 }
 0x8d1   :  { %7210 = vmatpush1.bf16.msra.mxu1 %v9078_v16 }
 0x8d2   :  { %7211 = vmatprep.subr.bf16.mxu1 %v9083_v19 }
 0x8d5   :  { %7212 = vmatpush1.bf16.msra.mxu1 %v9081_v17 }
 0x8d6   :  { %7213 = vmatprep.subr.bf16.mxu1 %v9086_v21 }
 0x8d9   :  { %7214 = vmatpush1.bf16.msra.mxu1 %v9084_v22 }
 0x8da   :  { %7215 = vmatprep.subr.bf16.mxu1 %v9089_v25 }
 0x8dd   :  { %7216 = vmatpush1.bf16.msra.mxu1 %v9087_v26 }
 0x8de   :  { %7217 = vmatprep.subr.bf16.mxu1 %v9092_v29 }
 0x8e1   :  { %7218 = vmatpush1.bf16.msra.mxu1 %v9090_v30 }
 0x8e2   :  { %7219 = vmatprep.subr.bf16.mxu1 %v9095_v31 }
 0x8e5   :  { %7220 = vmatpush1.bf16.msra.mxu1 %v9093_v13 }
 0x8e6   :  { %7221 = vmatprep.subr.bf16.mxu1 %v9098_v32 }
 0x8e9   :  { %7222 = vmatpush1.bf16.msra.mxu1 %v9096_v33 }
 0x8ea   :  { %7223 = vmatprep.subr.bf16.mxu1 %v9101_v24 }
 0x8ed   :  { %7224 = vmatpush1.bf16.msra.mxu1 %v9099_v35 }
 0x8ee   :  { %7225 = vmatprep.subr.bf16.mxu1 %v9104_v36 }
 0x8f1   :  { %7226 = vmatpush1.bf16.msra.mxu1 %v9102_v37 }
 0x8f2   :  { %7227 = vmatprep.subr.bf16.mxu1 %v9107_v23 }
 0x8f5   :  { %7228 = vmatpush1.bf16.msra.mxu1 %v9105_v39 }
 0x8f6   :  { %7229 = vmatprep.subr.bf16.mxu1 %v9110_v41 }
 0x8f9   :  { %7230 = vmatpush1.bf16.msra.mxu1 %v9108_v42 }
 0x8fc   :  { %7232 = vmatmul.mubr.bf16.vlgmr.msra.gmra.mrb[24].mxu1 %v6294_v44 }
 0x9cf   :  { %v7233_v60 = vpop.f32.mrb[24].mxu1 }
 0x9d0   :  { %v8226_v28 = vadd.f32 %v7233_v60, %v6429_v8  ;;  %v7235_v46 = vpop.f32.mrb[25].mxu1 }
 0x9d1   :  { %v8227_v49 = vadd.f32 %v7235_v46, %v6433_v27  ;;  %v7237_v50 = vpop.f32.mrb[26].mxu1 }
 0x9d2   :  { %7240 = vst [vmem:[#allocation17] sm:$0xff] %v8226_v28  ;;  %v7238_v52 = vpop.f32.mrb[27].mxu1 }
 0x9d3   :  { %7241 = vst [vmem:[#allocation17 + $0x8] sm:$0xff] %v8227_v49 }
 0x9d4   :  { %9320 = shalt.err (!%p9317_p6)
}
 0x9d5   :  { %s9805_s23 = sld [smem:[#allocation26_spill]] }
 0x9db   :  { %s9321_s22 = scalar_lea.hbm %s9805_s23, 256 }
 0x9dc   :  { %p9322_p7 = scmp.ne.s32.totalorder %s9805_s23, %s9321_s22  ;;  %p9325_p8 = scmp.lt.u32.totalorder %s9321_s22, %s9805_s23 }
 0x9de   :  { %p9327_p9 = pnand %p9325_p8, %p9322_p7 }
 0x9e0   :  { %9330 = shalt.err (!%p9327_p9)
}
 0x9e1   :  { %7251 = dma.vmem_to_hbm [thread:$0]  %s7249_s18, 256, %s9805_s23, [#allocation4]  }
 0x9e2   :  { %9341 = dma.done.wait [#allocation4], 256  }
 0x9e3   :  { %9342 = vsyncadd [#allocation4], 4294967040 }
 0x9e4   :  { %7255 = vsyncpa [#allocation3], 1 }
 0x9e5   :  { %7256 = vsyncpa [#allocation6], 1 }
 0x9e6   :  { %7257 = vsyncpa [#allocation9], 1 }
 0x9e7   :  { %7258 = vsyncpa [#allocation12], 1 }
 0x9e8   :  { %7259 = vsyncpa [#allocation15], 1 }
 0x9e9   :  { %7260 = vsyncpa [#allocation4], 1 }

</bundles_post_ra>
